<compile_context>
chip_gen: v5e
topology: v5e:2x2
jax: 0.10.0
libtpu: 0.0.40
codegen_flags: <defaults>
</compile_context>

<pallas_src>
import math

import jax
import jax.numpy as jnp
from jax import lax
from jax.experimental import pallas as pl
from jax.experimental.pallas import tpu as pltpu


# ------------------------------ configuration ------------------------------

def build_config():
    layers = [
        dict(in_dims=(16, 16), in_channels=3, out_channels=4,
             kernel_dims=(3, 3), stride=(1, 1), padding=(0, 0), bias=True),
        dict(in_dims=None, in_channels=1, out_channels=4,
             kernel_dims=(3, 3), stride=(1, 1), padding=(0, 0), bias=True),
    ]
    cfg = dict(layers=layers, max_pool_kernel_dim=2, max_pool_stride=2,
               dropout_p=0.2, fc1_hidden_dim=10)
    n = len(layers)
    for i in range(n):
        lp = layers[i]
        nkh = (lp['in_dims'][0] - lp['kernel_dims'][0] + 2 * lp['padding'][0]) // lp['stride'][0] + 1
        nkw = (lp['in_dims'][1] - lp['kernel_dims'][1] + 2 * lp['padding'][1]) // lp['stride'][1] + 1
        r = int(math.isqrt(lp['out_channels']))
        assert r * r == lp['out_channels'], "out_channels must be a perfect square"
        lp['num_kernels_out'] = (nkh, nkw)
        lp['out_shape'] = (r * nkh, r * nkw)
        div = 2 if i % 2 == 0 else 1
        if i < n - 1:
            layers[i + 1]['in_dims'] = tuple(s // div for s in lp['out_shape'])
    cfg['fc1_in'] = layers[-1]['out_shape'][0] * layers[-1]['out_shape'][1]
    # the single lane-dense canvas everything runs on: layer-0 padded input dims
    cfg['canvas_hw'] = (layers[0]['in_dims'][0] + 2 * layers[0]['padding'][0],
                        layers[0]['in_dims'][1] + 2 * layers[0]['padding'][1])
    return cfg


# ------------------------------- parameters --------------------------------

def init_params(key, cfg):
    """PyTorch-layout parameters (per-location weights (N,O,C,kh,kw), zero bias,
    unit gamma / zero beta LayerNorm, nn.Linear-style fc1 init)."""
    params = dict(layers=[])
    for lp in cfg['layers']:
        nkh, nkw = lp['num_kernels_out']
        N = nkh * nkw
        O = lp['out_channels']
        C = lp['in_channels']
        kh, kw = lp['kernel_dims']
        fan_in = C * kh * kw
        fan_out = O * kh * kw
        std = math.sqrt(2.0 / (fan_in + fan_out))  # xavier_normal_ per location weight
        key, kw_ = jax.random.split(key)
        w = std * jax.random.normal(kw_, (N, O, C, kh, kw), jnp.float32)
        h2, w2 = lp['out_shape']
        params['layers'].append(dict(
            w=w,
            b=jnp.zeros((O, nkh, nkw), jnp.float32),
            ln_w=jnp.ones((h2, w2), jnp.float32),
            ln_b=jnp.zeros((h2, w2), jnp.float32),
        ))
    F = cfg['fc1_in']
    Hd = cfg['fc1_hidden_dim']
    bound = 1.0 / math.sqrt(F)
    key, k1, k2 = jax.random.split(key, 3)
    params['fc1_w'] = jax.random.uniform(k1, (F, Hd), jnp.float32, -bound, bound)
    params['fc1_b'] = jax.random.uniform(k2, (1, Hd), jnp.float32, -bound, bound)
    return params


def prepare_kernel_params(params, cfg):
    """Hoist every constant layout shuffle out of the forward pass (done once).

    Everything is laid out on the lane-dense pitch-W0 canvas (length L = H0*W0):
      - per-tap weight slabs (K, O, L): slab[k, o, ih*W0+iw] = w_loc[(ih,iw)][o, c, ki, kj],
        zero at invalid canvas lanes (iw >= nkw or ih >= nkh) -> no in-kernel masking.
      - bias / LayerNorm gamma,beta slabs (O, L) in conv layout (zero at invalid lanes).
      - fc1 weights (O, L, Hd): torch.flatten row permutation AND the canvas padding are
        folded in (zero rows for invalid lanes), so the kernel needs no flatten scatter.
    """
    H0, W0 = cfg['canvas_hw']
    L = H0 * W0
    kp = dict(layers=[])
    for lp, p in zip(cfg['layers'], params['layers']):
        nkh, nkw = lp['num_kernels_out']
        O = lp['out_channels']
        C = lp['in_channels']
        kh, kw = lp['kernel_dims']
        K = C * kh * kw
        r = int(math.isqrt(O))
        # (N, O, C, kh, kw) -> (K, O, nkh, nkw) with k = (c*kh + ki)*kw + kj
        wt = p['w'].reshape(nkh, nkw, O, C, kh, kw)
        wt = jnp.transpose(wt, (3, 4, 5, 2, 0, 1)).reshape(K, O, nkh, nkw)
        w_slab = jnp.zeros((K, O, H0, W0), jnp.float32).at[:, :, :nkh, :nkw].set(wt)
        b_slab = jnp.zeros((O, H0, W0), jnp.float32).at[:, :nkh, :nkw].set(p['b'])
        o = jnp.arange(O)[:, None, None]
        ih = jnp.arange(nkh)[None, :, None]
        iw = jnp.arange(nkw)[None, None, :]
        g2 = p['ln_w'][r * ih + o // r, r * iw + o % r]      # (O, nkh, nkw) conv-layout gamma
        bb2 = p['ln_b'][r * ih + o // r, r * iw + o % r]
        g_slab = jnp.zeros((O, H0, W0), jnp.float32).at[:, :nkh, :nkw].set(g2)
        bb_slab = jnp.zeros((O, H0, W0), jnp.float32).at[:, :nkh, :nkw].set(bb2)
        kp['layers'].append(dict(
            w=w_slab.reshape(K, O, L),
            b=b_slab.reshape(O, L),
            g=g_slab.reshape(O, L),
            beta=bb_slab.reshape(O, L),
        ))

    # fc1: the final layer is NOT pooled, so torch.flatten sees the interleaved (H2, W2)
    # map.  Fold that permutation + the canvas padding into the weight rows.
    lp = cfg['layers'][-1]
    nkh, nkw = lp['num_kernels_out']
    O = lp['out_channels']
    r = int(math.isqrt(O))
    W2 = lp['out_shape'][1]
    Hd = cfg['fc1_hidden_dim']
    o = jnp.arange(O)[:, None, None]
    i1 = jnp.arange(nkh)[None, :, None]
    j1 = jnp.arange(nkw)[None, None, :]
    rows = (r * i1 + o // r) * W2 + (r * j1 + o % r)         # (O, nkh, nkw)
    fcw = jnp.zeros((O, H0, W0, Hd), jnp.float32).at[:, :nkh, :nkw, :].set(params['fc1_w'][rows])
    kp['fc1_w'] = fcw.reshape(O, L, Hd)
    kp['fc1_b'] = params['fc1_b']                            # (1, Hd)
    return kp


# ------------------------------ Pallas kernel -------------------------------

def make_kernel(cfg, Bt, n_acc, eps=1e-5):
    layers = cfg['layers']
    n_layers = len(layers)
    H0, W0 = cfg['canvas_hw']
    L = H0 * W0
    Lpad = L + 128                      # tap reads go at most (kh-1)*W0+(kw-1) lanes past L
    Cmax = max(lp['in_channels'] for lp in layers)

    def kernel(*refs):
        # refs: x, [w,b,gamma,beta]*n_layers, fc_w, fc_b   (inputs)
        #       probs, act_0..act_{n-1}                    (outputs)
        #       canvas scratch                             (scratch)
        n_in = 1 + 4 * n_layers + 2
        x_ref = refs[0]
        lrefs = [refs[1 + 4 * i: 5 + 4 * i] for i in range(n_layers)]
        fcw_ref = refs[n_in - 2]
        fcb_ref = refs[n_in - 1]
        probs_ref = refs[n_in]
        act_refs = refs[n_in + 1: n_in + 1 + n_layers]
        canvas_ref = refs[n_in + 1 + n_layers]               # (Bt, Cmax, Lpad) VMEM

        # Zero the lane-pad tail: tap reads past L only feed invalid output lanes whose
        # weights are zero, but they must be finite (0 * finite == 0 keeps the LN stats
        # mask-free).  Cheap (Bt*Cmax*128 f32) and done unconditionally so every core /
        # grid step is self-contained under "parallel" semantics.
        canvas_ref[:, :, L:Lpad] = jnp.zeros((Bt, Cmax, Lpad - L), jnp.float32)

        # Layer-0 canvas = (already padded) input image at row pitch W0, lane-dense.
        C0 = layers[0]['in_channels']
        canvas_ref[:, 0:C0, 0:L] = x_ref[...]

        normed = None
        for i, lp in enumerate(layers):
            w_ref, b_ref, g_ref, bb_ref = lrefs[i]
            nkh, nkw = lp['num_kernels_out']
            O = lp['out_channels']
            C = lp['in_channels']
            kh, kw = lp['kernel_dims']
            K = C * kh * kw
            na = min(n_acc, K)

            # --- locally-connected conv over the canvas: each tap is a static lane-offset
            #     read (vld slot) times a lane-dense weight slab.  Independent accumulator
            #     groups break the mul+add dependency chain (no f32 FMA on v5e/v6e).
            accs = [None] * na
            for c in range(C):
                for ki in range(kh):
                    for kj in range(kw):
                        k = (c * kh + ki) * kw + kj
                        s = ki * W0 + kj
                        r3 = canvas_ref[:, c:c + 1, s:s + L]          # (Bt, 1, L)
                        term = r3 * w_ref[k][None]                    # (Bt, O, L)
                        grp = k % na
                        accs[grp] = term if accs[grp] is None else accs[grp] + term
            acc = b_ref[...][None]                                    # (1, O, L) bias slab
            for t in accs:
                if t is not None:
                    acc = acc + t                                     # (Bt, O, L)

            # --- ReLU + LayerNorm over all valid (O, nkh, nkw) elements.  Invalid canvas
            #     lanes of acc are exactly 0 (zero weight/bias slabs), so the plain sums
            #     already equal the masked sums; just divide by the valid count.
            a = jnp.maximum(acc, 0.0)
            cnt = float(O * nkh * nkw)
            ssum = jnp.sum(a, axis=(1, 2), keepdims=True)             # (Bt, 1, 1)
            ssq = jnp.sum(a * a, axis=(1, 2), keepdims=True)
            mean = ssum * (1.0 / cnt)
            var = ssq * (1.0 / cnt) - mean * mean
            inv = lax.rsqrt(var + eps)
            normed = (a - mean) * inv * g_ref[...][None] + bb_ref[...][None]
            act_refs[i][...] = normed                                 # lane-dense slab out

            # --- MaxPool2d(2,2) of the flatten_into_2D map == elementwise max over the
            #     out_channels axis of the conv-layout activation (pool k == stride ==
            #     sqrt(O)).  The pooled map stays at canvas pitch W0 -> next layer's input.
            if i % 2 == 0:
                pooled = jnp.max(normed, axis=1)                      # (Bt, L)
                canvas_ref[:, 0:1, 0:L] = pooled[:, None]
            # TODO(synk): nn.Dropout2d is stochastic in training mode; implemented as
            # identity (eval-mode semantics) for determinism.

        # --- fc1 straight off the canvas-layout activation (permutation + padding are
        #     folded into fc1_w), bf16 MXU dots with f32 accumulation, then softmax with
        #     an EUP approximate reciprocal.
        O_last = layers[-1]['out_channels']
        logits = fcb_ref[...]                                         # (1, Hd)
        for o in range(O_last):
            lhs = normed[:, o, :].astype(jnp.bfloat16)                # (Bt, L)
            rhs = fcw_ref[o].astype(jnp.bfloat16)                     # (L, Hd)
            logits = logits + jnp.dot(lhs, rhs, preferred_element_type=jnp.float32)
        m = jnp.max(logits, axis=-1, keepdims=True)
        e = jnp.exp(logits - m)
        den = jnp.sum(e, axis=-1, keepdims=True)
        probs_ref[...] = (e * pl.reciprocal(den, approx=True))[:, None, :]

    return kernel


# ------------------------------ forward wrapper -----------------------------

def make_forward(cfg):
    layers = cfg['layers']
    n_layers = len(layers)
    H0, W0 = cfg['canvas_hw']
    L = H0 * W0
    Hd = cfg['fc1_hidden_dim']
    poolk = cfg['max_pool_kernel_dim']
    pools = cfg['max_pool_stride']
    Cmax = max(lp['in_channels'] for lp in layers)

    # Structural assumptions that let the whole forward live on one pitch-W0 canvas.
    for i, lp in enumerate(layers):
        assert lp['stride'] == (1, 1), "fused kernel assumes stride 1"
        r = int(math.isqrt(lp['out_channels']))
        if i % 2 == 0:
            assert poolk == pools == r, \
                "channel-max pooling trick needs pool kernel == stride == sqrt(out_channels)"
        else:
            assert i == n_layers - 1, "non-pooled layers only supported as the final layer"
        if i > 0:
            assert lp['in_channels'] == 1 and lp['padding'] == (0, 0)
            assert lp['in_dims'] == layers[i - 1]['num_kernels_out'], \
                "canvas pitch requires each layer's input grid == previous conv grid"
        assert lp['in_dims'][0] + 2 * lp['padding'][0] <= H0
        assert lp['in_dims'][1] + 2 * lp['padding'][1] <= W0
        assert (lp['kernel_dims'][0] - 1) * W0 + (lp['kernel_dims'][1] - 1) <= 128, \
            "tap lane offset must fit within the 128-lane canvas pad"
    assert n_layers % 2 == 0, "final layer must be un-pooled (odd index) for the fc path"

    @jax.jit
    def forward(x, kparams):
        B = x.shape[0]
        lp0 = layers[0]
        ph, pw = lp0['padding']
        if ph or pw:
            x = jnp.pad(x, ((0, 0), (0, 0), (ph, ph), (pw, pw)))
        xc = x.reshape(B, lp0['in_channels'], L)                      # lane-dense canvas layout

        # Batch blocking: Bt rows per grid step, always >= 2 "parallel" blocks so v7x's
        # second TensorCore has work (neutral on single-TC v5e/v6e); Bt capped to keep
        # the multi-accumulator working set comfortably inside the vreg file.
        Bt = max(1, min(4, B // 2))
        nb = pl.cdiv(B, Bt)
        Bp = nb * Bt
        if Bp != B:
            xc = jnp.pad(xc, ((0, Bp - B), (0, 0), (0, 0)))
        n_acc = 4 if Bt <= 2 else 2

        kernel = make_kernel(cfg, Bt, n_acc)

        in_specs = [pl.BlockSpec((Bt, lp0['in_channels'], L), lambda b: (b, 0, 0))]
        inputs = [xc]
        for lp, p in zip(layers, kparams['layers']):
            O = lp['out_channels']
            K = lp['in_channels'] * lp['kernel_dims'][0] * lp['kernel_dims'][1]
            in_specs += [
                pl.BlockSpec((K, O, L), lambda b: (0, 0, 0)),
                pl.BlockSpec((O, L), lambda b: (0, 0)),
                pl.BlockSpec((O, L), lambda b: (0, 0)),
                pl.BlockSpec((O, L), lambda b: (0, 0)),
            ]
            inputs += [p['w'], p['b'], p['g'], p['beta']]
        O_last = layers[-1]['out_channels']
        in_specs += [
            pl.BlockSpec((O_last, L, Hd), lambda b: (0, 0, 0)),
            pl.BlockSpec((1, Hd), lambda b: (0, 0)),
        ]
        inputs += [kparams['fc1_w'], kparams['fc1_b']]

        out_shapes = [jax.ShapeDtypeStruct((Bp, 1, Hd), jnp.float32)]
        out_specs = [pl.BlockSpec((Bt, 1, Hd), lambda b: (b, 0, 0))]
        for lp in layers:
            O = lp['out_channels']
            out_shapes.append(jax.ShapeDtypeStruct((Bp, O, L), jnp.float32))
            out_specs.append(pl.BlockSpec((Bt, O, L), lambda b: (b, 0, 0)))

        # Advisory cost estimate for XLA's scheduler around the custom call.
        conv_flops = 0
        for lp in layers:
            K = lp['in_channels'] * lp['kernel_dims'][0] * lp['kernel_dims'][1]
            nkh, nkw = lp['num_kernels_out']
            O = lp['out_channels']
            conv_flops += 2 * O * K * nkh * nkw + 10 * O * nkh * nkw
        fc_flops = 2 * cfg['fc1_in'] * Hd + 4 * Hd
        flops = int(Bp * (conv_flops + fc_flops))
        transcendentals = int(Bp * (Hd + 2 * n_layers + 1))
        param_bytes = sum(int(v.size) * 4 for p in kparams['layers'] for v in p.values())
        param_bytes += int(kparams['fc1_w'].size) * 4 + int(kparams['fc1_b'].size) * 4
        out_bytes = 4 * Bp * (Hd + sum(lp['out_channels'] * L for lp in layers))
        bytes_accessed = int(xc.size) * 4 + param_bytes + out_bytes

        outs = pl.pallas_call(
            kernel,
            out_shape=tuple(out_shapes),
            grid=(nb,),
            in_specs=in_specs,
            out_specs=tuple(out_specs),
            scratch_shapes=[pltpu.VMEM((Bt, Cmax, L + 128), jnp.float32)],
            compiler_params=pltpu.CompilerParams(dimension_semantics=("parallel",)),
            cost_estimate=pl.CostEstimate(flops=flops,
                                          transcendentals=transcendentals,
                                          bytes_accessed=bytes_accessed),
        )(*inputs)

        probs = outs[0][:B, 0, :]                                     # (B, Hd)
        acts = []
        for lp, slab in zip(layers, outs[1:]):
            nkh, nkw = lp['num_kernels_out']
            O = lp['out_channels']
            r = int(math.isqrt(O))
            t = slab[:B].reshape(B, O, H0, W0)[:, :, :nkh, :nkw]      # conv-layout activation
            t = t.reshape(B, r, r, nkh, nkw)
            t = jnp.transpose(t, (0, 3, 1, 4, 2)).reshape(B, r * nkh, r * nkw)[:, None]
            acts.append(t)                                            # (B, 1, H2, W2)
        return (probs, *acts)

    return forward


# ------------------------ pure-JAX reference (torch semantics) ----------------

def reference_forward(x, params, cfg):
    B = x.shape[0]
    acts = []
    cur = x
    for i, (lp, p) in enumerate(zip(cfg['layers'], params['layers'])):
        nkh, nkw = lp['num_kernels_out']
        O = lp['out_channels']
        kh, kw = lp['kernel_dims']
        sh, sw = lp['stride']
        ph, pw = lp['padding']
        K = lp['in_channels'] * kh * kw
        N = nkh * nkw
        xp = jnp.pad(cur, ((0, 0), (0, 0), (ph, ph), (pw, pw)))
        rr = (jnp.arange(nkh) * sh)[:, None] + jnp.arange(kh)[None, :]
        cc = (jnp.arange(nkw) * sw)[:, None] + jnp.arange(kw)[None, :]
        g = xp[:, :, rr[:, :, None, None], cc[None, None, :, :]]           # (B,C,nkh,kh,nkw,kw)
        g = jnp.transpose(g, (0, 2, 4, 1, 3, 5)).reshape(B, N, K)
        w = p['w'].reshape(N, O, K)
        out = jnp.einsum('bnk,nok->bon', g, w,
                         precision=lax.Precision.HIGHEST) + p['b'].reshape(O, N)[None]
        out = out.reshape(B, O, nkh, nkw)
        r = int(math.isqrt(O))
        x2 = jnp.transpose(out, (0, 2, 3, 1)).reshape(B, nkh, nkw, r, r)
        x2 = jnp.transpose(x2, (0, 1, 3, 2, 4)).reshape(B, r * nkh, r * nkw)[:, None]
        a = jnp.maximum(x2, 0.0)
        mean = jnp.mean(a, axis=(2, 3), keepdims=True)
        var = jnp.mean((a - mean) ** 2, axis=(2, 3), keepdims=True)
        a = (a - mean) / jnp.sqrt(var + 1e-5) * p['ln_w'][None, None] + p['ln_b'][None, None]
        acts.append(a)
        cur = a
        if i % 2 == 0:
            kp_ = cfg['max_pool_kernel_dim']
            sp_ = cfg['max_pool_stride']
            cur = lax.reduce_window(cur, -jnp.inf, lax.max,
                                    (1, 1, kp_, kp_), (1, 1, sp_, sp_), 'VALID')
    flat = cur.reshape(B, -1)
    logits = jnp.dot(flat, params['fc1_w'], precision=lax.Precision.HIGHEST) + params['fc1_b']
    probs = jax.nn.softmax(logits, axis=1)
    return probs, acts


# ----------------------------------- main ------------------------------------

if __name__ == "__main__":
    cfg = build_config()
    key = jax.random.PRNGKey(0)
    key, kx = jax.random.split(key)
    x = jax.random.normal(kx, (2, 3, 16, 16), jnp.float32)   # NCHW, like the PyTorch module

    params = init_params(key, cfg)                  # torch-layout params
    kparams = prepare_kernel_params(params, cfg)    # constant layout work, hoisted out of forward
    forward = make_forward(cfg)

    probs, act0, act1 = forward(x, kparams)
    jax.block_until_ready(probs)

    all_weights = [p['w'] for p in params['layers']]
    all_layer_dims = [tuple(lp['out_shape']) for lp in cfg['layers']]
    all_activations = [act0, act1]

    assert probs.shape == (2, cfg['fc1_hidden_dim'])
    assert all_layer_dims == [(28, 28), (24, 24)]
    assert act0.shape == (2, 1, 28, 28) and act1.shape == (2, 1, 24, 24)
    assert bool(jnp.all(jnp.isfinite(probs)))
    # softmax uses the EUP approximate reciprocal -> sums are 1 to within the approx error
    assert bool(jnp.allclose(jnp.sum(probs, axis=1), 1.0, atol=5e-3))

    # pure-JAX reference check (guards the folded layout permutations / pooling identity /
    # bf16 fc1 precision)
    ref_probs, ref_acts = reference_forward(x, params, cfg)
    assert bool(jnp.allclose(act0, ref_acts[0], atol=2e-3, rtol=2e-3))
    assert bool(jnp.allclose(act1, ref_acts[1], atol=2e-3, rtol=2e-3))
    assert bool(jnp.allclose(probs, ref_probs, atol=2e-2, rtol=2e-2))

    print("KERNEL_OK")
</pallas_src>

<mosaic_0001>
module attributes {stable_mosaic.version = 11 : i64} {
  func.func @kernel(%arg0: i32, %arg1: memref<1x3x256xf32, #tpu.memory_space<vmem>>, %arg2: memref<27x4x256xf32, #tpu.memory_space<vmem>>, %arg3: memref<4x256xf32, #tpu.memory_space<vmem>>, %arg4: memref<4x256xf32, #tpu.memory_space<vmem>>, %arg5: memref<4x256xf32, #tpu.memory_space<vmem>>, %arg6: memref<9x4x256xf32, #tpu.memory_space<vmem>>, %arg7: memref<4x256xf32, #tpu.memory_space<vmem>>, %arg8: memref<4x256xf32, #tpu.memory_space<vmem>>, %arg9: memref<4x256xf32, #tpu.memory_space<vmem>>, %arg10: memref<4x256x10xf32, #tpu.memory_space<vmem>>, %arg11: memref<1x10xf32, #tpu.memory_space<vmem>>, %arg12: memref<1x1x10xf32, #tpu.memory_space<vmem>>, %arg13: memref<1x4x256xf32, #tpu.memory_space<vmem>>, %arg14: memref<1x4x256xf32, #tpu.memory_space<vmem>>, %arg15: memref<1x3x384xf32, #tpu.memory_space<vmem>>) attributes {dimension_semantics = [#tpu.dimension_semantics<parallel>], iteration_bounds = array<i64: 2>, scalar_prefetch = 0 : i64, scratch_operands = 1 : i64, tpu.core_type = #tpu.core_type<tc>, window_params = [{transform_indices = @transform_0, window_bounds = array<i64: 1, 3, 256>}, {pipeline_mode = #tpu.pipeline_mode<synchronous>, transform_indices = @transform_1, window_bounds = array<i64: 27, 4, 256>}, {pipeline_mode = #tpu.pipeline_mode<synchronous>, transform_indices = @transform_2, window_bounds = array<i64: 4, 256>}, {pipeline_mode = #tpu.pipeline_mode<synchronous>, transform_indices = @transform_3, window_bounds = array<i64: 4, 256>}, {pipeline_mode = #tpu.pipeline_mode<synchronous>, transform_indices = @transform_4, window_bounds = array<i64: 4, 256>}, {pipeline_mode = #tpu.pipeline_mode<synchronous>, transform_indices = @transform_5, window_bounds = array<i64: 9, 4, 256>}, {pipeline_mode = #tpu.pipeline_mode<synchronous>, transform_indices = @transform_6, window_bounds = array<i64: 4, 256>}, {pipeline_mode = #tpu.pipeline_mode<synchronous>, transform_indices = @transform_7, window_bounds = array<i64: 4, 256>}, {pipeline_mode = #tpu.pipeline_mode<synchronous>, transform_indices = @transform_8, window_bounds = array<i64: 4, 256>}, {pipeline_mode = #tpu.pipeline_mode<synchronous>, transform_indices = @transform_9, window_bounds = array<i64: 4, 256, 10>}, {pipeline_mode = #tpu.pipeline_mode<synchronous>, transform_indices = @transform_10, window_bounds = array<i64: 1, 10>}, {transform_indices = @transform_11, window_bounds = array<i64: 1, 1, 10>}, {transform_indices = @transform_12, window_bounds = array<i64: 1, 4, 256>}, {transform_indices = @transform_13, window_bounds = array<i64: 1, 4, 256>}]} {
    %cst = arith.constant 0.000000e+00 : f32
    %0 = vector.broadcast %cst : f32 to vector<1x3x128xf32>
    %c0 = arith.constant 0 : index
    %c0_0 = arith.constant 0 : index
    %c256 = arith.constant 256 : index
    %1 = vector.load %arg15[%c0, %c0_0, %c256] : memref<1x3x384xf32, #tpu.memory_space<vmem>>, vector<1x3x128xf32>
    tpu.vector_store %arg15[%c0, %c0_0, %c256], %0 {strides = array<i32>} : memref<1x3x384xf32, #tpu.memory_space<vmem>>, vector<1x3x128xf32>,
    %c0_1 = arith.constant 0 : index
    %c0_2 = arith.constant 0 : index
    %c0_3 = arith.constant 0 : index
    %2 = vector.load %arg1[%c0_1, %c0_2, %c0_3] : memref<1x3x256xf32, #tpu.memory_space<vmem>>, vector<1x3x256xf32>
    %c0_4 = arith.constant 0 : index
    %c0_5 = arith.constant 0 : index
    %c0_6 = arith.constant 0 : index
    %3 = vector.load %arg15[%c0_4, %c0_5, %c0_6] : memref<1x3x384xf32, #tpu.memory_space<vmem>>, vector<1x3x256xf32>
    tpu.vector_store %arg15[%c0_4, %c0_5, %c0_6], %2 {strides = array<i32>} : memref<1x3x384xf32, #tpu.memory_space<vmem>>, vector<1x3x256xf32>,
    %c0_7 = arith.constant 0 : index
    %c0_8 = arith.constant 0 : index
    %c0_9 = arith.constant 0 : index
    %4 = vector.load %arg15[%c0_7, %c0_8, %c0_9] : memref<1x3x384xf32, #tpu.memory_space<vmem>>, vector<1x1x256xf32>
    %c0_10 = arith.constant 0 : index
    %c0_11 = arith.constant 0 : index
    %c0_12 = arith.constant 0 : index
    %5 = vector.load %arg2[%c0_10, %c0_11, %c0_12] : memref<27x4x256xf32, #tpu.memory_space<vmem>>, vector<1x4x256xf32>
    %6 = vector.shape_cast %5 : vector<1x4x256xf32> to vector<4x256xf32>
    %7 = vector.shape_cast %6 : vector<4x256xf32> to vector<1x4x256xf32>
    %8 = vector.broadcast %4 : vector<1x1x256xf32> to vector<1x4x256xf32>
    %9 = arith.mulf %8, %7 : vector<1x4x256xf32>
    %c0_13 = arith.constant 0 : index
    %c0_14 = arith.constant 0 : index
    %c1 = arith.constant 1 : index
    %10 = vector.load %arg15[%c0_13, %c0_14, %c1] : memref<1x3x384xf32, #tpu.memory_space<vmem>>, vector<1x1x256xf32>
    %c1_15 = arith.constant 1 : index
    %c0_16 = arith.constant 0 : index
    %c0_17 = arith.constant 0 : index
    %11 = vector.load %arg2[%c1_15, %c0_16, %c0_17] : memref<27x4x256xf32, #tpu.memory_space<vmem>>, vector<1x4x256xf32>
    %12 = vector.shape_cast %11 : vector<1x4x256xf32> to vector<4x256xf32>
    %13 = vector.shape_cast %12 : vector<4x256xf32> to vector<1x4x256xf32>
    %14 = vector.broadcast %10 : vector<1x1x256xf32> to vector<1x4x256xf32>
    %15 = arith.mulf %14, %13 : vector<1x4x256xf32>
    %c0_18 = arith.constant 0 : index
    %c0_19 = arith.constant 0 : index
    %c2 = arith.constant 2 : index
    %16 = vector.load %arg15[%c0_18, %c0_19, %c2] : memref<1x3x384xf32, #tpu.memory_space<vmem>>, vector<1x1x256xf32>
    %c2_20 = arith.constant 2 : index
    %c0_21 = arith.constant 0 : index
    %c0_22 = arith.constant 0 : index
    %17 = vector.load %arg2[%c2_20, %c0_21, %c0_22] : memref<27x4x256xf32, #tpu.memory_space<vmem>>, vector<1x4x256xf32>
    %18 = vector.shape_cast %17 : vector<1x4x256xf32> to vector<4x256xf32>
    %19 = vector.shape_cast %18 : vector<4x256xf32> to vector<1x4x256xf32>
    %20 = vector.broadcast %16 : vector<1x1x256xf32> to vector<1x4x256xf32>
    %21 = arith.mulf %20, %19 : vector<1x4x256xf32>
    %c0_23 = arith.constant 0 : index
    %c0_24 = arith.constant 0 : index
    %c16 = arith.constant 16 : index
    %22 = vector.load %arg15[%c0_23, %c0_24, %c16] : memref<1x3x384xf32, #tpu.memory_space<vmem>>, vector<1x1x256xf32>
    %c3 = arith.constant 3 : index
    %c0_25 = arith.constant 0 : index
    %c0_26 = arith.constant 0 : index
    %23 = vector.load %arg2[%c3, %c0_25, %c0_26] : memref<27x4x256xf32, #tpu.memory_space<vmem>>, vector<1x4x256xf32>
    %24 = vector.shape_cast %23 : vector<1x4x256xf32> to vector<4x256xf32>
    %25 = vector.shape_cast %24 : vector<4x256xf32> to vector<1x4x256xf32>
    %26 = vector.broadcast %22 : vector<1x1x256xf32> to vector<1x4x256xf32>
    %27 = arith.mulf %26, %25 : vector<1x4x256xf32>
    %c0_27 = arith.constant 0 : index
    %c0_28 = arith.constant 0 : index
    %c17 = arith.constant 17 : index
    %28 = vector.load %arg15[%c0_27, %c0_28, %c17] : memref<1x3x384xf32, #tpu.memory_space<vmem>>, vector<1x1x256xf32>
    %c4 = arith.constant 4 : index
    %c0_29 = arith.constant 0 : index
    %c0_30 = arith.constant 0 : index
    %29 = vector.load %arg2[%c4, %c0_29, %c0_30] : memref<27x4x256xf32, #tpu.memory_space<vmem>>, vector<1x4x256xf32>
    %30 = vector.shape_cast %29 : vector<1x4x256xf32> to vector<4x256xf32>
    %31 = vector.shape_cast %30 : vector<4x256xf32> to vector<1x4x256xf32>
    %32 = vector.broadcast %28 : vector<1x1x256xf32> to vector<1x4x256xf32>
    %33 = arith.mulf %32, %31 : vector<1x4x256xf32>
    %34 = arith.addf %9, %33 : vector<1x4x256xf32>
    %c0_31 = arith.constant 0 : index
    %c0_32 = arith.constant 0 : index
    %c18 = arith.constant 18 : index
    %35 = vector.load %arg15[%c0_31, %c0_32, %c18] : memref<1x3x384xf32, #tpu.memory_space<vmem>>, vector<1x1x256xf32>
    %c5 = arith.constant 5 : index
    %c0_33 = arith.constant 0 : index
    %c0_34 = arith.constant 0 : index
    %36 = vector.load %arg2[%c5, %c0_33, %c0_34] : memref<27x4x256xf32, #tpu.memory_space<vmem>>, vector<1x4x256xf32>
    %37 = vector.shape_cast %36 : vector<1x4x256xf32> to vector<4x256xf32>
    %38 = vector.shape_cast %37 : vector<4x256xf32> to vector<1x4x256xf32>
    %39 = vector.broadcast %35 : vector<1x1x256xf32> to vector<1x4x256xf32>
    %40 = arith.mulf %39, %38 : vector<1x4x256xf32>
    %41 = arith.addf %15, %40 : vector<1x4x256xf32>
    %c0_35 = arith.constant 0 : index
    %c0_36 = arith.constant 0 : index
    %c32 = arith.constant 32 : index
    %42 = vector.load %arg15[%c0_35, %c0_36, %c32] : memref<1x3x384xf32, #tpu.memory_space<vmem>>, vector<1x1x256xf32>
    %c6 = arith.constant 6 : index
    %c0_37 = arith.constant 0 : index
    %c0_38 = arith.constant 0 : index
    %43 = vector.load %arg2[%c6, %c0_37, %c0_38] : memref<27x4x256xf32, #tpu.memory_space<vmem>>, vector<1x4x256xf32>
    %44 = vector.shape_cast %43 : vector<1x4x256xf32> to vector<4x256xf32>
    %45 = vector.shape_cast %44 : vector<4x256xf32> to vector<1x4x256xf32>
    %46 = vector.broadcast %42 : vector<1x1x256xf32> to vector<1x4x256xf32>
    %47 = arith.mulf %46, %45 : vector<1x4x256xf32>
    %48 = arith.addf %21, %47 : vector<1x4x256xf32>
    %c0_39 = arith.constant 0 : index
    %c0_40 = arith.constant 0 : index
    %c33 = arith.constant 33 : index
    %49 = vector.load %arg15[%c0_39, %c0_40, %c33] : memref<1x3x384xf32, #tpu.memory_space<vmem>>, vector<1x1x256xf32>
    %c7 = arith.constant 7 : index
    %c0_41 = arith.constant 0 : index
    %c0_42 = arith.constant 0 : index
    %50 = vector.load %arg2[%c7, %c0_41, %c0_42] : memref<27x4x256xf32, #tpu.memory_space<vmem>>, vector<1x4x256xf32>
    %51 = vector.shape_cast %50 : vector<1x4x256xf32> to vector<4x256xf32>
    %52 = vector.shape_cast %51 : vector<4x256xf32> to vector<1x4x256xf32>
    %53 = vector.broadcast %49 : vector<1x1x256xf32> to vector<1x4x256xf32>
    %54 = arith.mulf %53, %52 : vector<1x4x256xf32>
    %55 = arith.addf %27, %54 : vector<1x4x256xf32>
    %c0_43 = arith.constant 0 : index
    %c0_44 = arith.constant 0 : index
    %c34 = arith.constant 34 : index
    %56 = vector.load %arg15[%c0_43, %c0_44, %c34] : memref<1x3x384xf32, #tpu.memory_space<vmem>>, vector<1x1x256xf32>
    %c8 = arith.constant 8 : index
    %c0_45 = arith.constant 0 : index
    %c0_46 = arith.constant 0 : index
    %57 = vector.load %arg2[%c8, %c0_45, %c0_46] : memref<27x4x256xf32, #tpu.memory_space<vmem>>, vector<1x4x256xf32>
    %58 = vector.shape_cast %57 : vector<1x4x256xf32> to vector<4x256xf32>
    %59 = vector.shape_cast %58 : vector<4x256xf32> to vector<1x4x256xf32>
    %60 = vector.broadcast %56 : vector<1x1x256xf32> to vector<1x4x256xf32>
    %61 = arith.mulf %60, %59 : vector<1x4x256xf32>
    %62 = arith.addf %34, %61 : vector<1x4x256xf32>
    %c0_47 = arith.constant 0 : index
    %c1_48 = arith.constant 1 : index
    %c0_49 = arith.constant 0 : index
    %63 = vector.load %arg15[%c0_47, %c1_48, %c0_49] : memref<1x3x384xf32, #tpu.memory_space<vmem>>, vector<1x1x256xf32>
    %c9 = arith.constant 9 : index
    %c0_50 = arith.constant 0 : index
    %c0_51 = arith.constant 0 : index
    %64 = vector.load %arg2[%c9, %c0_50, %c0_51] : memref<27x4x256xf32, #tpu.memory_space<vmem>>, vector<1x4x256xf32>
    %65 = vector.shape_cast %64 : vector<1x4x256xf32> to vector<4x256xf32>
    %66 = vector.shape_cast %65 : vector<4x256xf32> to vector<1x4x256xf32>
    %67 = vector.broadcast %63 : vector<1x1x256xf32> to vector<1x4x256xf32>
    %68 = arith.mulf %67, %66 : vector<1x4x256xf32>
    %69 = arith.addf %41, %68 : vector<1x4x256xf32>
    %c0_52 = arith.constant 0 : index
    %c1_53 = arith.constant 1 : index
    %c1_54 = arith.constant 1 : index
    %70 = vector.load %arg15[%c0_52, %c1_53, %c1_54] : memref<1x3x384xf32, #tpu.memory_space<vmem>>, vector<1x1x256xf32>
    %c10 = arith.constant 10 : index
    %c0_55 = arith.constant 0 : index
    %c0_56 = arith.constant 0 : index
    %71 = vector.load %arg2[%c10, %c0_55, %c0_56] : memref<27x4x256xf32, #tpu.memory_space<vmem>>, vector<1x4x256xf32>
    %72 = vector.shape_cast %71 : vector<1x4x256xf32> to vector<4x256xf32>
    %73 = vector.shape_cast %72 : vector<4x256xf32> to vector<1x4x256xf32>
    %74 = vector.broadcast %70 : vector<1x1x256xf32> to vector<1x4x256xf32>
    %75 = arith.mulf %74, %73 : vector<1x4x256xf32>
    %76 = arith.addf %48, %75 : vector<1x4x256xf32>
    %c0_57 = arith.constant 0 : index
    %c1_58 = arith.constant 1 : index
    %c2_59 = arith.constant 2 : index
    %77 = vector.load %arg15[%c0_57, %c1_58, %c2_59] : memref<1x3x384xf32, #tpu.memory_space<vmem>>, vector<1x1x256xf32>
    %c11 = arith.constant 11 : index
    %c0_60 = arith.constant 0 : index
    %c0_61 = arith.constant 0 : index
    %78 = vector.load %arg2[%c11, %c0_60, %c0_61] : memref<27x4x256xf32, #tpu.memory_space<vmem>>, vector<1x4x256xf32>
    %79 = vector.shape_cast %78 : vector<1x4x256xf32> to vector<4x256xf32>
    %80 = vector.shape_cast %79 : vector<4x256xf32> to vector<1x4x256xf32>
    %81 = vector.broadcast %77 : vector<1x1x256xf32> to vector<1x4x256xf32>
    %82 = arith.mulf %81, %80 : vector<1x4x256xf32>
    %83 = arith.addf %55, %82 : vector<1x4x256xf32>
    %c0_62 = arith.constant 0 : index
    %c1_63 = arith.constant 1 : index
    %c16_64 = arith.constant 16 : index
    %84 = vector.load %arg15[%c0_62, %c1_63, %c16_64] : memref<1x3x384xf32, #tpu.memory_space<vmem>>, vector<1x1x256xf32>
    %c12 = arith.constant 12 : index
    %c0_65 = arith.constant 0 : index
    %c0_66 = arith.constant 0 : index
    %85 = vector.load %arg2[%c12, %c0_65, %c0_66] : memref<27x4x256xf32, #tpu.memory_space<vmem>>, vector<1x4x256xf32>
    %86 = vector.shape_cast %85 : vector<1x4x256xf32> to vector<4x256xf32>
    %87 = vector.shape_cast %86 : vector<4x256xf32> to vector<1x4x256xf32>
    %88 = vector.broadcast %84 : vector<1x1x256xf32> to vector<1x4x256xf32>
    %89 = arith.mulf %88, %87 : vector<1x4x256xf32>
    %90 = arith.addf %62, %89 : vector<1x4x256xf32>
    %c0_67 = arith.constant 0 : index
    %c1_68 = arith.constant 1 : index
    %c17_69 = arith.constant 17 : index
    %91 = vector.load %arg15[%c0_67, %c1_68, %c17_69] : memref<1x3x384xf32, #tpu.memory_space<vmem>>, vector<1x1x256xf32>
    %c13 = arith.constant 13 : index
    %c0_70 = arith.constant 0 : index
    %c0_71 = arith.constant 0 : index
    %92 = vector.load %arg2[%c13, %c0_70, %c0_71] : memref<27x4x256xf32, #tpu.memory_space<vmem>>, vector<1x4x256xf32>
    %93 = vector.shape_cast %92 : vector<1x4x256xf32> to vector<4x256xf32>
    %94 = vector.shape_cast %93 : vector<4x256xf32> to vector<1x4x256xf32>
    %95 = vector.broadcast %91 : vector<1x1x256xf32> to vector<1x4x256xf32>
    %96 = arith.mulf %95, %94 : vector<1x4x256xf32>
    %97 = arith.addf %69, %96 : vector<1x4x256xf32>
    %c0_72 = arith.constant 0 : index
    %c1_73 = arith.constant 1 : index
    %c18_74 = arith.constant 18 : index
    %98 = vector.load %arg15[%c0_72, %c1_73, %c18_74] : memref<1x3x384xf32, #tpu.memory_space<vmem>>, vector<1x1x256xf32>
    %c14 = arith.constant 14 : index
    %c0_75 = arith.constant 0 : index
    %c0_76 = arith.constant 0 : index
    %99 = vector.load %arg2[%c14, %c0_75, %c0_76] : memref<27x4x256xf32, #tpu.memory_space<vmem>>, vector<1x4x256xf32>
    %100 = vector.shape_cast %99 : vector<1x4x256xf32> to vector<4x256xf32>
    %101 = vector.shape_cast %100 : vector<4x256xf32> to vector<1x4x256xf32>
    %102 = vector.broadcast %98 : vector<1x1x256xf32> to vector<1x4x256xf32>
    %103 = arith.mulf %102, %101 : vector<1x4x256xf32>
    %104 = arith.addf %76, %103 : vector<1x4x256xf32>
    %c0_77 = arith.constant 0 : index
    %c1_78 = arith.constant 1 : index
    %c32_79 = arith.constant 32 : index
    %105 = vector.load %arg15[%c0_77, %c1_78, %c32_79] : memref<1x3x384xf32, #tpu.memory_space<vmem>>, vector<1x1x256xf32>
    %c15 = arith.constant 15 : index
    %c0_80 = arith.constant 0 : index
    %c0_81 = arith.constant 0 : index
    %106 = vector.load %arg2[%c15, %c0_80, %c0_81] : memref<27x4x256xf32, #tpu.memory_space<vmem>>, vector<1x4x256xf32>
    %107 = vector.shape_cast %106 : vector<1x4x256xf32> to vector<4x256xf32>
    %108 = vector.shape_cast %107 : vector<4x256xf32> to vector<1x4x256xf32>
    %109 = vector.broadcast %105 : vector<1x1x256xf32> to vector<1x4x256xf32>
    %110 = arith.mulf %109, %108 : vector<1x4x256xf32>
    %111 = arith.addf %83, %110 : vector<1x4x256xf32>
    %c0_82 = arith.constant 0 : index
    %c1_83 = arith.constant 1 : index
    %c33_84 = arith.constant 33 : index
    %112 = vector.load %arg15[%c0_82, %c1_83, %c33_84] : memref<1x3x384xf32, #tpu.memory_space<vmem>>, vector<1x1x256xf32>
    %c16_85 = arith.constant 16 : index
    %c0_86 = arith.constant 0 : index
    %c0_87 = arith.constant 0 : index
    %113 = vector.load %arg2[%c16_85, %c0_86, %c0_87] : memref<27x4x256xf32, #tpu.memory_space<vmem>>, vector<1x4x256xf32>
    %114 = vector.shape_cast %113 : vector<1x4x256xf32> to vector<4x256xf32>
    %115 = vector.shape_cast %114 : vector<4x256xf32> to vector<1x4x256xf32>
    %116 = vector.broadcast %112 : vector<1x1x256xf32> to vector<1x4x256xf32>
    %117 = arith.mulf %116, %115 : vector<1x4x256xf32>
    %118 = arith.addf %90, %117 : vector<1x4x256xf32>
    %c0_88 = arith.constant 0 : index
    %c1_89 = arith.constant 1 : index
    %c34_90 = arith.constant 34 : index
    %119 = vector.load %arg15[%c0_88, %c1_89, %c34_90] : memref<1x3x384xf32, #tpu.memory_space<vmem>>, vector<1x1x256xf32>
    %c17_91 = arith.constant 17 : index
    %c0_92 = arith.constant 0 : index
    %c0_93 = arith.constant 0 : index
    %120 = vector.load %arg2[%c17_91, %c0_92, %c0_93] : memref<27x4x256xf32, #tpu.memory_space<vmem>>, vector<1x4x256xf32>
    %121 = vector.shape_cast %120 : vector<1x4x256xf32> to vector<4x256xf32>
    %122 = vector.shape_cast %121 : vector<4x256xf32> to vector<1x4x256xf32>
    %123 = vector.broadcast %119 : vector<1x1x256xf32> to vector<1x4x256xf32>
    %124 = arith.mulf %123, %122 : vector<1x4x256xf32>
    %125 = arith.addf %97, %124 : vector<1x4x256xf32>
    %c0_94 = arith.constant 0 : index
    %c2_95 = arith.constant 2 : index
    %c0_96 = arith.constant 0 : index
    %126 = vector.load %arg15[%c0_94, %c2_95, %c0_96] : memref<1x3x384xf32, #tpu.memory_space<vmem>>, vector<1x1x256xf32>
    %c18_97 = arith.constant 18 : index
    %c0_98 = arith.constant 0 : index
    %c0_99 = arith.constant 0 : index
    %127 = vector.load %arg2[%c18_97, %c0_98, %c0_99] : memref<27x4x256xf32, #tpu.memory_space<vmem>>, vector<1x4x256xf32>
    %128 = vector.shape_cast %127 : vector<1x4x256xf32> to vector<4x256xf32>
    %129 = vector.shape_cast %128 : vector<4x256xf32> to vector<1x4x256xf32>
    %130 = vector.broadcast %126 : vector<1x1x256xf32> to vector<1x4x256xf32>
    %131 = arith.mulf %130, %129 : vector<1x4x256xf32>
    %132 = arith.addf %104, %131 : vector<1x4x256xf32>
    %c0_100 = arith.constant 0 : index
    %c2_101 = arith.constant 2 : index
    %c1_102 = arith.constant 1 : index
    %133 = vector.load %arg15[%c0_100, %c2_101, %c1_102] : memref<1x3x384xf32, #tpu.memory_space<vmem>>, vector<1x1x256xf32>
    %c19 = arith.constant 19 : index
    %c0_103 = arith.constant 0 : index
    %c0_104 = arith.constant 0 : index
    %134 = vector.load %arg2[%c19, %c0_103, %c0_104] : memref<27x4x256xf32, #tpu.memory_space<vmem>>, vector<1x4x256xf32>
    %135 = vector.shape_cast %134 : vector<1x4x256xf32> to vector<4x256xf32>
    %136 = vector.shape_cast %135 : vector<4x256xf32> to vector<1x4x256xf32>
    %137 = vector.broadcast %133 : vector<1x1x256xf32> to vector<1x4x256xf32>
    %138 = arith.mulf %137, %136 : vector<1x4x256xf32>
    %139 = arith.addf %111, %138 : vector<1x4x256xf32>
    %c0_105 = arith.constant 0 : index
    %c2_106 = arith.constant 2 : index
    %c2_107 = arith.constant 2 : index
    %140 = vector.load %arg15[%c0_105, %c2_106, %c2_107] : memref<1x3x384xf32, #tpu.memory_space<vmem>>, vector<1x1x256xf32>
    %c20 = arith.constant 20 : index
    %c0_108 = arith.constant 0 : index
    %c0_109 = arith.constant 0 : index
    %141 = vector.load %arg2[%c20, %c0_108, %c0_109] : memref<27x4x256xf32, #tpu.memory_space<vmem>>, vector<1x4x256xf32>
    %142 = vector.shape_cast %141 : vector<1x4x256xf32> to vector<4x256xf32>
    %143 = vector.shape_cast %142 : vector<4x256xf32> to vector<1x4x256xf32>
    %144 = vector.broadcast %140 : vector<1x1x256xf32> to vector<1x4x256xf32>
    %145 = arith.mulf %144, %143 : vector<1x4x256xf32>
    %146 = arith.addf %118, %145 : vector<1x4x256xf32>
    %c0_110 = arith.constant 0 : index
    %c2_111 = arith.constant 2 : index
    %c16_112 = arith.constant 16 : index
    %147 = vector.load %arg15[%c0_110, %c2_111, %c16_112] : memref<1x3x384xf32, #tpu.memory_space<vmem>>, vector<1x1x256xf32>
    %c21 = arith.constant 21 : index
    %c0_113 = arith.constant 0 : index
    %c0_114 = arith.constant 0 : index
    %148 = vector.load %arg2[%c21, %c0_113, %c0_114] : memref<27x4x256xf32, #tpu.memory_space<vmem>>, vector<1x4x256xf32>
    %149 = vector.shape_cast %148 : vector<1x4x256xf32> to vector<4x256xf32>
    %150 = vector.shape_cast %149 : vector<4x256xf32> to vector<1x4x256xf32>
    %151 = vector.broadcast %147 : vector<1x1x256xf32> to vector<1x4x256xf32>
    %152 = arith.mulf %151, %150 : vector<1x4x256xf32>
    %153 = arith.addf %125, %152 : vector<1x4x256xf32>
    %c0_115 = arith.constant 0 : index
    %c2_116 = arith.constant 2 : index
    %c17_117 = arith.constant 17 : index
    %154 = vector.load %arg15[%c0_115, %c2_116, %c17_117] : memref<1x3x384xf32, #tpu.memory_space<vmem>>, vector<1x1x256xf32>
    %c22 = arith.constant 22 : index
    %c0_118 = arith.constant 0 : index
    %c0_119 = arith.constant 0 : index
    %155 = vector.load %arg2[%c22, %c0_118, %c0_119] : memref<27x4x256xf32, #tpu.memory_space<vmem>>, vector<1x4x256xf32>
    %156 = vector.shape_cast %155 : vector<1x4x256xf32> to vector<4x256xf32>
    %157 = vector.shape_cast %156 : vector<4x256xf32> to vector<1x4x256xf32>
    %158 = vector.broadcast %154 : vector<1x1x256xf32> to vector<1x4x256xf32>
    %159 = arith.mulf %158, %157 : vector<1x4x256xf32>
    %160 = arith.addf %132, %159 : vector<1x4x256xf32>
    %c0_120 = arith.constant 0 : index
    %c2_121 = arith.constant 2 : index
    %c18_122 = arith.constant 18 : index
    %161 = vector.load %arg15[%c0_120, %c2_121, %c18_122] : memref<1x3x384xf32, #tpu.memory_space<vmem>>, vector<1x1x256xf32>
    %c23 = arith.constant 23 : index
    %c0_123 = arith.constant 0 : index
    %c0_124 = arith.constant 0 : index
    %162 = vector.load %arg2[%c23, %c0_123, %c0_124] : memref<27x4x256xf32, #tpu.memory_space<vmem>>, vector<1x4x256xf32>
    %163 = vector.shape_cast %162 : vector<1x4x256xf32> to vector<4x256xf32>
    %164 = vector.shape_cast %163 : vector<4x256xf32> to vector<1x4x256xf32>
    %165 = vector.broadcast %161 : vector<1x1x256xf32> to vector<1x4x256xf32>
    %166 = arith.mulf %165, %164 : vector<1x4x256xf32>
    %167 = arith.addf %139, %166 : vector<1x4x256xf32>
    %c0_125 = arith.constant 0 : index
    %c2_126 = arith.constant 2 : index
    %c32_127 = arith.constant 32 : index
    %168 = vector.load %arg15[%c0_125, %c2_126, %c32_127] : memref<1x3x384xf32, #tpu.memory_space<vmem>>, vector<1x1x256xf32>
    %c24 = arith.constant 24 : index
    %c0_128 = arith.constant 0 : index
    %c0_129 = arith.constant 0 : index
    %169 = vector.load %arg2[%c24, %c0_128, %c0_129] : memref<27x4x256xf32, #tpu.memory_space<vmem>>, vector<1x4x256xf32>
    %170 = vector.shape_cast %169 : vector<1x4x256xf32> to vector<4x256xf32>
    %171 = vector.shape_cast %170 : vector<4x256xf32> to vector<1x4x256xf32>
    %172 = vector.broadcast %168 : vector<1x1x256xf32> to vector<1x4x256xf32>
    %173 = arith.mulf %172, %171 : vector<1x4x256xf32>
    %174 = arith.addf %146, %173 : vector<1x4x256xf32>
    %c0_130 = arith.constant 0 : index
    %c2_131 = arith.constant 2 : index
    %c33_132 = arith.constant 33 : index
    %175 = vector.load %arg15[%c0_130, %c2_131, %c33_132] : memref<1x3x384xf32, #tpu.memory_space<vmem>>, vector<1x1x256xf32>
    %c25 = arith.constant 25 : index
    %c0_133 = arith.constant 0 : index
    %c0_134 = arith.constant 0 : index
    %176 = vector.load %arg2[%c25, %c0_133, %c0_134] : memref<27x4x256xf32, #tpu.memory_space<vmem>>, vector<1x4x256xf32>
    %177 = vector.shape_cast %176 : vector<1x4x256xf32> to vector<4x256xf32>
    %178 = vector.shape_cast %177 : vector<4x256xf32> to vector<1x4x256xf32>
    %179 = vector.broadcast %175 : vector<1x1x256xf32> to vector<1x4x256xf32>
    %180 = arith.mulf %179, %178 : vector<1x4x256xf32>
    %181 = arith.addf %153, %180 : vector<1x4x256xf32>
    %c0_135 = arith.constant 0 : index
    %c2_136 = arith.constant 2 : index
    %c34_137 = arith.constant 34 : index
    %182 = vector.load %arg15[%c0_135, %c2_136, %c34_137] : memref<1x3x384xf32, #tpu.memory_space<vmem>>, vector<1x1x256xf32>
    %c26 = arith.constant 26 : index
    %c0_138 = arith.constant 0 : index
    %c0_139 = arith.constant 0 : index
    %183 = vector.load %arg2[%c26, %c0_138, %c0_139] : memref<27x4x256xf32, #tpu.memory_space<vmem>>, vector<1x4x256xf32>
    %184 = vector.shape_cast %183 : vector<1x4x256xf32> to vector<4x256xf32>
    %185 = vector.shape_cast %184 : vector<4x256xf32> to vector<1x4x256xf32>
    %186 = vector.broadcast %182 : vector<1x1x256xf32> to vector<1x4x256xf32>
    %187 = arith.mulf %186, %185 : vector<1x4x256xf32>
    %188 = arith.addf %160, %187 : vector<1x4x256xf32>
    %c0_140 = arith.constant 0 : index
    %c0_141 = arith.constant 0 : index
    %189 = vector.load %arg3[%c0_140, %c0_141] : memref<4x256xf32, #tpu.memory_space<vmem>>, vector<4x256xf32>
    %190 = vector.shape_cast %189 : vector<4x256xf32> to vector<1x4x256xf32>
    %191 = arith.addf %190, %174 : vector<1x4x256xf32>
    %192 = arith.addf %191, %181 : vector<1x4x256xf32>
    %193 = arith.addf %192, %188 : vector<1x4x256xf32>
    %194 = arith.addf %193, %167 : vector<1x4x256xf32>
    %cst_142 = arith.constant 0.000000e+00 : f32
    %195 = vector.broadcast %cst_142 : f32 to vector<1x4x256xf32>
    %196 = arith.maximumf %194, %195 : vector<1x4x256xf32>
    %cst_143 = arith.constant dense<0.000000e+00> : vector<1xf32>
    %197 = vector.multi_reduction <add>, %196, %cst_143 [1, 2] : vector<1x4x256xf32> to vector<1xf32>
    %198 = vector.shape_cast %197 : vector<1xf32> to vector<1x1x1xf32>
    %199 = arith.mulf %196, %196 : vector<1x4x256xf32>
    %cst_144 = arith.constant dense<0.000000e+00> : vector<1xf32>
    %200 = vector.multi_reduction <add>, %199, %cst_144 [1, 2] : vector<1x4x256xf32> to vector<1xf32>
    %201 = vector.shape_cast %200 : vector<1xf32> to vector<1x1x1xf32>
    %cst_145 = arith.constant 0.00127551018 : f32
    %202 = vector.broadcast %cst_145 : f32 to vector<1x1x1xf32>
    %203 = arith.mulf %198, %202 : vector<1x1x1xf32>
    %cst_146 = arith.constant 0.00127551018 : f32
    %204 = vector.broadcast %cst_146 : f32 to vector<1x1x1xf32>
    %205 = arith.mulf %201, %204 : vector<1x1x1xf32>
    %206 = arith.mulf %203, %203 : vector<1x1x1xf32>
    %207 = arith.subf %205, %206 : vector<1x1x1xf32>
    %cst_147 = arith.constant 9.99999974E-6 : f32
    %208 = vector.broadcast %cst_147 : f32 to vector<1x1x1xf32>
    %209 = arith.addf %207, %208 : vector<1x1x1xf32>
    %210 = math.rsqrt %209 : vector<1x1x1xf32>
    %211 = vector.broadcast %203 : vector<1x1x1xf32> to vector<1x4x256xf32>
    %212 = arith.subf %196, %211 : vector<1x4x256xf32>
    %213 = vector.broadcast %210 : vector<1x1x1xf32> to vector<1x4x256xf32>
    %214 = arith.mulf %212, %213 : vector<1x4x256xf32>
    %c0_148 = arith.constant 0 : index
    %c0_149 = arith.constant 0 : index
    %215 = vector.load %arg4[%c0_148, %c0_149] : memref<4x256xf32, #tpu.memory_space<vmem>>, vector<4x256xf32>
    %216 = vector.shape_cast %215 : vector<4x256xf32> to vector<1x4x256xf32>
    %217 = arith.mulf %214, %216 : vector<1x4x256xf32>
    %c0_150 = arith.constant 0 : index
    %c0_151 = arith.constant 0 : index
    %218 = vector.load %arg5[%c0_150, %c0_151] : memref<4x256xf32, #tpu.memory_space<vmem>>, vector<4x256xf32>
    %219 = vector.shape_cast %218 : vector<4x256xf32> to vector<1x4x256xf32>
    %220 = arith.addf %217, %219 : vector<1x4x256xf32>
    %c0_152 = arith.constant 0 : index
    %c0_153 = arith.constant 0 : index
    %c0_154 = arith.constant 0 : index
    %221 = vector.load %arg13[%c0_152, %c0_153, %c0_154] : memref<1x4x256xf32, #tpu.memory_space<vmem>>, vector<1x4x256xf32>
    tpu.vector_store %arg13[%c0_152, %c0_153, %c0_154], %220 {strides = array<i32>} : memref<1x4x256xf32, #tpu.memory_space<vmem>>, vector<1x4x256xf32>,
    %cst_155 = arith.constant dense<0xFF800000> : vector<1x256xf32>
    %222 = vector.multi_reduction <maximumf>, %220, %cst_155 [1] : vector<1x4x256xf32> to vector<1x256xf32>
    %223 = vector.shape_cast %222 : vector<1x256xf32> to vector<1x1x256xf32>
    %c0_156 = arith.constant 0 : index
    %c0_157 = arith.constant 0 : index
    %c0_158 = arith.constant 0 : index
    %224 = vector.load %arg15[%c0_156, %c0_157, %c0_158] : memref<1x3x384xf32, #tpu.memory_space<vmem>>, vector<1x1x256xf32>
    tpu.vector_store %arg15[%c0_156, %c0_157, %c0_158], %223 {strides = array<i32>} : memref<1x3x384xf32, #tpu.memory_space<vmem>>, vector<1x1x256xf32>,
    %c0_159 = arith.constant 0 : index
    %c0_160 = arith.constant 0 : index
    %c0_161 = arith.constant 0 : index
    %225 = vector.load %arg15[%c0_159, %c0_160, %c0_161] : memref<1x3x384xf32, #tpu.memory_space<vmem>>, vector<1x1x256xf32>
    %c0_162 = arith.constant 0 : index
    %c0_163 = arith.constant 0 : index
    %c0_164 = arith.constant 0 : index
    %226 = vector.load %arg6[%c0_162, %c0_163, %c0_164] : memref<9x4x256xf32, #tpu.memory_space<vmem>>, vector<1x4x256xf32>
    %227 = vector.shape_cast %226 : vector<1x4x256xf32> to vector<4x256xf32>
    %228 = vector.shape_cast %227 : vector<4x256xf32> to vector<1x4x256xf32>
    %229 = vector.broadcast %225 : vector<1x1x256xf32> to vector<1x4x256xf32>
    %230 = arith.mulf %229, %228 : vector<1x4x256xf32>
    %c0_165 = arith.constant 0 : index
    %c0_166 = arith.constant 0 : index
    %c1_167 = arith.constant 1 : index
    %231 = vector.load %arg15[%c0_165, %c0_166, %c1_167] : memref<1x3x384xf32, #tpu.memory_space<vmem>>, vector<1x1x256xf32>
    %c1_168 = arith.constant 1 : index
    %c0_169 = arith.constant 0 : index
    %c0_170 = arith.constant 0 : index
    %232 = vector.load %arg6[%c1_168, %c0_169, %c0_170] : memref<9x4x256xf32, #tpu.memory_space<vmem>>, vector<1x4x256xf32>
    %233 = vector.shape_cast %232 : vector<1x4x256xf32> to vector<4x256xf32>
    %234 = vector.shape_cast %233 : vector<4x256xf32> to vector<1x4x256xf32>
    %235 = vector.broadcast %231 : vector<1x1x256xf32> to vector<1x4x256xf32>
    %236 = arith.mulf %235, %234 : vector<1x4x256xf32>
    %c0_171 = arith.constant 0 : index
    %c0_172 = arith.constant 0 : index
    %c2_173 = arith.constant 2 : index
    %237 = vector.load %arg15[%c0_171, %c0_172, %c2_173] : memref<1x3x384xf32, #tpu.memory_space<vmem>>, vector<1x1x256xf32>
    %c2_174 = arith.constant 2 : index
    %c0_175 = arith.constant 0 : index
    %c0_176 = arith.constant 0 : index
    %238 = vector.load %arg6[%c2_174, %c0_175, %c0_176] : memref<9x4x256xf32, #tpu.memory_space<vmem>>, vector<1x4x256xf32>
    %239 = vector.shape_cast %238 : vector<1x4x256xf32> to vector<4x256xf32>
    %240 = vector.shape_cast %239 : vector<4x256xf32> to vector<1x4x256xf32>
    %241 = vector.broadcast %237 : vector<1x1x256xf32> to vector<1x4x256xf32>
    %242 = arith.mulf %241, %240 : vector<1x4x256xf32>
    %c0_177 = arith.constant 0 : index
    %c0_178 = arith.constant 0 : index
    %c16_179 = arith.constant 16 : index
    %243 = vector.load %arg15[%c0_177, %c0_178, %c16_179] : memref<1x3x384xf32, #tpu.memory_space<vmem>>, vector<1x1x256xf32>
    %c3_180 = arith.constant 3 : index
    %c0_181 = arith.constant 0 : index
    %c0_182 = arith.constant 0 : index
    %244 = vector.load %arg6[%c3_180, %c0_181, %c0_182] : memref<9x4x256xf32, #tpu.memory_space<vmem>>, vector<1x4x256xf32>
    %245 = vector.shape_cast %244 : vector<1x4x256xf32> to vector<4x256xf32>
    %246 = vector.shape_cast %245 : vector<4x256xf32> to vector<1x4x256xf32>
    %247 = vector.broadcast %243 : vector<1x1x256xf32> to vector<1x4x256xf32>
    %248 = arith.mulf %247, %246 : vector<1x4x256xf32>
    %c0_183 = arith.constant 0 : index
    %c0_184 = arith.constant 0 : index
    %c17_185 = arith.constant 17 : index
    %249 = vector.load %arg15[%c0_183, %c0_184, %c17_185] : memref<1x3x384xf32, #tpu.memory_space<vmem>>, vector<1x1x256xf32>
    %c4_186 = arith.constant 4 : index
    %c0_187 = arith.constant 0 : index
    %c0_188 = arith.constant 0 : index
    %250 = vector.load %arg6[%c4_186, %c0_187, %c0_188] : memref<9x4x256xf32, #tpu.memory_space<vmem>>, vector<1x4x256xf32>
    %251 = vector.shape_cast %250 : vector<1x4x256xf32> to vector<4x256xf32>
    %252 = vector.shape_cast %251 : vector<4x256xf32> to vector<1x4x256xf32>
    %253 = vector.broadcast %249 : vector<1x1x256xf32> to vector<1x4x256xf32>
    %254 = arith.mulf %253, %252 : vector<1x4x256xf32>
    %255 = arith.addf %230, %254 : vector<1x4x256xf32>
    %c0_189 = arith.constant 0 : index
    %c0_190 = arith.constant 0 : index
    %c18_191 = arith.constant 18 : index
    %256 = vector.load %arg15[%c0_189, %c0_190, %c18_191] : memref<1x3x384xf32, #tpu.memory_space<vmem>>, vector<1x1x256xf32>
    %c5_192 = arith.constant 5 : index
    %c0_193 = arith.constant 0 : index
    %c0_194 = arith.constant 0 : index
    %257 = vector.load %arg6[%c5_192, %c0_193, %c0_194] : memref<9x4x256xf32, #tpu.memory_space<vmem>>, vector<1x4x256xf32>
    %258 = vector.shape_cast %257 : vector<1x4x256xf32> to vector<4x256xf32>
    %259 = vector.shape_cast %258 : vector<4x256xf32> to vector<1x4x256xf32>
    %260 = vector.broadcast %256 : vector<1x1x256xf32> to vector<1x4x256xf32>
    %261 = arith.mulf %260, %259 : vector<1x4x256xf32>
    %262 = arith.addf %236, %261 : vector<1x4x256xf32>
    %c0_195 = arith.constant 0 : index
    %c0_196 = arith.constant 0 : index
    %c32_197 = arith.constant 32 : index
    %263 = vector.load %arg15[%c0_195, %c0_196, %c32_197] : memref<1x3x384xf32, #tpu.memory_space<vmem>>, vector<1x1x256xf32>
    %c6_198 = arith.constant 6 : index
    %c0_199 = arith.constant 0 : index
    %c0_200 = arith.constant 0 : index
    %264 = vector.load %arg6[%c6_198, %c0_199, %c0_200] : memref<9x4x256xf32, #tpu.memory_space<vmem>>, vector<1x4x256xf32>
    %265 = vector.shape_cast %264 : vector<1x4x256xf32> to vector<4x256xf32>
    %266 = vector.shape_cast %265 : vector<4x256xf32> to vector<1x4x256xf32>
    %267 = vector.broadcast %263 : vector<1x1x256xf32> to vector<1x4x256xf32>
    %268 = arith.mulf %267, %266 : vector<1x4x256xf32>
    %269 = arith.addf %242, %268 : vector<1x4x256xf32>
    %c0_201 = arith.constant 0 : index
    %c0_202 = arith.constant 0 : index
    %c33_203 = arith.constant 33 : index
    %270 = vector.load %arg15[%c0_201, %c0_202, %c33_203] : memref<1x3x384xf32, #tpu.memory_space<vmem>>, vector<1x1x256xf32>
    %c7_204 = arith.constant 7 : index
    %c0_205 = arith.constant 0 : index
    %c0_206 = arith.constant 0 : index
    %271 = vector.load %arg6[%c7_204, %c0_205, %c0_206] : memref<9x4x256xf32, #tpu.memory_space<vmem>>, vector<1x4x256xf32>
    %272 = vector.shape_cast %271 : vector<1x4x256xf32> to vector<4x256xf32>
    %273 = vector.shape_cast %272 : vector<4x256xf32> to vector<1x4x256xf32>
    %274 = vector.broadcast %270 : vector<1x1x256xf32> to vector<1x4x256xf32>
    %275 = arith.mulf %274, %273 : vector<1x4x256xf32>
    %276 = arith.addf %248, %275 : vector<1x4x256xf32>
    %c0_207 = arith.constant 0 : index
    %c0_208 = arith.constant 0 : index
    %c34_209 = arith.constant 34 : index
    %277 = vector.load %arg15[%c0_207, %c0_208, %c34_209] : memref<1x3x384xf32, #tpu.memory_space<vmem>>, vector<1x1x256xf32>
    %c8_210 = arith.constant 8 : index
    %c0_211 = arith.constant 0 : index
    %c0_212 = arith.constant 0 : index
    %278 = vector.load %arg6[%c8_210, %c0_211, %c0_212] : memref<9x4x256xf32, #tpu.memory_space<vmem>>, vector<1x4x256xf32>
    %279 = vector.shape_cast %278 : vector<1x4x256xf32> to vector<4x256xf32>
    %280 = vector.shape_cast %279 : vector<4x256xf32> to vector<1x4x256xf32>
    %281 = vector.broadcast %277 : vector<1x1x256xf32> to vector<1x4x256xf32>
    %282 = arith.mulf %281, %280 : vector<1x4x256xf32>
    %283 = arith.addf %255, %282 : vector<1x4x256xf32>
    %c0_213 = arith.constant 0 : index
    %c0_214 = arith.constant 0 : index
    %284 = vector.load %arg7[%c0_213, %c0_214] : memref<4x256xf32, #tpu.memory_space<vmem>>, vector<4x256xf32>
    %285 = vector.shape_cast %284 : vector<4x256xf32> to vector<1x4x256xf32>
    %286 = arith.addf %285, %283 : vector<1x4x256xf32>
    %287 = arith.addf %286, %262 : vector<1x4x256xf32>
    %288 = arith.addf %287, %269 : vector<1x4x256xf32>
    %289 = arith.addf %288, %276 : vector<1x4x256xf32>
    %cst_215 = arith.constant 0.000000e+00 : f32
    %290 = vector.broadcast %cst_215 : f32 to vector<1x4x256xf32>
    %291 = arith.maximumf %289, %290 : vector<1x4x256xf32>
    %cst_216 = arith.constant dense<0.000000e+00> : vector<1xf32>
    %292 = vector.multi_reduction <add>, %291, %cst_216 [1, 2] : vector<1x4x256xf32> to vector<1xf32>
    %293 = vector.shape_cast %292 : vector<1xf32> to vector<1x1x1xf32>
    %294 = arith.mulf %291, %291 : vector<1x4x256xf32>
    %cst_217 = arith.constant dense<0.000000e+00> : vector<1xf32>
    %295 = vector.multi_reduction <add>, %294, %cst_217 [1, 2] : vector<1x4x256xf32> to vector<1xf32>
    %296 = vector.shape_cast %295 : vector<1xf32> to vector<1x1x1xf32>
    %cst_218 = arith.constant 0.00173611112 : f32
    %297 = vector.broadcast %cst_218 : f32 to vector<1x1x1xf32>
    %298 = arith.mulf %293, %297 : vector<1x1x1xf32>
    %cst_219 = arith.constant 0.00173611112 : f32
    %299 = vector.broadcast %cst_219 : f32 to vector<1x1x1xf32>
    %300 = arith.mulf %296, %299 : vector<1x1x1xf32>
    %301 = arith.mulf %298, %298 : vector<1x1x1xf32>
    %302 = arith.subf %300, %301 : vector<1x1x1xf32>
    %cst_220 = arith.constant 9.99999974E-6 : f32
    %303 = vector.broadcast %cst_220 : f32 to vector<1x1x1xf32>
    %304 = arith.addf %302, %303 : vector<1x1x1xf32>
    %305 = math.rsqrt %304 : vector<1x1x1xf32>
    %306 = vector.broadcast %298 : vector<1x1x1xf32> to vector<1x4x256xf32>
    %307 = arith.subf %291, %306 : vector<1x4x256xf32>
    %308 = vector.broadcast %305 : vector<1x1x1xf32> to vector<1x4x256xf32>
    %309 = arith.mulf %307, %308 : vector<1x4x256xf32>
    %c0_221 = arith.constant 0 : index
    %c0_222 = arith.constant 0 : index
    %310 = vector.load %arg8[%c0_221, %c0_222] : memref<4x256xf32, #tpu.memory_space<vmem>>, vector<4x256xf32>
    %311 = vector.shape_cast %310 : vector<4x256xf32> to vector<1x4x256xf32>
    %312 = arith.mulf %309, %311 : vector<1x4x256xf32>
    %c0_223 = arith.constant 0 : index
    %c0_224 = arith.constant 0 : index
    %313 = vector.load %arg9[%c0_223, %c0_224] : memref<4x256xf32, #tpu.memory_space<vmem>>, vector<4x256xf32>
    %314 = vector.shape_cast %313 : vector<4x256xf32> to vector<1x4x256xf32>
    %315 = arith.addf %312, %314 : vector<1x4x256xf32>
    %c0_225 = arith.constant 0 : index
    %c0_226 = arith.constant 0 : index
    %c0_227 = arith.constant 0 : index
    %316 = vector.load %arg14[%c0_225, %c0_226, %c0_227] : memref<1x4x256xf32, #tpu.memory_space<vmem>>, vector<1x4x256xf32>
    tpu.vector_store %arg14[%c0_225, %c0_226, %c0_227], %315 {strides = array<i32>} : memref<1x4x256xf32, #tpu.memory_space<vmem>>, vector<1x4x256xf32>,
    %c0_228 = arith.constant 0 : index
    %c0_229 = arith.constant 0 : index
    %317 = vector.load %arg11[%c0_228, %c0_229] : memref<1x10xf32, #tpu.memory_space<vmem>>, vector<1x10xf32>
    %318 = vector.extract_strided_slice %315 {offsets = [0, 0, 0], sizes = [1, 1, 256], strides = [1, 1, 1]} : vector<1x4x256xf32> to vector<1x1x256xf32>
    %319 = vector.shape_cast %318 : vector<1x1x256xf32> to vector<1x256xf32>
    %320 = arith.truncf %319 : vector<1x256xf32> to vector<1x256xbf16>
    %c0_230 = arith.constant 0 : index
    %c0_231 = arith.constant 0 : index
    %c0_232 = arith.constant 0 : index
    %321 = vector.load %arg10[%c0_230, %c0_231, %c0_232] : memref<4x256x10xf32, #tpu.memory_space<vmem>>, vector<1x256x10xf32>
    %322 = vector.shape_cast %321 : vector<1x256x10xf32> to vector<256x10xf32>
    %323 = arith.truncf %322 : vector<256x10xf32> to vector<256x10xbf16>
    %cst_233 = arith.constant dense<0.000000e+00> : vector<1x10xf32>
    %324 = tpu.matmul %320, %323, %cst_233 {dimension_numbers = #tpu.dot_dimension_numbers<[1], [0], [0], [1], [0, 0, 1, 1], [], []>} : vector<1x256xbf16>, vector<256x10xbf16>, vector<1x10xf32> -> vector<1x10xf32>
    %325 = arith.addf %317, %324 : vector<1x10xf32>
    %326 = vector.extract_strided_slice %315 {offsets = [0, 1, 0], sizes = [1, 1, 256], strides = [1, 1, 1]} : vector<1x4x256xf32> to vector<1x1x256xf32>
    %327 = vector.shape_cast %326 : vector<1x1x256xf32> to vector<1x256xf32>
    %328 = arith.truncf %327 : vector<1x256xf32> to vector<1x256xbf16>
    %c1_234 = arith.constant 1 : index
    %c0_235 = arith.constant 0 : index
    %c0_236 = arith.constant 0 : index
    %329 = vector.load %arg10[%c1_234, %c0_235, %c0_236] : memref<4x256x10xf32, #tpu.memory_space<vmem>>, vector<1x256x10xf32>
    %330 = vector.shape_cast %329 : vector<1x256x10xf32> to vector<256x10xf32>
    %331 = arith.truncf %330 : vector<256x10xf32> to vector<256x10xbf16>
    %cst_237 = arith.constant dense<0.000000e+00> : vector<1x10xf32>
    %332 = tpu.matmul %328, %331, %cst_237 {dimension_numbers = #tpu.dot_dimension_numbers<[1], [0], [0], [1], [0, 0, 1, 1], [], []>} : vector<1x256xbf16>, vector<256x10xbf16>, vector<1x10xf32> -> vector<1x10xf32>
    %333 = arith.addf %325, %332 : vector<1x10xf32>
    %334 = vector.extract_strided_slice %315 {offsets = [0, 2, 0], sizes = [1, 1, 256], strides = [1, 1, 1]} : vector<1x4x256xf32> to vector<1x1x256xf32>
    %335 = vector.shape_cast %334 : vector<1x1x256xf32> to vector<1x256xf32>
    %336 = arith.truncf %335 : vector<1x256xf32> to vector<1x256xbf16>
    %c2_238 = arith.constant 2 : index
    %c0_239 = arith.constant 0 : index
    %c0_240 = arith.constant 0 : index
    %337 = vector.load %arg10[%c2_238, %c0_239, %c0_240] : memref<4x256x10xf32, #tpu.memory_space<vmem>>, vector<1x256x10xf32>
    %338 = vector.shape_cast %337 : vector<1x256x10xf32> to vector<256x10xf32>
    %339 = arith.truncf %338 : vector<256x10xf32> to vector<256x10xbf16>
    %cst_241 = arith.constant dense<0.000000e+00> : vector<1x10xf32>
    %340 = tpu.matmul %336, %339, %cst_241 {dimension_numbers = #tpu.dot_dimension_numbers<[1], [0], [0], [1], [0, 0, 1, 1], [], []>} : vector<1x256xbf16>, vector<256x10xbf16>, vector<1x10xf32> -> vector<1x10xf32>
    %341 = arith.addf %333, %340 : vector<1x10xf32>
    %342 = vector.extract_strided_slice %315 {offsets = [0, 3, 0], sizes = [1, 1, 256], strides = [1, 1, 1]} : vector<1x4x256xf32> to vector<1x1x256xf32>
    %343 = vector.shape_cast %342 : vector<1x1x256xf32> to vector<1x256xf32>
    %344 = arith.truncf %343 : vector<1x256xf32> to vector<1x256xbf16>
    %c3_242 = arith.constant 3 : index
    %c0_243 = arith.constant 0 : index
    %c0_244 = arith.constant 0 : index
    %345 = vector.load %arg10[%c3_242, %c0_243, %c0_244] : memref<4x256x10xf32, #tpu.memory_space<vmem>>, vector<1x256x10xf32>
    %346 = vector.shape_cast %345 : vector<1x256x10xf32> to vector<256x10xf32>
    %347 = arith.truncf %346 : vector<256x10xf32> to vector<256x10xbf16>
    %cst_245 = arith.constant dense<0.000000e+00> : vector<1x10xf32>
    %348 = tpu.matmul %344, %347, %cst_245 {dimension_numbers = #tpu.dot_dimension_numbers<[1], [0], [0], [1], [0, 0, 1, 1], [], []>} : vector<1x256xbf16>, vector<256x10xbf16>, vector<1x10xf32> -> vector<1x10xf32>
    %349 = arith.addf %341, %348 : vector<1x10xf32>
    %cst_246 = arith.constant dense<0xFF800000> : vector<1xf32>
    %350 = vector.multi_reduction <maximumf>, %349, %cst_246 [1] : vector<1x10xf32> to vector<1xf32>
    %351 = vector.shape_cast %350 : vector<1xf32> to vector<1x1xf32>
    %352 = vector.broadcast %351 : vector<1x1xf32> to vector<1x10xf32>
    %353 = arith.subf %349, %352 : vector<1x10xf32>
    %354 = math.exp %353 : vector<1x10xf32>
    %cst_247 = arith.constant dense<0.000000e+00> : vector<1xf32>
    %355 = vector.multi_reduction <add>, %354, %cst_247 [1] : vector<1x10xf32> to vector<1xf32>
    %356 = vector.shape_cast %355 : vector<1xf32> to vector<1x1xf32>
    %357 = tpu.reciprocal %356 {approx = true} : vector<1x1xf32> -> vector<1x1xf32>
    %358 = vector.broadcast %357 : vector<1x1xf32> to vector<1x10xf32>
    %359 = arith.mulf %354, %358 : vector<1x10xf32>
    %360 = vector.shape_cast %359 : vector<1x10xf32> to vector<1x1x10xf32>
    %c0_248 = arith.constant 0 : index
    %c0_249 = arith.constant 0 : index
    %c0_250 = arith.constant 0 : index
    %361 = vector.load %arg12[%c0_248, %c0_249, %c0_250] : memref<1x1x10xf32, #tpu.memory_space<vmem>>, vector<1x1x10xf32>
    tpu.vector_store %arg12[%c0_248, %c0_249, %c0_250], %360 {strides = array<i32>} : memref<1x1x10xf32, #tpu.memory_space<vmem>>, vector<1x1x10xf32>,
    return
  }
  func.func @transform_0(%arg0: i32) -> (i32, i32, i32) {
    %c0_i32 = arith.constant 0 : i32
    %c0_i32_0 = arith.constant 0 : i32
    %c0_i32_1 = arith.constant 0 : i32
    return %arg0, %c0_i32, %c0_i32_0 : i32, i32, i32
  }
  func.func @transform_1(%arg0: i32) -> (i32, i32, i32) {
    %c0_i32 = arith.constant 0 : i32
    %c0_i32_0 = arith.constant 0 : i32
    %c0_i32_1 = arith.constant 0 : i32
    %c0_i32_2 = arith.constant 0 : i32
    return %c0_i32, %c0_i32_0, %c0_i32_1 : i32, i32, i32
  }
  func.func @transform_2(%arg0: i32) -> (i32, i32) {
    %c0_i32 = arith.constant 0 : i32
    %c0_i32_0 = arith.constant 0 : i32
    %c0_i32_1 = arith.constant 0 : i32
    return %c0_i32, %c0_i32_0 : i32, i32
  }
  func.func @transform_3(%arg0: i32) -> (i32, i32) {
    %c0_i32 = arith.constant 0 : i32
    %c0_i32_0 = arith.constant 0 : i32
    %c0_i32_1 = arith.constant 0 : i32
    return %c0_i32, %c0_i32_0 : i32, i32
  }
  func.func @transform_4(%arg0: i32) -> (i32, i32) {
    %c0_i32 = arith.constant 0 : i32
    %c0_i32_0 = arith.constant 0 : i32
    %c0_i32_1 = arith.constant 0 : i32
    return %c0_i32, %c0_i32_0 : i32, i32
  }
  func.func @transform_5(%arg0: i32) -> (i32, i32, i32) {
    %c0_i32 = arith.constant 0 : i32
    %c0_i32_0 = arith.constant 0 : i32
    %c0_i32_1 = arith.constant 0 : i32
    %c0_i32_2 = arith.constant 0 : i32
    return %c0_i32, %c0_i32_0, %c0_i32_1 : i32, i32, i32
  }
  func.func @transform_6(%arg0: i32) -> (i32, i32) {
    %c0_i32 = arith.constant 0 : i32
    %c0_i32_0 = arith.constant 0 : i32
    %c0_i32_1 = arith.constant 0 : i32
    return %c0_i32, %c0_i32_0 : i32, i32
  }
  func.func @transform_7(%arg0: i32) -> (i32, i32) {
    %c0_i32 = arith.constant 0 : i32
    %c0_i32_0 = arith.constant 0 : i32
    %c0_i32_1 = arith.constant 0 : i32
    return %c0_i32, %c0_i32_0 : i32, i32
  }
  func.func @transform_8(%arg0: i32) -> (i32, i32) {
    %c0_i32 = arith.constant 0 : i32
    %c0_i32_0 = arith.constant 0 : i32
    %c0_i32_1 = arith.constant 0 : i32
    return %c0_i32, %c0_i32_0 : i32, i32
  }
  func.func @transform_9(%arg0: i32) -> (i32, i32, i32) {
    %c0_i32 = arith.constant 0 : i32
    %c0_i32_0 = arith.constant 0 : i32
    %c0_i32_1 = arith.constant 0 : i32
    %c0_i32_2 = arith.constant 0 : i32
    return %c0_i32, %c0_i32_0, %c0_i32_1 : i32, i32, i32
  }
  func.func @transform_10(%arg0: i32) -> (i32, i32) {
    %c0_i32 = arith.constant 0 : i32
    %c0_i32_0 = arith.constant 0 : i32
    %c0_i32_1 = arith.constant 0 : i32
    return %c0_i32, %c0_i32_0 : i32, i32
  }
  func.func @transform_11(%arg0: i32) -> (i32, i32, i32) {
    %c0_i32 = arith.constant 0 : i32
    %c0_i32_0 = arith.constant 0 : i32
    %c0_i32_1 = arith.constant 0 : i32
    return %arg0, %c0_i32, %c0_i32_0 : i32, i32, i32
  }
  func.func @transform_12(%arg0: i32) -> (i32, i32, i32) {
    %c0_i32 = arith.constant 0 : i32
    %c0_i32_0 = arith.constant 0 : i32
    %c0_i32_1 = arith.constant 0 : i32
    return %arg0, %c0_i32, %c0_i32_0 : i32, i32, i32
  }
  func.func @transform_13(%arg0: i32) -> (i32, i32, i32) {
    %c0_i32 = arith.constant 0 : i32
    %c0_i32_0 = arith.constant 0 : i32
    %c0_i32_1 = arith.constant 0 : i32
    return %arg0, %c0_i32, %c0_i32_0 : i32, i32, i32
  }
}

</mosaic_0001>

<bundles_post_ra>
// kernel: forward.1
= control target key start
LH: loop header
LB: loop body
LE: loop exit
PB: predicated region body
PF: predicated region fallthrough
CT: control target
= control target key end

     0   :  { %s4053_s0 = inlined_call_operand.vmem [shape: f32[2,3,256], index: 0, kind: input, shape index: {}]   ;;  %s4054_s1 = inlined_call_operand.vmem [shape: f32[27,4,256], index: 1, kind: input, shape index: {}]   ;;  %s4055_s2 = inlined_call_operand.vmem [shape: f32[4,256], index: 2, kind: input, shape index: {}]   ;;  %s4056_s3 = inlined_call_operand.vmem [shape: f32[4,256], index: 3, kind: input, shape index: {}]   ;;  %s4057_s4 = inlined_call_operand.vmem [shape: f32[4,256], index: 4, kind: input, shape index: {}]   ;;  %s4058_s5 = inlined_call_operand.vmem [shape: f32[9,4,256], index: 5, kind: input, shape index: {}]   ;;  %s4059_s6 = inlined_call_operand.vmem [shape: f32[4,256], index: 6, kind: input, shape index: {}]   ;;  %s4060_s7 = inlined_call_operand.vmem [shape: f32[4,256], index: 7, kind: input, shape index: {}]   ;;  %s4061_s8 = inlined_call_operand.vmem [shape: f32[4,256], index: 8, kind: input, shape index: {}]   ;;  %s4062_s9 = inlined_call_operand.vmem [shape: f32[4,256,10], index: 9, kind: input, shape index: {}]   ;;  %s4063_s10 = inlined_call_operand.vmem [shape: f32[1,10], index: 10, kind: input, shape index: {}]   ;;  %s4064_s11 = inlined_call_operand.hbm [shape: f32[2,1,10], index: 11, kind: output, shape index: {0}]   ;;  %s4065_s12 = inlined_call_operand.vmem [shape: f32[2,4,256], index: 12, kind: output, shape index: {1}]   ;;  %s4066_s13 = inlined_call_operand.vmem [shape: f32[2,4,256], index: 13, kind: output, shape index: {2}]  }
   0x1   :  { %4104 = sst [smem:[#allocation12_spill]] %s4053_s0 }
   0x2   :  { %4105 = sst [smem:[#allocation13_spill]] %s4054_s1 }
   0x3   :  { %4106 = sst [smem:[#allocation14_spill]] %s4055_s2 }
   0x4   :  { %4107 = sst [smem:[#allocation15_spill]] %s4064_s11 }
   0x5   :  { %19 = vsyncpa [#allocation4], 0 }
   0x6   :  { %21 = vsyncpa [#allocation4 + $0x1], 0  ;;  %s2919_s25 = smov 0   ;;  %s2921_s26 = smov 0  }
   0x7   :  { %s2923_s27 = smov 0   ;;  %s2925_s28 = smov 0  }
   0x8 LB: > { %4108 = sst [smem:[#allocation6_spill]] %s2815_s25  ;;  %s2940_s29 = sadd.s32 4294967295, %s2827_s28   ;;  %s2827_s28 = sphi %s2925_s28, %s4140_s28   ;;  %s2823_s27 = sphi %s2923_s27, %s4142_s27   ;;  %s2819_s26 = sphi %s2921_s26, %s4144_s26   ;;  %s2815_s25 = sphi %s2919_s25, %s4143_s25  }
   0x9   : > { %4109 = sst [smem:[#allocation7_spill]] %s2823_s27  ;;  %s2553_s30 = sadd.s32 4294967294, %s2827_s28  }
   0xa   : > { %4110 = sst [smem:[#allocation8_spill]] %s2827_s28  ;;  %s2944_s14 = sadd.s32 1, %s2827_s28  }
   0xb   : > { %4111 = sst [smem:[#allocation9_spill]] %s2944_s14  ;;  %s270_s15 = sadd.s32 1, %s2823_s27 }
   0xc   : > { %s267_s16 = ssub.s32 %s2827_s28, %s2944_s14  ;;  %p280_p0 = scmp.ne.s32.totalorder %s2823_s27, %s2819_s26 }
   0xd   : > { %p268_p1 = scmp.eq.s32.totalorder %s267_s16, 0  ;;  %p281_p2 = scmp.eq.s32.totalorder %s2940_s29, 1 }
   0xe   : > { %p286_p3 = scmp.ne.s32.totalorder %s2819_s26, %s2815_s25  ;;  %p287_p4 = scmp.eq.s32.totalorder %s2553_s30, 1 }
   0xf   : > { %s2955_s17 = scalar_select %p268_p1, %s2823_s27, %s270_s15  }
  0x10   : > { %p2957_p5 = por %p281_p2, %p280_p0  ;;  %p2961_p6 = por %p287_p4, %p286_p3 }
  0x11   : > { %4112 = sst [smem:[#allocation10_spill]] %s2955_s17  ;;  %p2556_p7 = scmp.ge.s32.totalorder %s2827_s28, 1 }
  0x12   : > { %s4114_s19 = scalar_select %p2961_p6, 1, 0 }
  0x13   : > { %p395_p8 = scmp.lt.s32.totalorder %s2827_s28, 3 }
  0x14   : > { %4115 = sst [smem:[#allocation11_spill]] %s4114_s19 }
  0x15   : > { %p396_p9 = pnand %p2556_p7, %p395_p8 }
  0x16   : > { %s4116_s1 = sld [smem:[#allocation13_spill]] (!%p396_p9)  ;;  %s4067_s15 = smov (!%p396_p9), 1  }
  0x17   : > { %399 = sbr.rel (%p396_p9) target bundleno = 1882 (0x75a), region = 64  ;;  %s4069_s21 = smov (!%p396_p9), 2  }
  0x18   : > { %p448_p10 = scmp.lt.s32.totalorder (!%p396_p9), %s2940_s29, 1  ;;  %s4071_s30 = smov (!%p396_p9), 16  }
  0x19   : > { %s4117_s0 = sld [smem:[#allocation12_spill]] (!%p396_p9)  ;;  %s4082_s23 = smov (!%p396_p9), 17  }
  0x1a   : > { %s4079_s20 = smov (!%p396_p9), 32   ;;  %s4118_s17 = smov (!%p396_p9), 1  }
  0x1b   : > { %s4122_s27 = smov (!%p396_p9), 32   ;;  %s4124_s14 = smov (!%p396_p9), 34  }
  0x1c   : > { %v467_v0 = vld [vmem:[%s4116_s1] sm:$0xff]  ;;  %v2563_v1 = vld [vmem:[%s4116_s1 + $0x8] sm:$0xff]  ;;  %v2564_v4 = vld [vmem:[%s4116_s1 + $0x10] sm:$0xff]  ;;  %s449_s24 = scalar_select %p448_p10, %s2940_s29, 1  ;;  %v2837_v43 = vmov 0.0   ;;  %vm577_vm0 = vcmask 138240  }
  0x1d   : > { %474 = vst [vmem:[#allocation1] ss:$2 sm:$0xff] %v467_v0  ;;  %v2565_v7 = vld [vmem:[%s4116_s1 + $0x18] sm:$0xff]  ;;  %v2566_v10 = vld [vmem:[%s4116_s1 + $0x20] sm:$0xff]  ;;  %v2567_v13 = vld [vmem:[%s4116_s1 + $0x28] sm:$0xff]  ;;  %vm619_vm1 = vcmask 146432  }
  0x1e   : > { %s2994_s16 = sshll.u32 %s449_s24, 3  ;;  %v2568_v17 = vld [vmem:[%s4116_s1 + $0x30] sm:$0xff]  ;;  %v2569_v20 = vld [vmem:[%s4116_s1 + $0x38] sm:$0xff]  ;;  %v2570_v23 = vld [vmem:[%s4116_s1 + $0x40] sm:$0xff]  ;;  %s4075_s24 = smov 33   ;;  %vm662_vm2 = vcmask 261120  }
  0x1f   : > { %s452_s22 = scalar_lea.vmem %s4117_s0, %s2994_s16  ;;  %v2571_v26 = vld [vmem:[%s4116_s1 + $0x48] sm:$0xff]  ;;  %v2572_v32 = vld [vmem:[%s4116_s1 + $0x50] sm:$0xff]  ;;  %v2573_v37 = vld [vmem:[%s4116_s1 + $0x58] sm:$0xff]  ;;  %463 = vst [vmem:[#allocation2 + $0x8] sm:$0x7] %v2837_v43  ;;  %s4121_s0 = smov 18  }
  0x20   : > { %v464_v16 = vld [vmem:[%s452_s22] sm:$0x77]  ;;  %v2575_v44 = vld [vmem:[%s4116_s1 + $0x68] sm:$0xff]  ;;  %v2576_v47 = vld [vmem:[%s4116_s1 + $0x70] sm:$0xff]  ;;  %vm706_vm3 = vcmask 269312   ;;  %vm749_vm4 = vcmask 277504  }
  0x21   : > { %465 = vst [vmem:[#allocation2] sm:$0x77] %v464_v16  ;;  %v2574_v40 = vld [vmem:[%s4116_s1 + $0x60] sm:$0xff]  ;;  %v2577_v50 = vld [vmem:[%s4116_s1 + $0x78] sm:$0xff]  ;;  %v2579_v57 = vld [vmem:[%s4116_s1 + $0x88] sm:$0xff]  ;;  %s4088_s22 = smov 94  }
  0x22   : > { %v2578_v53 = vld [vmem:[%s4116_s1 + $0x80] sm:$0xff]  ;;  %v2580_v61 = vld [vmem:[%s4116_s1 + $0x90] sm:$0xff]  ;;  %vm499_vm5 = vcmask 7168   ;;  %vm525_vm6 = vcmask 15360   ;;  %s2841_s19 = smov 14   ;;  %s4093_s25 = smov 112  }
  0x23   : > { %vm594_vm7 = vcmask 908288   ;;  %vm679_vm8 = vcmask 801792   ;;  %vm551_vm9 = vcmask 130048   ;;  %vm4092_vm10 = vcmask 769024   ;;  %s4126_s2 = sld [smem:[#allocation14_spill]] }
  0x24   : > { %v2973_v2 = vld.sshfl [vmem:[#allocation1] sm:$0xff pattern:$0x75316420]  ;;  %v2975_v3 = vld.sshfl [vmem:[#allocation1 + $0x8] sm:$0xff pattern:$0x75316420] }
  0x25   : > { %492 = vst [vmem:[#allocation1] ss:$2 sm:$0xff] %v2563_v1  ;;  %vm879_vm11 = vcmask 113664   ;;  %vm4095_vm12 = vcmask 916480   ;;  %vm1089_vm13 = vcmask 777216   ;;  %vm1202_vm14 = vcmask 121856  }
  0x26   : > { %vm1286_vm15 = vcmask 924672  }
  0x28   : > { %v774_v29 = vld [vmem:[#allocation2 + $0x1] ss:$4 sm:$0x3]  ;;  %v1139_v1 = vld [vmem:[#allocation2 + $0x2] ss:$4 sm:$0x3] }
  0x29   : > { %v778_v30 = vperm.slane %v774_v29, 0  ;;  %v779_v31 = vperm.slane %v774_v29, 1  ;;  %v2583_v29 = vld [vmem:[%s4116_s1 + $0xa8] sm:$0xff] }
  0x2c   : > { %v494_v5 = vld.sshfl [vmem:[#allocation1 + $0x8] sm:$0xff pattern:$0x75316420]  ;;  %v493_v6 = vld.sshfl [vmem:[#allocation1] sm:$0xff pattern:$0x75316420] }
  0x2d   : > { %497 = vrot.lane.b32.xlu1 %v494_v5, %s4067_s15  ;;  %495 = vrot.lane.b32.xlu0 %v493_v6, %s4067_s15  ;;  %518 = vst [vmem:[#allocation1] ss:$2 sm:$0xff] %v2564_v4  ;;  %s4073_s15 = smov 18   ;;  %v1144_v5 = vperm.slane %v1139_v1, 1  ;;  %v1143_v6 = vperm.slane %v1139_v1, 0 }
  0x34   : > { %v519_v8 = vld.sshfl [vmem:[#allocation1] sm:$0xff pattern:$0x75316420]  ;;  %v520_v9 = vld.sshfl [vmem:[#allocation1 + $0x8] sm:$0xff pattern:$0x75316420] }
  0x35   : > { %521 = vrot.lane.b32.xlu1 %v519_v8, %s4069_s21  ;;  %544 = vst [vmem:[#allocation1] ss:$2 sm:$0xff] %v2565_v7  ;;  %523 = vrot.lane.b32.xlu2 %v520_v9, %s4069_s21  ;;  %v559_v7 = vld [vmem:[#allocation2] ss:$4 sm:$0x7]  ;;  %v2581_v8 = vld [vmem:[%s4116_s1 + $0x98] sm:$0xff] }
  0x36   : > { %s4125_s21 = smov 17  }
  0x3c   : > { %v546_v11 = vld.sshfl [vmem:[#allocation1 + $0x8] sm:$0xff pattern:$0x75316420]  ;;  %v545_v12 = vld.sshfl [vmem:[#allocation1] sm:$0xff pattern:$0x75316420] }
  0x3d   : > { %549 = vrot.lane.b32.xlu0 %v546_v11, %s4071_s30  ;;  %570 = vst [vmem:[#allocation1] ss:$2 sm:$0xff] %v2566_v10  ;;  %547 = vrot.lane.b32.xlu2 %v545_v12, %s4071_s30  ;;  %s4090_s30 = smov 98  }
  0x44   : > { %v572_v14 = vld.sshfl [vmem:[#allocation1 + $0x8] sm:$0xff pattern:$0x75316420]  ;;  %v571_v15 = vld.sshfl [vmem:[#allocation1] sm:$0xff pattern:$0x75316420] }
  0x45   : > { %575 = vrot.lane.b32.xlu0 %v572_v14, %s4082_s23  ;;  %612 = vst [vmem:[#allocation1] ss:$2 sm:$0xff] %v2567_v13  ;;  %573 = vrot.lane.b32.xlu2 %v571_v15, %s4082_s23  ;;  %v564_v15 = vperm.slane %v559_v7, 1 }
  0x4c   : > { %v613_v18 = vld.sshfl [vmem:[#allocation1] sm:$0xff pattern:$0x75316420]  ;;  %v614_v19 = vld.sshfl [vmem:[#allocation1 + $0x8] sm:$0xff pattern:$0x75316420] }
  0x4d   : > { %615 = vrot.lane.b32.xlu0 %v613_v18, %s4073_s15  ;;  %655 = vst [vmem:[#allocation1] ss:$2 sm:$0xff] %v2568_v17  ;;  %v565_v17 = vperm.slane %v559_v7, 2  ;;  %v563_v18 = vperm.slane %v559_v7, 0 }
  0x54   : > { %v656_v21 = vld.sshfl [vmem:[#allocation1] sm:$0xff pattern:$0x75316420]  ;;  %v657_v22 = vld.sshfl [vmem:[#allocation1 + $0x8] sm:$0xff pattern:$0x75316420] }
  0x55   : > { %617 = vrot.lane.b32.xlu0 %v614_v19, %s4073_s15  ;;  %658 = vrot.lane.b32.xlu1 %v656_v21, %s4079_s20  ;;  %699 = vst [vmem:[#allocation1] ss:$2 sm:$0xff] %v2569_v20  ;;  %s4077_s15 = smov 34   ;;  %v2582_v21 = vld [vmem:[%s4116_s1 + $0xa0] sm:$0xff] }
  0x5c   : > { %v701_v24 = vld.sshfl [vmem:[#allocation1 + $0x8] sm:$0xff pattern:$0x75316420]  ;;  %v700_v25 = vld.sshfl [vmem:[#allocation1] sm:$0xff pattern:$0x75316420] }
  0x5d   : > { %660 = vrot.lane.b32.xlu1 %v657_v22, %s4079_s20  ;;  %704 = vrot.lane.b32.xlu0 %v701_v24, %s4075_s24  ;;  %742 = vst [vmem:[#allocation1] ss:$2 sm:$0xff] %v2570_v23  ;;  %s4120_s20 = smov 16  }
  0x5e   : > { %702 = vrot.lane.b32.xlu2 %v700_v25, %s4075_s24  ;;  %s4100_s24 = smov 111  }
  0x64   : > { %v744_v27 = vld.sshfl [vmem:[#allocation1 + $0x8] sm:$0xff pattern:$0x75316420]  ;;  %v743_v28 = vld.sshfl [vmem:[#allocation1] sm:$0xff pattern:$0x75316420] }
  0x65   : > { %747 = vrot.lane.b32.xlu0 %v744_v27, %s4077_s15  ;;  %783 = vst [vmem:[#allocation1] ss:$2 sm:$0xff] %v2571_v26 }
  0x66   : > { %745 = vrot.lane.b32.xlu2 %v743_v28, %s4077_s15  ;;  %s4119_s15 = smov 2   ;;  %v601_v28 = vld [vmem:[#allocation2] ss:$4 sm:$0x7] }
  0x6c   : > { %v784_v33 = vld.sshfl [vmem:[#allocation1] sm:$0xff pattern:$0x75316420]  ;;  %v785_v34 = vld.sshfl [vmem:[#allocation1 + $0x8] sm:$0xff pattern:$0x75316420] }
  0x6d   : > { %v788_v35 = vmul.f32 %v784_v33, %v778_v30  ;;  %814 = vst [vmem:[#allocation1] ss:$2 sm:$0xff] %v2572_v32  ;;  %v789_v36 = vmul.f32 %v785_v34, %v779_v31  ;;  %v607_v30 = vperm.slane %v601_v28, 2 }
  0x6f   : > { %792 = vrot.lane.b32.xlu1 %v788_v35, %s4118_s17  ;;  %794 = vrot.lane.b32.xlu2 %v789_v36, %s4118_s17  ;;  %v606_v36 = vperm.slane %v601_v28, 1 }
  0x74   : > { %v815_v38 = vld.sshfl [vmem:[#allocation1] sm:$0xff pattern:$0x75316420]  ;;  %v816_v39 = vld.sshfl [vmem:[#allocation1 + $0x8] sm:$0xff pattern:$0x75316420] }
  0x75   : > { %856 = vst [vmem:[#allocation1] ss:$2 sm:$0xff] %v2573_v37 }
  0x77   : > { %817 = vrot.lane.b32.xlu2 %v815_v38, %s4118_s17  ;;  %v2584_v38 = vld [vmem:[%s4116_s1 + $0xb0] sm:$0xff] }
  0x7c   : > { %v858_v41 = vld.sshfl [vmem:[#allocation1 + $0x8] sm:$0xff pattern:$0x75316420]  ;;  %v857_v42 = vld.sshfl [vmem:[#allocation1] sm:$0xff pattern:$0x75316420] }
  0x7d   : > { %861 = vrot.lane.b32.xlu0 %v858_v41, %s4119_s15  ;;  %899 = vst [vmem:[#allocation1] ss:$2 sm:$0xff] %v2574_v40 }
  0x7f   : > { %819 = vrot.lane.b32.xlu2 %v816_v39, %s4118_s17  ;;  %v644_v39 = vld [vmem:[#allocation2] ss:$4 sm:$0x7] }
  0x80   : > { %v649_v43 = vperm.slane %v644_v39, 1 }
  0x84   : > { %v901_v45 = vld.sshfl [vmem:[#allocation1 + $0x8] sm:$0xff pattern:$0x75316420]  ;;  %v900_v46 = vld.sshfl [vmem:[#allocation1] sm:$0xff pattern:$0x75316420] }
  0x85   : > { %904 = vrot.lane.b32.xlu1 %v901_v45, %s4120_s20  ;;  %902 = vrot.lane.b32.xlu0 %v900_v46, %s4120_s20  ;;  %940 = vst [vmem:[#allocation1] ss:$2 sm:$0xff] %v2575_v44 }
  0x87   : > { %859 = vrot.lane.b32.xlu2 %v857_v42, %s4119_s15  ;;  %v605_v42 = vperm.slane %v601_v28, 0 }
  0x8c   : > { %v942_v48 = vld.sshfl [vmem:[#allocation1 + $0x8] sm:$0xff pattern:$0x75316420]  ;;  %v941_v49 = vld.sshfl [vmem:[#allocation1] sm:$0xff pattern:$0x75316420] }
  0x8d   : > { %945 = vrot.lane.b32.xlu1 %v942_v48, %s4082_s23  ;;  %943 = vrot.lane.b32.xlu0 %v941_v49, %s4082_s23  ;;  %982 = vst [vmem:[#allocation1] ss:$2 sm:$0xff] %v2576_v47  ;;  %s4123_s23 = smov 33   ;;  %v650_v47 = vperm.slane %v644_v39, 2 }
  0x8f   : > { %v3060_v56 = vpop.permute.xlu2 %523 }
  0x94   : > { %v983_v51 = vld.sshfl [vmem:[#allocation1] sm:$0xff pattern:$0x75316420]  ;;  %v984_v52 = vld.sshfl [vmem:[#allocation1 + $0x8] sm:$0xff pattern:$0x75316420] }
  0x95   : > { %985 = vrot.lane.b32.xlu1 %v983_v51, %s4121_s0  ;;  %1024 = vst [vmem:[#allocation1] ss:$2 sm:$0xff] %v2577_v50  ;;  %987 = vrot.lane.b32.xlu2 %v984_v52, %s4121_s0  ;;  %v2585_v51 = vld [vmem:[%s4116_s1 + $0xb8] sm:$0xff] }
  0x97   : > { %v3072_v62 = vpop.permute.xlu2 %547 }
  0x9c   : > { %v1025_v54 = vld.sshfl [vmem:[#allocation1] sm:$0xff pattern:$0x75316420]  ;;  %v1026_v55 = vld.sshfl [vmem:[#allocation1 + $0x8] sm:$0xff pattern:$0x75316420] }
  0x9d   : > { %1027 = vrot.lane.b32.xlu0 %v1025_v54, %s4122_s27  ;;  %1029 = vrot.lane.b32.xlu1 %v1026_v55, %s4122_s27  ;;  %1066 = vst [vmem:[#allocation1] ss:$2 sm:$0xff] %v2578_v53  ;;  %v688_v53 = vld [vmem:[#allocation2] ss:$4 sm:$0x7] }
  0x9f   : > { %v3065_v60 = vpop.permute.xlu0 %495  ;;  %v3081_v11 = vpop.permute.xlu1 %497 }
  0xa0   : > { %v574_v12 = vpop.permute.xlu2 %573 }
  0xa1   : > { %v582_v23 = vmul.f32 %v574_v12, %v563_v18  ;;  %v731_v18 = vld [vmem:[#allocation2] ss:$4 sm:$0x7] }
  0xa4   : > { %v1067_v58 = vld.sshfl [vmem:[#allocation1] sm:$0xff pattern:$0x75316420]  ;;  %v1068_v59 = vld.sshfl [vmem:[#allocation1 + $0x8] sm:$0xff pattern:$0x75316420] }
  0xa5   : > { %1069 = vrot.lane.b32.xlu0 %v1067_v58, %s4123_s23  ;;  %1071 = vrot.lane.b32.xlu1 %v1068_v59, %s4123_s23  ;;  %1107 = vst [vmem:[#allocation1] ss:$2 sm:$0xff] %v2579_v57  ;;  %v694_v58 = vperm.slane %v688_v53, 2 }
  0xa7   : > { %v3090_v26 = vpop.permute.xlu1 %521 }
  0xac   : > { %v1108_v63 = vld.sshfl [vmem:[#allocation1] sm:$0xff pattern:$0x75316420]  ;;  %v1109_v0 = vld.sshfl [vmem:[#allocation1 + $0x8] sm:$0xff pattern:$0x75316420] }
  0xad   : > { %1110 = vrot.lane.b32.xlu0 %v1108_v63, %s4124_s14  ;;  %1112 = vrot.lane.b32.xlu1 %v1109_v0, %s4124_s14  ;;  %1148 = vst [vmem:[#allocation1] ss:$2 sm:$0xff] %v2580_v61  ;;  %v2586_v61 = vld [vmem:[%s4116_s1 + $0xc0] sm:$0xff] }
  0xaf   : > { %v3076_v4 = vpop.permute.xlu0 %549 }
  0xb4   : > { %v1150_v9 = vld.sshfl [vmem:[#allocation1 + $0x8] sm:$0xff pattern:$0x75316420]  ;;  %v1149_v10 = vld.sshfl [vmem:[#allocation1] sm:$0xff pattern:$0x75316420] }
  0xb5   : > { %v1154_v13 = vmul.f32 %v1150_v9, %v1144_v5  ;;  %v1153_v14 = vmul.f32 %v1149_v10, %v1143_v6  ;;  %1179 = vst [vmem:[#allocation1] ss:$2 sm:$0xff] %v2581_v8  ;;  %v648_v5 = vperm.slane %v644_v39, 0  ;;  %v693_v6 = vperm.slane %v688_v53, 1 }
  0xb6   : > { %v692_v8 = vperm.slane %v688_v53, 0 }
  0xb7   : > { %v576_v16 = vpop.permute.xlu0 %575  ;;  %1159 = vrot.lane.b32.xlu0 %v1154_v13, %s4119_s15  ;;  %1157 = vrot.lane.b32.xlu2 %v1153_v14, %s4119_s15  ;;  %v2587_v13 = vld [vmem:[%s4116_s1 + $0xc8] sm:$0xff] }
  0xb8   : > { %v578_v19 = vsel %vm577_vm0, %v574_v12, %v576_v16  ;;  %v584_v22 = vmul.f32 %v576_v16, %v565_v17  ;;  %v703_v45 = vpop.permute.xlu2 %702 }
  0xb9   : > { %v583_v20 = vmul.f32 %v578_v19, %v564_v15  ;;  %v711_v14 = vmul.f32 %v703_v45, %v692_v8 }
  0xbb   : > { %590 = vrot.lane.b32.xlu1 %v583_v20, %s4100_s24  ;;  %v737_v20 = vperm.slane %v731_v18, 2 }
  0xbc   : > { %v1181_v24 = vld.sshfl [vmem:[#allocation1 + $0x8] sm:$0xff pattern:$0x75316420]  ;;  %v1180_v25 = vld.sshfl [vmem:[#allocation1] sm:$0xff pattern:$0x75316420] }
  0xbd   : > { %1222 = vst [vmem:[#allocation1] ss:$2 sm:$0xff] %v2582_v21 }
  0xbf   : > { %v616_v27 = vpop.permute.xlu0 %615  ;;  %592 = vrot.lane.b32.xlu2 %v584_v22, %s4100_s24  ;;  %588 = vrot.lane.b32.xlu0 %v582_v23, %s4100_s24  ;;  %v736_v22 = vperm.slane %v731_v18, 1 }
  0xc0   : > { %v624_v49 = vmul.f32 %v616_v27, %v605_v42  ;;  %v746_v57 = vpop.permute.xlu2 %745 }
  0xc3   : > { %1184 = vrot.lane.b32.xlu1 %v1181_v24, %s4118_s17 }
  0xc4   : > { %v1223_v31 = vld.sshfl [vmem:[#allocation1] sm:$0xff pattern:$0x75316420]  ;;  %v1224_v32 = vld.sshfl [vmem:[#allocation1 + $0x8] sm:$0xff pattern:$0x75316420] }
  0xc5   : > { %1263 = vst [vmem:[#allocation1] ss:$2 sm:$0xff] %v2583_v29 }
  0xc7   : > { %v618_v33 = vpop.permute.xlu0 %617  ;;  %v659_v34 = vpop.permute.xlu1 %658  ;;  %1182 = vrot.lane.b32.xlu0 %v1180_v25, %s4118_s17  ;;  %1227 = vrot.lane.b32.xlu2 %v1224_v32, %s4119_s15  ;;  %v735_v25 = vperm.slane %v731_v18, 0 }
  0xc8   : > { %v626_v35 = vmul.f32 %v618_v33, %v607_v30  ;;  %v620_v37 = vsel %vm619_vm1, %v616_v27, %v618_v33  ;;  %v667_v9 = vmul.f32 %v659_v34, %v648_v5 }
  0xc9   : > { %v625_v44 = vmul.f32 %v620_v37, %v606_v36  ;;  %v3120_v10 = vpop.permute.xlu2 %794  ;;  %v754_v32 = vmul.f32 %v746_v57, %v735_v25 }
  0xcb   : > { %634 = vrot.lane.b32.xlu1 %v626_v35, %s4100_s24  ;;  %v803_v35 = vld [vmem:[#allocation2 + $0x1] ss:$4 sm:$0x7] }
  0xcc   : > { %v1264_v40 = vld.sshfl [vmem:[#allocation1] sm:$0xff pattern:$0x75316420]  ;;  %v1265_v41 = vld.sshfl [vmem:[#allocation1 + $0x8] sm:$0xff pattern:$0x75316420] }
  0xcd   : > { %1306 = vst [vmem:[#allocation1] ss:$2 sm:$0xff] %v2584_v38  ;;  %v807_v37 = vperm.slane %v803_v35, 0  ;;  %v809_v38 = vperm.slane %v803_v35, 2 }
  0xcf   : > { %v661_v46 = vpop.permute.xlu1 %660  ;;  %632 = vrot.lane.b32.xlu0 %v625_v44, %s4100_s24  ;;  %v705_v59 = vpop.permute.xlu0 %704 }
  0xd0   : > { %v663_v48 = vsel %vm662_vm2, %v659_v34, %v661_v46  ;;  %v669_v52 = vmul.f32 %v661_v46, %v650_v47  ;;  %v713_v63 = vmul.f32 %v705_v59, %v694_v58  ;;  %v707_v7 = vsel %vm706_vm3, %v703_v45, %v705_v59 }
  0xd1   : > { %v668_v50 = vmul.f32 %v663_v48, %v649_v43  ;;  %v712_v12 = vmul.f32 %v707_v7, %v693_v6  ;;  %v818_v19 = vpop.permute.xlu2 %817  ;;  %v808_v46 = vperm.slane %v803_v35, 1  ;;  %v845_v48 = vld [vmem:[#allocation2 + $0x1] ss:$4 sm:$0x7] }
  0xd2   : > { %v1096_v35 = vld [vmem:[#allocation2 + $0x1] ss:$4 sm:$0x7] }
  0xd3   : > { %675 = vrot.lane.b32.xlu2 %v668_v50, %s4090_s30  ;;  %630 = vrot.lane.b32.xlu1 %v624_v49, %s4100_s24  ;;  %v849_v49 = vperm.slane %v845_v48, 0 }
  0xd4   : > { %v1307_v54 = vld.sshfl [vmem:[#allocation1] sm:$0xff pattern:$0x75316420]  ;;  %v1308_v55 = vld.sshfl [vmem:[#allocation1 + $0x8] sm:$0xff pattern:$0x75316420] }
  0xd5   : > { %1348 = vst [vmem:[#allocation1] ss:$2 sm:$0xff] %v2585_v51  ;;  %v850_v51 = vperm.slane %v845_v48, 1 }
  0xd7   : > { %677 = vrot.lane.b32.xlu0 %v669_v52, %s4090_s30  ;;  %v748_v17 = vpop.permute.xlu0 %747 }
  0xd8   : > { %v750_v23 = vsel %vm749_vm4, %v746_v57, %v748_v17  ;;  %v756_v24 = vmul.f32 %v748_v17, %v737_v20  ;;  %v851_v57 = vperm.slane %v845_v48, 2 }
  0xd9   : > { %v755_v27 = vmul.f32 %v750_v23, %v736_v22  ;;  %v820_v33 = vpop.permute.xlu2 %819  ;;  %v1013_v22 = vld [vmem:[#allocation2 + $0x1] ss:$4 sm:$0x7] }
  0xda   : > { %v827_v42 = vmul.f32 %v820_v33, %v809_v38  ;;  %v821_v47 = vsel %vm499_vm5, %v818_v19, %v820_v33  ;;  %v1018_v38 = vperm.slane %v1013_v22, 1 }
  0xdb   : > { %1268 = vrot.lane.b32.xlu2 %v1265_v41, %s4120_s20  ;;  %1225 = vrot.lane.b32.xlu1 %v1223_v31, %s4119_s15  ;;  %v2588_v31 = vld [vmem:[%s4116_s1 + $0xd0] sm:$0xff]  ;;  %v825_v41 = vmul.f32 %v818_v19, %v807_v37  ;;  %v826_v50 = vmul.f32 %v821_v47, %v808_v46 }
  0xdc   : > { %v1350_v0 = vld.sshfl [vmem:[#allocation1 + $0x8] sm:$0xff pattern:$0x75316420]  ;;  %v1349_v1 = vld.sshfl [vmem:[#allocation1] sm:$0xff pattern:$0x75316420] }
  0xdd   : > { %1390 = vst [vmem:[#allocation1] ss:$2 sm:$0xff] %v2586_v61  ;;  %v929_v61 = vld [vmem:[#allocation2 + $0x1] ss:$4 sm:$0x7] }
  0xdf   : > { %721 = vrot.lane.b32.xlu0 %v713_v63, %s4100_s24 }
  0xe1   : > { %v3130_v21 = vpop.permute.xlu1 %792  ;;  %v860_v39 = vpop.permute.xlu2 %859 }
  0xe2   : > { %v867_v53 = vmul.f32 %v860_v39, %v849_v49 }
  0xe3   : > { %719 = vrot.lane.b32.xlu2 %v712_v12, %s4100_s24  ;;  %673 = vrot.lane.b32.xlu1 %v667_v9, %s4090_s30  ;;  %s2845_s30 = smov 113  }
  0xe4   : > { %v1391_v15 = vld.sshfl [vmem:[#allocation1] sm:$0xff pattern:$0x75316420]  ;;  %v1392_v16 = vld.sshfl [vmem:[#allocation1 + $0x8] sm:$0xff pattern:$0x75316420] }
  0xe5   : > { %1431 = vst [vmem:[#allocation1] ss:$2 sm:$0xff] %v2587_v13  ;;  %v935_v13 = vperm.slane %v929_v61, 2 }
  0xe7   : > { %717 = vrot.lane.b32.xlu0 %v711_v14, %s4100_s24  ;;  %v934_v14 = vperm.slane %v929_v61, 1 }
  0xeb   : > { %1309 = vrot.lane.b32.xlu2 %v1307_v54, %s4125_s21  ;;  %1266 = vrot.lane.b32.xlu1 %v1264_v40, %s4120_s20 }
  0xec   : > { %v1433_v29 = vld.sshfl [vmem:[#allocation1 + $0x8] sm:$0xff pattern:$0x75316420]  ;;  %v1432_v30 = vld.sshfl [vmem:[#allocation1] sm:$0xff pattern:$0x75316420] }
  0xed   : > { %1473 = vst [vmem:[#allocation1] ss:$2 sm:$0xff] %v2588_v31 }
  0xef   : > { %1311 = vrot.lane.b32.xlu0 %v1308_v55, %s4125_s21  ;;  %v862_v28 = vpop.permute.xlu0 %861  ;;  %v988_v44 = vpop.permute.xlu2 %987 }
  0xf0   : > { %v863_v52 = vsel %vm525_vm6, %v860_v39, %v862_v28  ;;  %v869_v63 = vmul.f32 %v862_v28, %v851_v57  ;;  %v1100_v39 = vperm.slane %v1096_v35, 0  ;;  %v1168_v57 = vld [vmem:[#allocation2 + $0x2] ss:$4 sm:$0x7] }
  0xf1   : > { %v868_v58 = vmul.f32 %v863_v52, %v850_v51  ;;  %v1102_v51 = vperm.slane %v1096_v35, 2 }
  0xf3   : > { %764 = vrot.lane.b32.xlu2 %v756_v24, %s4088_s22  ;;  %762 = vrot.lane.b32.xlu1 %v755_v27, %s4088_s22  ;;  %v1017_v27 = vperm.slane %v1013_v22, 0 }
  0xf4   : > { %v1474_v7 = vld.sshfl [vmem:[#allocation1] sm:$0xff pattern:$0x75316420]  ;;  %v1475_v12 = vld.sshfl [vmem:[#allocation1 + $0x8] sm:$0xff pattern:$0x75316420] }
  0xf7   : > { %760 = vrot.lane.b32.xlu0 %v754_v32, %s4088_s22  ;;  %v3140_v34 = vpop.permute.xlu1 %904  ;;  %v3144_v36 = vpop.permute.xlu0 %902  ;;  %s2844_s22 = smov 15  }
  0xfb   : > { %1353 = vrot.lane.b32.xlu2 %v1350_v0, %s4121_s0  ;;  %1351 = vrot.lane.b32.xlu1 %v1349_v1, %s4121_s0  ;;  %v933_v0 = vperm.slane %v929_v61, 0 }
  0xff   : > { %1393 = vrot.lane.b32.xlu0 %v1391_v15, %s4122_s27  ;;  %v946_v40 = vpop.permute.xlu1 %945  ;;  %v944_v43 = vpop.permute.xlu0 %943 }
 0x100   : > { %v951_v8 = vmul.f32 %v944_v43, %v933_v0  ;;  %v947_v15 = vsel %vm577_vm0, %v944_v43, %v946_v40  ;;  %v953_v19 = vmul.f32 %v946_v40, %v935_v13 }
 0x101   : > { %v952_v20 = vmul.f32 %v947_v15, %v934_v14 }
 0x103   : > { %831 = vrot.lane.b32.xlu2 %v825_v41, %s4118_s17  ;;  %1395 = vrot.lane.b32.xlu1 %v1392_v16, %s4122_s27  ;;  %v971_v16 = vld [vmem:[#allocation2 + $0x1] ss:$4 sm:$0x7] }
 0x104   : > { %v977_v17 = vperm.slane %v971_v16, 2  ;;  %v976_v25 = vperm.slane %v971_v16, 1 }
 0x106   : > { %v995_v23 = vmul.f32 %v988_v44, %v977_v17 }
 0x107   : > { %835 = vrot.lane.b32.xlu0 %v827_v42, %s4118_s17  ;;  %v3150_v45 = vpop.permute.xlu1 %985 }
 0x10b   : > { %1436 = vrot.lane.b32.xlu2 %v1433_v29, %s4123_s23  ;;  %1434 = vrot.lane.b32.xlu1 %v1432_v30, %s4123_s23  ;;  %v989_v29 = vsel %vm619_vm1, %v3150_v45, %v988_v44  ;;  %v975_v30 = vperm.slane %v971_v16, 0  ;;  %v1019_v44 = vperm.slane %v1013_v22, 2  ;;  %v1174_v16 = vperm.slane %v1168_v57, 2 }
 0x10c   : > { %v994_v31 = vmul.f32 %v989_v29, %v976_v25 }
 0x10d   : > { %v993_v37 = vmul.f32 %v3150_v45, %v975_v30 }
 0x10f   : > { %833 = vrot.lane.b32.xlu0 %v826_v50, %s4118_s17  ;;  %v1028_v54 = vpop.permute.xlu0 %1027  ;;  %v3157_v55 = vpop.permute.xlu1 %1029  ;;  %v1101_v50 = vperm.slane %v1096_v35, 1 }
 0x110   : > { %v1035_v32 = vmul.f32 %v1028_v54, %v1017_v27  ;;  %v1031_v42 = vsel %vm662_vm2, %v1028_v54, %v3157_v55  ;;  %v1037_v45 = vmul.f32 %v3157_v55, %v1019_v44  ;;  %v1172_v55 = vperm.slane %v1168_v57, 0 }
 0x111   : > { %v3159_v59 = vpop.permute.xlu2 %1157  ;;  %v1036_v46 = vmul.f32 %v1031_v42, %v1018_v38 }
 0x113   : > { %875 = vrot.lane.b32.xlu2 %v868_v58, %s2841_s19  ;;  %873 = vrot.lane.b32.xlu1 %v867_v53, %s2841_s19 }
 0x117   : > { %877 = vrot.lane.b32.xlu0 %v869_v63, %s2841_s19  ;;  %v3161_v1 = vpop.permute.xlu0 %1069  ;;  %v3163_v5 = vpop.permute.xlu1 %1071  ;;  %s2843_s19 = smov 95   ;;  %v1173_v63 = vperm.slane %v1168_v57, 1 }
 0x118   : > { %v3168_v6 = vsel %vm706_vm3, %v3161_v1, %v3163_v5 }
 0x119   : > { %v593_v9 = vpop.permute.xlu2 %592 }
 0x11b   : > { %1476 = vrot.lane.b32.xlu2 %v1474_v7, %s4124_s14  ;;  %957 = vrot.lane.b32.xlu1 %v951_v8, %s4093_s25 }
 0x11f   : > { %1478 = vrot.lane.b32.xlu0 %v1475_v12, %s4124_s14  ;;  %v1111_v18 = vpop.permute.xlu0 %1110  ;;  %v1113_v28 = vpop.permute.xlu1 %1112 }
 0x120   : > { %v1118_v47 = vmul.f32 %v1111_v18, %v1100_v39  ;;  %v1114_v54 = vsel %vm749_vm4, %v1111_v18, %v1113_v28  ;;  %v1120_v61 = vmul.f32 %v1113_v28, %v1102_v51 }
 0x121   : > { %v3176_v24 = vpop.permute.xlu2 %1227  ;;  %v1119_v58 = vmul.f32 %v1114_v54, %v1101_v50  ;;  %v1295_v50 = vld [vmem:[#allocation2 + $0x2] ss:$4 sm:$0x7] }
 0x123   : > { %961 = vrot.lane.b32.xlu2 %v953_v19, %s4093_s25  ;;  %959 = vrot.lane.b32.xlu1 %v952_v20, %s4093_s25  ;;  %v1252_v20 = vld [vmem:[#allocation2 + $0x2] ss:$4 sm:$0x7] }
 0x124   : > { %v1258_v27 = vperm.slane %v1252_v20, 2 }
 0x127   : > { %1003 = vrot.lane.b32.xlu0 %v995_v23, %s4093_s25 }
 0x129   : > { %v3181_v33 = vpop.permute.xlu0 %1159 }
 0x12b   : > { %1001 = vrot.lane.b32.xlu2 %v994_v31, %s4093_s25  ;;  %1041 = vrot.lane.b32.xlu1 %v1035_v32, %s4093_s25 }
 0x12d   : > { %v676_v40 = vpop.permute.xlu2 %675  ;;  %v591_v41 = vpop.permute.xlu1 %590 }
 0x12e   : > { %v3189_v43 = vsel %vm594_vm7, %v591_v41, %v593_v9 }
 0x12f   : > { %999 = vrot.lane.b32.xlu0 %v993_v37, %s4093_s25  ;;  %v3237_v37 = vld [vmem:[#allocation2] ss:$4 sm:$0x7] }
 0x131   : > { %v589_v48 = vpop.permute.xlu0 %588 }
 0x132   : > { %v3193_v49 = vsel %vm594_vm7, %v589_v48, %v591_v41  ;;  %v511_v41 = vperm.slane %v3237_v37, 0 }
 0x133   : > { %1043 = vrot.lane.b32.xlu2 %v1036_v46, %s4093_s25  ;;  %1124 = vrot.lane.b32.xlu1 %v1118_v47, %s2843_s19  ;;  %v466_v47 = vld [vmem:[#allocation2] ss:$4 sm:$0x3] }
 0x134   : > { %v530_v46 = vmul.f32 %v3090_v26, %v511_v41 }
 0x135   : > { %v3198_v52 = vpop.permute.xlu2 %1268  ;;  %v1185_v53 = vpop.permute.xlu1 %1184 }
 0x136   : > { %v1192_v22 = vmul.f32 %v1185_v53, %v1174_v16  ;;  %v1276_v31 = vmul.f32 %v3198_v52, %v1258_v27 }
 0x137   : > { %1045 = vrot.lane.b32.xlu0 %v1037_v45, %s4093_s25  ;;  %v1256_v45 = vperm.slane %v1252_v20, 0 }
 0x139   : > { %v1183_v0 = vpop.permute.xlu0 %1182 }
 0x13a   : > { %v1186_v7 = vsel %vm499_vm5, %v1183_v0, %v1185_v53  ;;  %v1190_v13 = vmul.f32 %v1183_v0, %v1172_v55  ;;  %v470_v53 = vperm.slane %v466_v47, 1  ;;  %v1337_v55 = vld [vmem:[#allocation2 + $0x2] ss:$4 sm:$0x7] }
 0x13b   : > { %1128 = vrot.lane.b32.xlu2 %v1120_v61, %s2843_s19  ;;  %1126 = vrot.lane.b32.xlu1 %v1119_v58, %s2843_s19  ;;  %v1191_v8 = vmul.f32 %v1186_v7, %v1173_v63  ;;  %v1301_v63 = vperm.slane %v1295_v50, 2  ;;  %v469_v7 = vperm.slane %v466_v47, 0  ;;  %v1299_v47 = vperm.slane %v1295_v50, 0 }
 0x13c   : > { %v480_v0 = vmul.f32 %v2975_v3, %v470_v53 }
 0x13d   : > { %v720_v9 = vpop.permute.xlu2 %719  ;;  %v3205_v12 = vpop.permute.xlu1 %634  ;;  %v479_v3 = vmul.f32 %v2973_v2, %v469_v7  ;;  %v1342_v2 = vperm.slane %v1337_v55, 1 }
 0x13e   : > { %v600_v27 = vadd.f32 %v3189_v43, %v480_v0 }
 0x13f   : > { %1198 = vrot.lane.b32.xlu0 %v1191_v8, %s2844_s22 }
 0x141   : > { %v633_v14 = vpop.permute.xlu0 %632 }
 0x142   : > { %v3209_v15 = vsel %vm594_vm7, %v633_v14, %v3205_v12 }
 0x143   : > { %1196 = vrot.lane.b32.xlu2 %v1190_v13, %s2844_s22 }
 0x145   : > { %v3211_v17 = vpop.permute.xlu2 %1309  ;;  %v631_v18 = vpop.permute.xlu1 %630 }
 0x146   : > { %v3214_v19 = vsel %vm594_vm7, %v631_v18, %v633_v14 }
 0x149   : > { %v3216_v23 = vpop.permute.xlu0 %677 }
 0x14a   : > { %v3220_v25 = vsel %vm679_vm8, %v676_v40, %v3216_v23 }
 0x14b   : > { %1200 = vrot.lane.b32.xlu2 %v1192_v22, %s2844_s22  ;;  %v1343_v22 = vperm.slane %v1337_v55, 2  ;;  %s4096_s22 = smov 126  }
 0x14d   : > { %v765_v28 = vpop.permute.xlu2 %764  ;;  %v3222_v29 = vpop.permute.xlu1 %1225 }
 0x14e   : > { %v3227_v30 = vsel %vm525_vm6, %v3222_v29, %v3176_v24 }
 0x151   : > { %v3230_v32 = vpop.permute.xlu0 %721 }
 0x152   : > { %v3234_v35 = vsel %vm594_vm7, %v720_v9, %v3230_v32 }
 0x153   : > { %1284 = vrot.lane.b32.xlu2 %v1276_v31, %s2845_s30 }
 0x155   : > { %v1354_v38 = vpop.permute.xlu2 %1353  ;;  %v674_v39 = vpop.permute.xlu1 %673 }
 0x156   : > { %v680_v42 = vsel %vm679_vm8, %v674_v39, %v676_v40  ;;  %v1300_v40 = vperm.slane %v1295_v50, 1  ;;  %v3274_v50 = vld [vmem:[#allocation2] ss:$4 sm:$0x7] }
 0x157   : > { %v685_v51 = vadd.f32 %v680_v42, %v530_v46 }
 0x159   : > { %v718_v44 = vpop.permute.xlu0 %717 }
 0x15a   : > { %v3243_v48 = vsel %vm594_vm7, %v718_v44, %v720_v9  ;;  %v1257_v9 = vperm.slane %v1252_v20, 1  ;;  %v1361_v44 = vmul.f32 %v1354_v38, %v1343_v22  ;;  %v513_v22 = vperm.slane %v3237_v37, 2 }
 0x15d   : > { %v3245_v54 = vpop.permute.xlu2 %831  ;;  %v1267_v57 = vpop.permute.xlu1 %1266 }
 0x15e   : > { %v3248_v58 = vadd.f32 %v3245_v54, %v685_v51  ;;  %v1274_v61 = vmul.f32 %v1267_v57, %v1256_v45  ;;  %v1270_v16 = vsel %vm551_vm9, %v1267_v57, %v3198_v52  ;;  %v599_v52 = vadd.f32 %v3193_v49, %v479_v3  ;;  %v3295_v3 = vld [vmem:[#allocation2] ss:$4 sm:$0x7] }
 0x15f   : > { %v1275_v20 = vmul.f32 %v1270_v16, %v1257_v9  ;;  %v1341_v51 = vperm.slane %v1337_v55, 0  ;;  %v1317_v57 = vmul.f32 %v3211_v17, %v1299_v47  ;;  %v487_v55 = vperm.slane %v3274_v50, 2 }
 0x160   : > { %1280 = vrot.lane.b32.xlu1 %v1274_v61, %s2845_s30  ;;  %v1420_v61 = vld [vmem:[#allocation2 + $0x2] ss:$4 sm:$0x7] }
 0x161   : > { %v1312_v8 = vpop.permute.xlu0 %1311  ;;  %v1426_v0 = vperm.slane %v1420_v61, 2 }
 0x162   : > { %v1313_v13 = vsel %vm577_vm0, %v3211_v17, %v1312_v8  ;;  %v1319_v14 = vmul.f32 %v1312_v8, %v1301_v63 }
 0x163   : > { %v1318_v18 = vmul.f32 %v1313_v13, %v1300_v40 }
 0x164   : > { %1327 = vrot.lane.b32.xlu0 %v1319_v14, %s2845_s30 }
 0x165   : > { %v1437_v31 = vpop.permute.xlu2 %1436  ;;  %v763_v39 = vpop.permute.xlu1 %762  ;;  %1325 = vrot.lane.b32.xlu2 %v1318_v18, %s2845_s30  ;;  %v1424_v18 = vperm.slane %v1420_v61, 0 }
 0x166   : > { %v768_v41 = vsel %vm4092_vm10, %v763_v39, %v765_v28  ;;  %v1444_v8 = vmul.f32 %v1437_v31, %v1426_v0 }
 0x167   : > { %v3261_v42 = vadd.f32 %v768_v41, %v600_v27  ;;  %v512_v27 = vperm.slane %v3237_v37, 1 }
 0x168   : > { %1282 = vrot.lane.b32.xlu1 %v1275_v20, %s2845_s30  ;;  %v526_v20 = vsel %vm525_vm6, %v3090_v26, %v3060_v56  ;;  %v552_v26 = vsel %vm551_vm9, %v3072_v62, %v3076_v4 }
 0x169   : > { %v761_v46 = vpop.permute.xlu0 %760 }
 0x16a   : > { %v767_v43 = vsel %vm4092_vm10, %v761_v46, %v763_v39  ;;  %v1425_v39 = vperm.slane %v1420_v61, 1  ;;  %vm1508_vm10 = vcmask 1043456  }
 0x16b   : > { %v3266_v45 = vadd.f32 %v767_v43, %v599_v52  ;;  %v538_v52 = vperm.slane %v3295_v3, 1  ;;  %v532_v43 = vmul.f32 %v3060_v56, %v513_v22 }
 0x16c   : > { %1369 = vrot.lane.b32.xlu0 %v1361_v44, %s4096_s22 }
 0x16d   : > { %v3269_v53 = vpop.permute.xlu2 %875  ;;  %v1352_v28 = vpop.permute.xlu1 %1351 }
 0x16e   : > { %v1355_v63 = vsel %vm619_vm1, %v1352_v28, %v1354_v38  ;;  %v1359_v40 = vmul.f32 %v1352_v28, %v1341_v51  ;;  %v506_v38 = vmul.f32 %v3081_v11, %v487_v55 }
 0x16f   : > { %v1360_v49 = vmul.f32 %v1355_v63, %v1342_v2  ;;  %v531_v2 = vmul.f32 %v526_v20, %v512_v27  ;;  %v557_v63 = vmul.f32 %v552_v26, %v538_v52  ;;  %v500_v52 = vsel %vm499_vm5, %v3065_v60, %v3081_v11  ;;  %v3344_v26 = vld [vmem:[#allocation2 + $0x2] ss:$4 sm:$0x7] }
 0x170   : > { %1323 = vrot.lane.b32.xlu1 %v1317_v57, %s2845_s30  ;;  %v643_v14 = vadd.f32 %v3205_v12, %v506_v38  ;;  %s2847_s30 = smov 96   ;;  %v687_v57 = vadd.f32 %v3216_v23, %v532_v43  ;;  %v1217_v11 = vperm.slane %v3344_v26, 2 }
 0x171   : > { %1367 = vrot.lane.b32.xlu2 %v1360_v49, %s4096_s22  ;;  %v3277_v7 = vpop.permute.xlu0 %1393  ;;  %v686_v28 = vadd.f32 %v3220_v25, %v531_v2  ;;  %v3317_v49 = vld [vmem:[#allocation2 + $0x1] ss:$4 sm:$0x7]  ;;  %v729_v23 = vadd.f32 %v3234_v35, %v557_v63  ;;  %v486_v35 = vperm.slane %v3274_v50, 1 }
 0x172   : > { %v802_v41 = vadd.f32 %v3120_v10, %v643_v14  ;;  %v894_v0 = vperm.slane %v3317_v49, 2 }
 0x174   : > { %1365 = vrot.lane.b32.xlu0 %v1359_v40, %s4096_s22 }
 0x175   : > { %v3281_v17 = vpop.permute.xlu2 %1476  ;;  %v3283_v9 = vpop.permute.xlu1 %1395 }
 0x176   : > { %v3289_v13 = vsel %vm662_vm2, %v3277_v7, %v3283_v9 }
 0x179   : > { %1452 = vrot.lane.b32.xlu2 %v1444_v8, %s2847_s30  ;;  %v836_v16 = vpop.permute.xlu0 %835 }
 0x17d   : > { %v3301_v44 = vpop.permute.xlu2 %961  ;;  %v1435_v12 = vpop.permute.xlu1 %1434 }
 0x17e   : > { %v3305_v46 = vadd.f32 %v3301_v44, %v802_v41  ;;  %v1438_v47 = vsel %vm706_vm3, %v1435_v12, %v1437_v31  ;;  %v1442_v37 = vmul.f32 %v1435_v12, %v1424_v18  ;;  %v539_v31 = vperm.slane %v3295_v3, 2  ;;  %v1462_v12 = vld [vmem:[#allocation2 + $0x2] ss:$4 sm:$0x7] }
 0x17f   : > { %v1443_v51 = vmul.f32 %v1438_v47, %v1425_v39  ;;  %v912_v18 = vmul.f32 %v3140_v34, %v894_v0  ;;  %v3331_v39 = vld [vmem:[#allocation2 + $0x1] ss:$4 sm:$0x7]  ;;  %v1468_v47 = vperm.slane %v1462_v12, 2  ;;  %v1467_v2 = vperm.slane %v1462_v12, 1 }
 0x180   : > { %v558_v14 = vmul.f32 %v3076_v4, %v539_v31  ;;  %v1061_v41 = vperm.slane %v3331_v39, 2 }
 0x181   : > { %1450 = vrot.lane.b32.xlu1 %v1443_v51, %s2847_s30  ;;  %1448 = vrot.lane.b32.xlu2 %v1442_v37, %s2847_s30  ;;  %v834_v61 = vpop.permute.xlu0 %833  ;;  %v505_v37 = vmul.f32 %v500_v52, %v486_v35 }
 0x182   : > { %v837_v56 = vsel %vm499_vm5, %v3245_v54, %v834_v61  ;;  %v838_v40 = vsel %vm499_vm5, %v834_v61, %v836_v16  ;;  %v730_v54 = vadd.f32 %v3230_v32, %v558_v14  ;;  %v1079_v43 = vmul.f32 %v3163_v5, %v1061_v41 }
 0x183   : > { %v843_v25 = vadd.f32 %v837_v56, %v686_v28  ;;  %v844_v55 = vadd.f32 %v838_v40, %v687_v57  ;;  %v796_v5 = vsel %vm499_vm5, %v3130_v21, %v3120_v10  ;;  %v1466_v40 = vperm.slane %v1462_v12, 0 }
 0x185   : > { %v874_v8 = vpop.permute.xlu1 %873  ;;  %v1002_v27 = vpop.permute.xlu2 %1001 }
 0x186   : > { %v880_v38 = vsel %vm879_vm11, %v874_v8, %v3269_v53 }
 0x187   : > { %v3327_v22 = vadd.f32 %v880_v38, %v729_v23  ;;  %v892_v23 = vperm.slane %v3317_v49, 0  ;;  %v1235_v38 = vmul.f32 %v3176_v24, %v1217_v11 }
 0x189   : > { %920 = vrot.lane.b32.xlu2 %v912_v18, %s4093_s25  ;;  %v878_v16 = vpop.permute.xlu0 %877  ;;  %v1379_v18 = vld [vmem:[#allocation2 + $0x2] ss:$4 sm:$0x7]  ;;  %v910_v35 = vmul.f32 %v3144_v36, %v892_v23 }
 0x18a   : > { %v881_v20 = vsel %vm879_vm11, %v3269_v53, %v878_v16  ;;  %v642_v53 = vadd.f32 %v3209_v15, %v505_v37  ;;  %v537_v15 = vperm.slane %v3295_v3, 0  ;;  %v1385_v41 = vperm.slane %v1379_v18, 2 }
 0x18b   : > { %v3336_v4 = vadd.f32 %v881_v20, %v730_v54  ;;  %v1484_v54 = vmul.f32 %v3281_v17, %v1466_v40  ;;  %v1059_v37 = vperm.slane %v3331_v39, 0  ;;  %vm1245_vm11 = vcmask 1031168  }
 0x18c   : > { %v801_v56 = vadd.f32 %v796_v5, %v642_v53  ;;  %v556_v10 = vmul.f32 %v3072_v62, %v537_v15  ;;  %v1383_v15 = vperm.slane %v1379_v18, 0 }
 0x18d   : > { %v3341_v32 = vpop.permute.xlu1 %957  ;;  %v1044_v61 = vpop.permute.xlu2 %1043  ;;  %v1077_v53 = vmul.f32 %v3161_v1, %v1059_v37 }
 0x191   : > { %1087 = vrot.lane.b32.xlu2 %v1079_v43, %s2843_s19  ;;  %v1479_v51 = vpop.permute.xlu0 %1478 }
 0x192   : > { %v1480_v28 = vsel %vm749_vm4, %v3281_v17, %v1479_v51  ;;  %v1486_v57 = vmul.f32 %v1479_v51, %v1468_v47  ;;  %v893_v17 = vperm.slane %v3317_v49, 1 }
 0x193   : > { %v1485_v31 = vmul.f32 %v1480_v28, %v1467_v2 }
 0x194   : > { %1494 = vrot.lane.b32.xlu1 %v1486_v57, %s2847_s30 }
 0x195   : > { %v3356_v63 = vpop.permute.xlu1 %959  ;;  %1492 = vrot.lane.b32.xlu0 %v1485_v31, %s2847_s30  ;;  %v1129_v62 = vpop.permute.xlu2 %1128 }
 0x196   : > { %v964_v0 = vsel %vm4095_vm12, %v3356_v63, %v3301_v44  ;;  %v728_v44 = vadd.f32 %v3243_v48, %v556_v10  ;;  %v1403_v48 = vmul.f32 %v3283_v9, %v1385_v41 }
 0x197   : > { %v969_v14 = vadd.f32 %v964_v0, %v801_v56 }
 0x198   : > { %v885_v24 = vadd.f32 %v874_v8, %v728_v44 }
 0x199   : > { %1243 = vrot.lane.b32.xlu2 %v1235_v38, %s4096_s22  ;;  %v1004_v3 = vpop.permute.xlu0 %1003 }
 0x19a   : > { %v1006_v16 = vsel %vm4095_vm12, %v1002_v27, %v1004_v3  ;;  %v3368_v20 = vadd.f32 %v1004_v3, %v844_v55  ;;  %v906_v55 = vsel %vm551_vm9, %v3144_v36, %v3140_v34  ;;  %v1060_v34 = vperm.slane %v3331_v39, 1 }
 0x19b   : > { %v1011_v12 = vadd.f32 %v1006_v16, %v843_v25  ;;  %v911_v2 = vmul.f32 %v906_v55, %v893_v17  ;;  %v1215_v36 = vperm.slane %v3344_v26, 0  ;;  %v1216_v39 = vperm.slane %v3344_v26, 1 }
 0x19c   : > { %1490 = vrot.lane.b32.xlu1 %v1484_v54, %s2847_s30  ;;  %v1078_v57 = vmul.f32 %v3168_v6, %v1060_v34  ;;  %v1384_v26 = vperm.slane %v1379_v18, 1  ;;  %v1161_v16 = vsel %vm525_vm6, %v3159_v59, %v3181_v33 }
 0x19d   : > { %v1042_v52 = vpop.permute.xlu1 %1041  ;;  %916 = vrot.lane.b32.xlu0 %v910_v35, %s4093_s25  ;;  %v1197_v9 = vpop.permute.xlu2 %1196  ;;  %v1166_v18 = vadd.f32 %v1161_v16, %v1011_v12 }
 0x19e   : > { %v1047_v47 = vsel %vm4095_vm12, %v1042_v52, %v1044_v61  ;;  %v1402_v0 = vmul.f32 %v3289_v13, %v1384_v26 }
 0x19f   : > { %v3381_v25 = vadd.f32 %v1047_v47, %v885_v24 }
 0x1a1   : > { %1411 = vrot.lane.b32.xlu2 %v1403_v48, %s2847_s30  ;;  %v1000_v8 = vpop.permute.xlu0 %999  ;;  %v485_v48 = vperm.slane %v3274_v50, 0  ;;  %v963_v50 = vsel %vm4095_vm12, %v3341_v32, %v3356_v63 }
 0x1a2   : > { %v1005_v43 = vsel %vm4095_vm12, %v1000_v8, %v1002_v27  ;;  %v1208_v8 = vadd.f32 %v1197_v9, %v3381_v25 }
 0x1a3   : > { %v1010_v49 = vadd.f32 %v1005_v43, %v3248_v58  ;;  %v1233_v58 = vmul.f32 %v3222_v29, %v1215_v36  ;;  %v504_v36 = vmul.f32 %v3065_v60, %v485_v48 }
 0x1a4   : > { %918 = vrot.lane.b32.xlu1 %v911_v2, %s4093_s25 }
 0x1a5   : > { %v3388_v51 = vpop.permute.xlu1 %1124  ;;  %1083 = vrot.lane.b32.xlu0 %v1077_v53, %s2843_s19  ;;  %v1165_v17 = vadd.f32 %v3159_v59, %v1010_v49  ;;  %v641_v59 = vadd.f32 %v3214_v19, %v504_v36 }
 0x1a7   : > { %v800_v25 = vadd.f32 %v3130_v21, %v641_v59 }
 0x1a9   : > { %v1046_v28 = vpop.permute.xlu0 %1045 }
 0x1aa   : > { %v1048_v27 = vsel %vm4095_vm12, %v1044_v61, %v1046_v28  ;;  %v1054_v1 = vadd.f32 %v1046_v28, %v3336_v4  ;;  %v1201_v61 = vpop.permute.xlu2 %1200  ;;  %v1234_v4 = vmul.f32 %v3227_v30, %v1216_v39  ;;  %v1137_v30 = vadd.f32 %v1129_v62, %v3305_v46 }
 0x1ab   : > { %v1053_v11 = vadd.f32 %v1048_v27, %v3327_v22  ;;  %v1401_v22 = vmul.f32 %v3277_v7, %v1383_v15 }
 0x1ac   : > { %1085 = vrot.lane.b32.xlu1 %v1078_v57, %s2843_s19  ;;  %s4098_s19 = smov 127   ;;  %v968_v57 = vadd.f32 %v963_v50, %v800_v25 }
 0x1ad   : > { %v1127_v31 = vpop.permute.xlu1 %1126  ;;  %1239 = vrot.lane.b32.xlu0 %v1233_v58, %s4096_s22 }
 0x1ae   : > { %v1131_v5 = vsel %vm1089_vm13, %v1127_v31, %v1129_v62  ;;  %v1130_v49 = vsel %vm1089_vm13, %v3388_v51, %v1127_v31  ;;  %v1167_v31 = vadd.f32 %v3181_v33, %v3368_v20 }
 0x1af   : > { %v1136_v6 = vadd.f32 %v1131_v5, %v969_v14  ;;  %v1135_v27 = vadd.f32 %v1130_v49, %v968_v57 }
 0x1b1   : > { %v1199_v56 = vpop.permute.xlu0 %1198 }
 0x1b2   : > { %v1204_v29 = vsel %vm1202_vm14, %v1199_v56, %v1201_v61  ;;  %v1285_v23 = vpop.permute.xlu2 %1284  ;;  %v1203_v24 = vsel %vm1202_vm14, %v1197_v9, %v1199_v56  ;;  %vm1413_vm14 = vcmask 785408  }
 0x1b3   : > { %v3405_v40 = vadd.f32 %v1204_v29, %v1054_v1  ;;  %v1294_v10 = vadd.f32 %v1285_v23, %v1137_v30  ;;  %v1209_v52 = vadd.f32 %v1203_v24, %v1053_v11 }
 0x1b4   : > { %1241 = vrot.lane.b32.xlu1 %v1234_v4, %s4096_s22 }
 0x1b5   : > { %1407 = vrot.lane.b32.xlu0 %v1401_v22, %s2847_s30 }
 0x1bc   : > { %1409 = vrot.lane.b32.xlu1 %v1402_v0, %s2847_s30 }
 0x1bf   : > { %v1326_v38 = vpop.permute.xlu2 %1325 }
 0x1cb   : > { %v1368_v14 = vpop.permute.xlu2 %1367 }
 0x1d2   : > { %v1281_v3 = vpop.permute.xlu1 %1280 }
 0x1d3   : > { %v1453_v54 = vpop.permute.xlu2 %1452 }
 0x1d4   : > { %v1461_v7 = vadd.f32 %v1453_v54, %v1294_v10 }
 0x1d6   : > { %v1328_v35 = vpop.permute.xlu0 %1327  ;;  %1519 = vrot.lane.b32.xlu2 %v1461_v7, %s4098_s19 }
 0x1d7   : > { %v1330_v13 = vsel %vm1286_vm15, %v1326_v38, %v1328_v35  ;;  %v1336_v15 = vadd.f32 %v1328_v35, %v1167_v31 }
 0x1d8   : > { %v1335_v44 = vadd.f32 %v1330_v13, %v1166_v18 }
 0x1da   : > { %v1283_v41 = vpop.permute.xlu1 %1282 }
 0x1db   : > { %v1288_v9 = vsel %vm1286_vm15, %v1283_v41, %v1285_v23  ;;  %v1287_v60 = vsel %vm1286_vm15, %v1281_v3, %v1283_v41  ;;  %v1449_v19 = vpop.permute.xlu2 %1448 }
 0x1dc   : > { %v1293_v1 = vadd.f32 %v1288_v9, %v1136_v6  ;;  %v1292_v32 = vadd.f32 %v1287_v60, %v1135_v27  ;;  %v1504_v60 = vld [vmem:[%s4126_s2] sm:$0xff]  ;;  %s457_s2 = scalar_lea.vmem %s4065_s12, %s2994_s16 }
 0x1de   : > { %v1370_v46 = vpop.permute.xlu0 %1369 }
 0x1df   : > { %v1372_v62 = vsel %vm1245_vm11, %v1368_v14, %v1370_v46  ;;  %v1378_v20 = vadd.f32 %v1370_v46, %v3405_v40 }
 0x1e0   : > { %v1377_v12 = vadd.f32 %v1372_v62, %v1209_v52 }
 0x1e2   : > { %v1324_v47 = vpop.permute.xlu1 %1323  ;;  %v1546_v53 = vrot.slane %v1377_v12, 4 }
 0x1e3   : > { %v1329_v55 = vsel %vm1286_vm15, %v1324_v47, %v1326_v38  ;;  %v921_v26 = vpop.permute.xlu2 %920 }
 0x1e4   : > { %v1334_v37 = vadd.f32 %v1329_v55, %v1165_v17 }
 0x1e6   : > { %v1366_v43 = vpop.permute.xlu0 %1365 }
 0x1e7   : > { %v1371_v2 = vsel %vm1245_vm11, %v1366_v43, %v1368_v14 }
 0x1e8   : > { %v1376_v34 = vadd.f32 %v1371_v2, %v1208_v8 }
 0x1ea   : > { %v1547_v28 = vsel %vm1508_vm10, %v1376_v34, %v1546_v53 }
 0x1eb   : > { %1548 = vrot.lane.b32.xlu2 %v1547_v28, %s4093_s25  ;;  %v1088_v10 = vpop.permute.xlu2 %1087 }
 0x1f3   : > { %v1451_v58 = vpop.permute.xlu1 %1450  ;;  %v1244_v7 = vpop.permute.xlu2 %1243 }
 0x1f4   : > { %v1454_v11 = vsel %vm1413_vm14, %v1449_v19, %v1451_v58  ;;  %v1455_v39 = vsel %vm1413_vm14, %v1451_v58, %v1453_v54 }
 0x1f5   : > { %v1460_v63 = vadd.f32 %v1455_v39, %v1293_v1  ;;  %v1459_v21 = vadd.f32 %v1454_v11, %v1292_v32 }
 0x1f7   : > { %v1515_v5 = vrot.slane %v1460_v63, 4 }
 0x1f9   : > { %v1516_v51 = vsel %vm1508_vm10, %v1459_v21, %v1515_v5 }
 0x1fa   : > { %1517 = vrot.lane.b32.xlu1 %v1516_v51, %s4098_s19 }
 0x1fb   : > { %v1412_v17 = vpop.permute.xlu2 %1411 }
 0x206   : > { %v1495_v61 = vpop.permute.xlu1 %1494 }
 0x207   : > { %v1503_v6 = vadd.f32 %v1495_v61, %v1336_v15  ;;  %v1493_v56 = vpop.permute.xlu0 %1492 }
 0x208   : > { %v1497_v4 = vsel %vm1413_vm14, %v1493_v56, %v1495_v61 }
 0x209   : > { %1535 = vrot.lane.b32.xlu1 %v1503_v6, %s4096_s22  ;;  %v1502_v29 = vadd.f32 %v1497_v4, %v1335_v44 }
 0x20b   : > { %v1531_v23 = vrot.slane %v1502_v29, 4 }
 0x20e   : > { %v1491_v22 = vpop.permute.xlu1 %1490 }
 0x20f   : > { %v1496_v0 = vsel %vm1413_vm14, %v1491_v22, %v1493_v56  ;;  %v917_v14 = vpop.permute.xlu0 %916 }
 0x210   : > { %v1501_v38 = vadd.f32 %v1496_v0, %v1334_v37 }
 0x212   : > { %v1532_v30 = vsel %vm1508_vm10, %v1501_v38, %v1531_v23 }
 0x213   : > { %1533 = vrot.lane.b32.xlu0 %v1532_v30, %s4096_s22  ;;  %s462_s22 = scalar_lea.vmem %s4066_s13, %s2994_s16 }
 0x216   : > { %v919_v33 = vpop.permute.xlu1 %918 }
 0x217   : > { %v1084_v3 = vpop.permute.xlu0 %1083  ;;  %v923_v18 = vsel %vm4095_vm12, %v917_v14, %v919_v33  ;;  %v924_v13 = vsel %vm4095_vm12, %v919_v33, %v921_v26 }
 0x218   : > { %v927_v24 = vadd.f32 %v923_v18, %v3266_v45  ;;  %v928_v40 = vadd.f32 %v924_v13, %v3261_v42 }
 0x21b   : > { %1550 = vrot.lane.b32.xlu0 %v1378_v20, %s4093_s25 }
 0x21e   : > { %v1086_v54 = vpop.permute.xlu1 %1085 }
 0x21f   : > { %v1240_v16 = vpop.permute.xlu0 %1239  ;;  %v1090_v44 = vsel %vm1089_vm13, %v1084_v3, %v1086_v54  ;;  %v1091_v41 = vsel %vm1089_vm13, %v1086_v54, %v1088_v10  ;;  %vm1524_vm13 = vcmask 1039360  }
 0x220   : > { %v1094_v52 = vadd.f32 %v1090_v44, %v927_v24  ;;  %v1095_v47 = vadd.f32 %v1091_v41, %v928_v40 }
 0x226   : > { %v1242_v35 = vpop.permute.xlu1 %1241 }
 0x227   : > { %v1246_v46 = vsel %vm1245_vm11, %v1240_v16, %v1242_v35  ;;  %v1247_v62 = vsel %vm1245_vm11, %v1242_v35, %v1244_v7  ;;  %v1408_v37 = vpop.permute.xlu0 %1407 }
 0x228   : > { %v1250_v55 = vadd.f32 %v1246_v46, %v1094_v52  ;;  %v1251_v12 = vadd.f32 %v1247_v62, %v1095_v47 }
 0x22e   : > { %v1410_v48 = vpop.permute.xlu1 %1409 }
 0x22f   : > { %v1414_v8 = vsel %vm1413_vm14, %v1408_v37, %v1410_v48  ;;  %v1415_v43 = vsel %vm1413_vm14, %v1410_v48, %v1412_v17 }
 0x230   : > { %v1418_v2 = vadd.f32 %v1414_v8, %v1250_v55  ;;  %v1419_v53 = vadd.f32 %v1415_v43, %v1251_v12  ;;  %v1520_v36 = vpop.permute.xlu2 %1519 }
 0x231   : > { %v1522_v25 = vrot.slane %v1520_v36, 4 }
 0x232   : > { %v1507_v45 = vrot.slane %v1419_v53, 4  ;;  %v1611_v53 = vld [vmem:[%s4056_s3] sm:$0xff] }
 0x234   : > { %v1509_v42 = vsel %vm1508_vm10, %v1418_v2, %v1507_v45 }
 0x235   : > { %v1511_v58 = vadd.f32 %v1509_v42, %v1504_v60 }
 0x245   : > { %v1549_v1 = vpop.permute.xlu2 %1548 }
 0x246   : > { %v1552_v32 = vrot.slane %v1549_v1, 4 }
 0x26c   : > { %v1518_v34 = vpop.permute.xlu1 %1517 }
 0x26d   : > { %v1521_v28 = vrot.slane %v1518_v34, 4 }
 0x26f   : > { %v1523_v9 = vsel %vm1508_vm10, %v1521_v28, %v1522_v25 }
 0x270   : > { %v1525_v19 = vsel %vm1524_vm13, %v1518_v34, %v1523_v9  ;;  %v1613_v34 = vld [vmem:[%s4057_s4] sm:$0xff] }
 0x271   : > { %v1527_v63 = vadd.f32 %v1525_v19, %v1511_v58  ;;  %v2589_v19 = vld [vmem:[%s4058_s5 + $0x8] sm:$0xff] }
 0x27b   : > { %v1536_v59 = vpop.permute.xlu1 %1535 }
 0x27c   : > { %v1538_v57 = vrot.slane %v1536_v59, 4  ;;  %v1648_v59 = vld [vmem:[%s4058_s5] sm:$0xff] }
 0x285   : > { %v1534_v50 = vpop.permute.xlu0 %1533 }
 0x286   : > { %v1537_v49 = vrot.slane %v1534_v50, 4 }
 0x288   : > { %v1539_v27 = vsel %vm1508_vm10, %v1537_v49, %v1538_v57 }
 0x289   : > { %v1540_v11 = vsel %vm1245_vm11, %v1534_v50, %v1539_v27 }
 0x28a   : > { %v1542_v5 = vadd.f32 %v1540_v11, %v1527_v63 }
 0x28d   : > { %v1551_v39 = vpop.permute.xlu0 %1550 }
 0x28e   : > { %v1553_v21 = vrot.slane %v1551_v39, 4 }
 0x290   : > { %v1554_v51 = vsel %vm1508_vm10, %v1552_v32, %v1553_v21 }
 0x291   : > { %v1555_v31 = vsel %vm4095_vm12, %v1549_v1, %v1554_v51 }
 0x292   : > { %v1557_v15 = vadd.f32 %v1555_v31, %v1542_v5  ;;  %v1642_v31 = vlaneseq }
 0x294   : > { %v1558_v61 = vmax.f32 %v1557_v15, 0.0 }
 0x296   : > { %1560 = vst [vmem:[#allocation1] ss:$2 sm:$0xff] %v1558_v61  ;;  %v1576_v6 = vmul.f32 %v1558_v61, %v1558_v61 }
 0x29d   : > { %v1561_v56 = vld.sshfl [vmem:[#allocation1] sm:$0xff pattern:$0x75316420]  ;;  %v1562_v4 = vld.sshfl [vmem:[#allocation1 + $0x8] sm:$0xff pattern:$0x75316420] }
 0x29e   : > { %v1565_v29 = vsel %vm1508_vm10, %v1561_v56, 0.0  ;;  %v1566_v22 = vsel %vm1508_vm10, %v1562_v4, 0.0  ;;  %1578 = vst [vmem:[#allocation1] ss:$2 sm:$0xff] %v1576_v6 }
 0x29f   : > { %v1567_v26 = vadd.f32 %v1566_v22, %v1565_v29 }
 0x2a1   : > { %1568 = vadd.xlane.f32.xlu1 %v1567_v26  ;;  %v2591_v26 = vld [vmem:[%s4058_s5 + $0x18] sm:$0xff] }
 0x2a5   : > { %v1579_v0 = vld.sshfl [vmem:[#allocation1] sm:$0xff pattern:$0x75316420]  ;;  %v1580_v23 = vld.sshfl [vmem:[#allocation1 + $0x8] sm:$0xff pattern:$0x75316420] }
 0x2a6   : > { %v1583_v38 = vsel %vm1508_vm10, %v1579_v0, 0.0  ;;  %v1584_v14 = vsel %vm1508_vm10, %v1580_v23, 0.0 }
 0x2a7   : > { %v1585_v30 = vadd.f32 %v1584_v14, %v1583_v38  ;;  %v2592_v38 = vld [vmem:[%s4058_s5 + $0x20] sm:$0xff] }
 0x2a9   : > { %1586 = vadd.xlane.f32.xlu2 %v1585_v30 }
 0x314   : > { %v1569_v33 = vpop.xlane.xlu1 %1568 }
 0x315   : > { %v1570_v20 = vrot.slane %v1569_v33, 4 }
 0x317   : > { %v1571_v10 = vadd.f32 %v1570_v20, %v1569_v33  ;;  %v2593_v33 = vld [vmem:[%s4058_s5 + $0x28] sm:$0xff] }
 0x319   : > { %v1572_v3 = vrot.slane %v1571_v10, 2 }
 0x31b   : > { %v1573_v54 = vadd.f32 %v1572_v3, %v1571_v10  ;;  %v2594_v3 = vld [vmem:[%s4058_s5 + $0x30] sm:$0xff] }
 0x31c   : > { %v1587_v7 = vpop.xlane.xlu2 %1586 }
 0x31d   : > { %v1574_v16 = vrot.slane %v1573_v54, 1  ;;  %v1588_v35 = vrot.slane %v1587_v7, 4 }
 0x31f   : > { %v1589_v18 = vadd.f32 %v1588_v35, %v1587_v7  ;;  %v1575_v13 = vadd.f32 %v1574_v16, %v1573_v54  ;;  %v2595_v16 = vld [vmem:[%s4058_s5 + $0x38] sm:$0xff] }
 0x321   : > { %v1590_v44 = vrot.slane %v1589_v18, 2  ;;  %v1594_v24 = vmul.f32 0.0012755102, %v1575_v13  ;;  %v2596_v13 = vld [vmem:[%s4058_s5 + $0x40] sm:$0xff] }
 0x323   : > { %v1591_v41 = vadd.f32 %v1590_v44, %v1589_v18  ;;  %v1596_v62 = vmul.f32 %v1594_v24, %v1594_v24  ;;  %v1609_v2 = vsub.f32 %v1558_v61, %v1594_v24  ;;  %v2590_v61 = vld [vmem:[%s4058_s5 + $0x10] sm:$0xff] }
 0x325   : > { %v1592_v40 = vrot.slane %v1591_v41, 1 }
 0x327   : > { %v1593_v46 = vadd.f32 %v1592_v40, %v1591_v41 }
 0x329   : > { %v1595_v52 = vmul.f32 0.0012755102, %v1593_v46 }
 0x32b   : > { %v1597_v47 = vsub.f32 %v1595_v52, %v1596_v62 }
 0x32d   : > { %v1598_v17 = vadd.f32 1e-05, %v1597_v47 }
 0x32f   : > { %2757 = vrsqrt.f32 %v1598_v17  ;;  %vm1605_vm14 = vweird.f32 %v1598_v17 }
 0x335   : > { %v2758_v55 = vpop.eup %2757 }
 0x336   : > { %v1600_v12 = vmul.f32 %v2758_v55, %v1598_v17  ;;  %vm1606_vm15 = vweird.f32 %v2758_v55 }
 0x337   : > { %vm1607_vm12 = vmor %vm1605_vm14, %vm1606_vm15  ;;  %vm1644_vm15 = vcmp.lt.s32.totalorder %v1642_v31, 256 }
 0x338   : > { %v1601_v37 = vmul.f32 %v2758_v55, %v1600_v12 }
 0x33a   : > { %v1602_v48 = vmul.f32 0.5, %v1601_v37 }
 0x33c   : > { %v1603_v8 = vsub.f32 1.5, %v1602_v48 }
 0x33e   : > { %v1604_v43 = vmul.f32 %v2758_v55, %v1603_v8 }
 0x340   : > { %v1608_v45 = vsel %vm1607_vm12, %v2758_v55, %v1604_v43  ;;  %vm1639_vm12 = vcmask 1040384  }
 0x341   : > { %v1610_v42 = vmul.f32 %v1609_v2, %v1608_v45 }
 0x343   : > { %v1612_v36 = vmul.f32 %v1611_v53, %v1610_v42 }
 0x345   : > { %v1614_v28 = vadd.f32 %v1613_v34, %v1612_v36 }
 0x347   : > { %1615 = vst [vmem:[%s457_s2] sm:$0xff] %v1614_v28 }
 0x348   : > { %1617 = vst [vmem:[#allocation1] ss:$2 sm:$0xff] %v1614_v28 }
 0x34f   : > { %v1618_v50 = vld.sshfl [vmem:[#allocation1] sm:$0xff pattern:$0x75316420]  ;;  %v1619_v25 = vld.sshfl [vmem:[#allocation1 + $0x8] sm:$0xff pattern:$0x75316420] }
 0x350   : > { %1655 = vst [vmem:[#allocation1] ss:$2 sm:$0xff] %v1648_v59  ;;  %v1629_v49 = vsel %vm1508_vm10, %v1619_v25, -inf  ;;  %v1622_v9 = vsel %vm1508_vm10, %v1618_v50, -inf }
 0x351   : > { %v1630_v57 = vrot.slane %v1629_v49, 4  ;;  %v1623_v60 = vrot.slane %v1622_v9, 4 }
 0x353   : > { %v1631_v27 = vmax.f32 %v1629_v49, %v1630_v57  ;;  %v1624_v1 = vmax.f32 %v1622_v9, %v1623_v60 }
 0x355   : > { %v1632_v58 = vrot.slane %v1631_v27, 2  ;;  %v1625_v11 = vrot.slane %v1624_v1, 2 }
 0x357   : > { %v3491_v39 = vld.sshfl [vmem:[#allocation1] sm:$0xff pattern:$0x75316420]  ;;  %v3493_v32 = vld.sshfl [vmem:[#allocation1 + $0x8] sm:$0xff pattern:$0x75316420]  ;;  %v1633_v63 = vmax.f32 %v1631_v27, %v1632_v58  ;;  %v1626_v21 = vmax.f32 %v1624_v1, %v1625_v11 }
 0x358   : > { %1673 = vst [vmem:[#allocation1] ss:$2 sm:$0xff] %v2589_v19 }
 0x359   : > { %v1634_v5 = vrot.slane %v1633_v63, 1  ;;  %v1627_v51 = vrot.slane %v1626_v21, 1 }
 0x35b   : > { %v1635_v15 = vmax.f32 %v1633_v63, %v1634_v5  ;;  %v1628_v56 = vmax.f32 %v1626_v21, %v1627_v51 }
 0x35d   : > { %v1638_v6 = vrot.slane %v1635_v15, 7 }
 0x35f   : > { %v1674_v4 = vld.sshfl [vmem:[#allocation1] sm:$0xff pattern:$0x75316420]  ;;  %v1675_v29 = vld.sshfl [vmem:[#allocation1 + $0x8] sm:$0xff pattern:$0x75316420]  ;;  %v1640_v22 = vsel %vm1639_vm12, %v1628_v56, %v1638_v6 }
 0x360   : > { %1698 = vst [vmem:[#allocation1] ss:$2 sm:$0xff] %v2590_v61 }
 0x361   : > { %1646 = vst.msk [vmem:[#allocation2] ss:$4 sm:$0x3] %vm1644_vm15, %v1640_v22 }
 0x367   : > { %v1699_v0 = vld.sshfl [vmem:[#allocation1] sm:$0xff pattern:$0x75316420]  ;;  %v1700_v23 = vld.sshfl [vmem:[#allocation1 + $0x8] sm:$0xff pattern:$0x75316420] }
 0x368   : > { %1723 = vst [vmem:[#allocation1] ss:$2 sm:$0xff] %v2591_v26  ;;  %v1777_v17 = vld [vmem:[#allocation2] ss:$4 sm:$0x7] }
 0x369   : > { %v1783_v55 = vperm.slane %v1777_v17, 2  ;;  %v1782_v37 = vperm.slane %v1777_v17, 1  ;;  %v1781_v42 = vperm.slane %v1777_v17, 0  ;;  %v1819_v28 = vld [vmem:[#allocation2] ss:$4 sm:$0x7] }
 0x36a   : > { %v1823_v59 = vperm.slane %v1819_v28, 0  ;;  %v1825_v50 = vperm.slane %v1819_v28, 2  ;;  %v1824_v49 = vperm.slane %v1819_v28, 1  ;;  %v1861_v1 = vld [vmem:[#allocation2] ss:$4 sm:$0x7] }
 0x36b   : > { %v1867_v19 = vperm.slane %v1861_v1, 2  ;;  %v1865_v58 = vperm.slane %v1861_v1, 0  ;;  %v1866_v63 = vperm.slane %v1861_v1, 1  ;;  %v1737_v15 = vld [vmem:[#allocation2] ss:$4 sm:$0x7] }
 0x36c   : > { %v1741_v61 = vperm.slane %v1737_v15, 0  ;;  %v1743_v6 = vperm.slane %v1737_v15, 2 }
 0x36f   : > { %v1724_v14 = vld.sshfl [vmem:[#allocation1] sm:$0xff pattern:$0x75316420]  ;;  %v1725_v30 = vld.sshfl [vmem:[#allocation1 + $0x8] sm:$0xff pattern:$0x75316420] }
 0x370   : > { %1748 = vst [vmem:[#allocation1] ss:$2 sm:$0xff] %v2592_v38 }
 0x377   : > { %v1749_v20 = vld.sshfl [vmem:[#allocation1] sm:$0xff pattern:$0x75316420]  ;;  %v1750_v10 = vld.sshfl [vmem:[#allocation1 + $0x8] sm:$0xff pattern:$0x75316420] }
 0x378   : > { %1751 = vrot.lane.b32.xlu1 %v1749_v20, %s4125_s21  ;;  %1788 = vst [vmem:[#allocation1] ss:$2 sm:$0xff] %v2593_v33 }
 0x37f   : > { %v1789_v54 = vld.sshfl [vmem:[#allocation1] sm:$0xff pattern:$0x75316420]  ;;  %v1790_v7 = vld.sshfl [vmem:[#allocation1 + $0x8] sm:$0xff pattern:$0x75316420] }
 0x380   : > { %1728 = vrot.lane.b32.xlu1 %v1725_v30, %s4120_s20  ;;  %1791 = vrot.lane.b32.xlu0 %v1789_v54, %s4121_s0  ;;  %1830 = vst [vmem:[#allocation1] ss:$2 sm:$0xff] %v2594_v3 }
 0x387   : > { %v1831_v35 = vld.sshfl [vmem:[#allocation1] sm:$0xff pattern:$0x75316420]  ;;  %v1832_v18 = vld.sshfl [vmem:[#allocation1 + $0x8] sm:$0xff pattern:$0x75316420] }
 0x388   : > { %1793 = vrot.lane.b32.xlu0 %v1790_v7, %s4121_s0  ;;  %1872 = vst [vmem:[#allocation1] ss:$2 sm:$0xff] %v2595_v16  ;;  %s4127_s0 = smov 111  }
 0x38f   : > { %v1874_v44 = vld.sshfl [vmem:[#allocation1 + $0x8] sm:$0xff pattern:$0x75316420]  ;;  %v1873_v41 = vld.sshfl [vmem:[#allocation1] sm:$0xff pattern:$0x75316420] }
 0x390   : > { %1833 = vrot.lane.b32.xlu0 %v1831_v35, %s4122_s27  ;;  %1877 = vrot.lane.b32.xlu2 %v1874_v44, %s4123_s23  ;;  %1914 = vst [vmem:[#allocation1] ss:$2 sm:$0xff] %v2596_v13  ;;  %v1662_v13 = vld [vmem:[#allocation2] ss:$4 sm:$0x7] }
 0x391   : > { %v1668_v44 = vperm.slane %v1662_v13, 2 }
 0x397   : > { %v1916_v24 = vld.sshfl [vmem:[#allocation1 + $0x8] sm:$0xff pattern:$0x75316420]  ;;  %v1915_v40 = vld.sshfl [vmem:[#allocation1] sm:$0xff pattern:$0x75316420] }
 0x398   : > { %1835 = vrot.lane.b32.xlu0 %v1832_v18, %s4122_s27  ;;  %1703 = vrot.lane.b32.xlu2 %v1700_v23, %s4119_s15  ;;  %s4128_s27 = smov 98   ;;  %v1903_v23 = vld [vmem:[#allocation2] ss:$4 sm:$0x7] }
 0x399   : > { %1919 = vrot.lane.b32.xlu1 %v1916_v24, %s4124_s14  ;;  %v1907_v30 = vperm.slane %v1903_v23, 0  ;;  %v1909_v33 = vperm.slane %v1903_v23, 2 }
 0x3a0   : > { %1726 = vrot.lane.b32.xlu2 %v1724_v14, %s4120_s20  ;;  %1875 = vrot.lane.b32.xlu0 %v1873_v41, %s4123_s23  ;;  %s4130_s23 = smov 127   ;;  %s4132_s20 = smov 112  }
 0x3a8   : > { %1753 = vrot.lane.b32.xlu0 %v1750_v10, %s4125_s21  ;;  %1917 = vrot.lane.b32.xlu2 %v1915_v40, %s4124_s14  ;;  %v1908_v10 = vperm.slane %v1903_v23, 1  ;;  %s4129_s14 = smov 94  }
 0x3b0   : > { %1676 = vrot.lane.b32.xlu0 %v1674_v4, %s4118_s17  ;;  %v1742_v4 = vperm.slane %v1737_v15, 1 }
 0x3b8   : > { %1678 = vrot.lane.b32.xlu0 %v1675_v29, %s4118_s17 }
 0x3c0   : > { %1701 = vrot.lane.b32.xlu0 %v1699_v0, %s4119_s15  ;;  %s4131_s15 = smov 126  }
 0x3ea   : > { %v1878_v46 = vpop.permute.xlu2 %1877  ;;  %v1752_v62 = vpop.permute.xlu1 %1751 }
 0x3eb   : > { %v1885_v21 = vmul.f32 %v1878_v46, %v1867_v19  ;;  %v1759_v29 = vmul.f32 %v1752_v62, %v1741_v61 }
 0x3f2   : > { %v1792_v52 = vpop.permute.xlu0 %1791  ;;  %v3532_v47 = vpop.permute.xlu2 %1703 }
 0x3f3   : > { %v3534_v48 = vpop.permute.xlu1 %1728  ;;  %v1799_v36 = vmul.f32 %v1792_v52, %v1781_v42 }
 0x3fa   : > { %v1794_v12 = vpop.permute.xlu0 %1793  ;;  %v3537_v2 = vpop.permute.xlu2 %1726 }
 0x3fb   : > { %v1795_v8 = vsel %vm619_vm1, %v1792_v52, %v1794_v12  ;;  %v1801_v43 = vmul.f32 %v1794_v12, %v1783_v55  ;;  %v3542_v45 = vsel %vm551_vm9, %v3537_v2, %v3534_v48  ;;  %v1667_v52 = vperm.slane %v1662_v13, 1 }
 0x3fc   : > { %v1800_v53 = vmul.f32 %v1795_v8, %v1782_v37  ;;  %v1666_v12 = vperm.slane %v1662_v13, 0 }
 0x3fd   : > { %1809 = vrot.lane.b32.xlu0 %v1801_v43, %s4127_s0 }
 0x3fe   : > { %1807 = vrot.lane.b32.xlu1 %v1800_v53, %s4127_s0 }
 0x402   : > { %v1834_v34 = vpop.permute.xlu0 %1833  ;;  %v1918_v14 = vpop.permute.xlu2 %1917 }
 0x403   : > { %v1841_v9 = vmul.f32 %v1834_v34, %v1823_v59  ;;  %v1925_v3 = vmul.f32 %v1918_v14, %v1907_v30 }
 0x405   : > { %1805 = vrot.lane.b32.xlu0 %v1799_v36, %s4127_s0  ;;  %v1687_v36 = vld [vmem:[#allocation2] ss:$4 sm:$0x7] }
 0x40a   : > { %v1836_v25 = vpop.permute.xlu0 %1835 }
 0x40b   : > { %v1837_v57 = vsel %vm662_vm2, %v1834_v34, %v1836_v25  ;;  %v1843_v60 = vmul.f32 %v1836_v25, %v1825_v50  ;;  %v1920_v38 = vpop.permute.xlu1 %1919  ;;  %v1692_v25 = vperm.slane %v1687_v36, 1  ;;  %vm4135_vm2 = vcmask 916480  }
 0x40c   : > { %v1842_v27 = vmul.f32 %v1837_v57, %v1824_v49  ;;  %v1921_v20 = vsel %vm749_vm4, %v1918_v14, %v1920_v38  ;;  %v1927_v54 = vmul.f32 %v1920_v38, %v1909_v33  ;;  %v1693_v49 = vperm.slane %v1687_v36, 2 }
 0x40d   : > { %1851 = vrot.lane.b32.xlu1 %v1843_v60, %s4128_s27  ;;  %1847 = vrot.lane.b32.xlu0 %v1841_v9, %s4128_s27  ;;  %v1926_v7 = vmul.f32 %v1921_v20, %v1908_v10  ;;  %v1691_v9 = vperm.slane %v1687_v36, 0 }
 0x40e   : > { %1849 = vrot.lane.b32.xlu2 %v1842_v27, %s4128_s27  ;;  %v1711_v1 = vmul.f32 %v3532_v47, %v1693_v49 }
 0x412   : > { %v1876_v11 = vpop.permute.xlu0 %1875 }
 0x413   : > { %v1879_v5 = vsel %vm706_vm3, %v1876_v11, %v1878_v46  ;;  %v1883_v51 = vmul.f32 %v1876_v11, %v1865_v58 }
 0x414   : > { %v1884_v31 = vmul.f32 %v1879_v5, %v1866_v63 }
 0x415   : > { %1893 = vrot.lane.b32.xlu1 %v1885_v21, %s4127_s0  ;;  %1889 = vrot.lane.b32.xlu0 %v1883_v51, %s4127_s0  ;;  %v1712_v21 = vld [vmem:[#allocation2] ss:$4 sm:$0x7] }
 0x416   : > { %1891 = vrot.lane.b32.xlu2 %v1884_v31, %s4127_s0  ;;  %v1717_v15 = vperm.slane %v1712_v21, 1 }
 0x41a   : > { %v1754_v56 = vpop.permute.xlu0 %1753 }
 0x41b   : > { %v1755_v22 = vsel %vm577_vm0, %v1752_v62, %v1754_v56  ;;  %v1761_v26 = vmul.f32 %v1754_v56, %v1743_v6  ;;  %v1716_v56 = vperm.slane %v1712_v21, 0  ;;  %vm4133_vm0 = vcmask 769024  }
 0x41c   : > { %v1760_v0 = vmul.f32 %v1755_v22, %v1742_v4  ;;  %v1718_v22 = vperm.slane %v1712_v21, 2  ;;  %vm4134_vm1 = vmmov %vm4133_vm0 }
 0x41d   : > { %1769 = vrot.lane.b32.xlu1 %v1761_v26, %s4127_s0  ;;  %1765 = vrot.lane.b32.xlu0 %v1759_v29, %s4127_s0  ;;  %v1734_v23 = vmul.f32 %v3537_v2, %v1716_v56 }
 0x41e   : > { %1767 = vrot.lane.b32.xlu2 %v1760_v0, %s4127_s0  ;;  %v1736_v14 = vmul.f32 %v3534_v48, %v1718_v22  ;;  %s432_s0 = sand.u32 1, %s2819_s26  }
 0x41f   : > { %s2420_s25 = scalar_lea.sflag [#allocation4], %s432_s0 }
 0x422   : > { %v1677_v16 = vpop.permute.xlu0 %1676 }
 0x423   : > { %v1684_v8 = vmul.f32 %v1677_v16, %v1666_v12 }
 0x425   : > { %1935 = vrot.lane.b32.xlu1 %v1927_v54, %s4129_s14  ;;  %1931 = vrot.lane.b32.xlu0 %v1925_v3, %s4129_s14 }
 0x426   : > { %1933 = vrot.lane.b32.xlu2 %v1926_v7, %s4129_s14 }
 0x42a   : > { %v1679_v35 = vpop.permute.xlu0 %1678 }
 0x42b   : > { %v1686_v41 = vmul.f32 %v1679_v35, %v1668_v44  ;;  %v1680_v40 = vsel %vm499_vm5, %v1677_v16, %v1679_v35  ;;  %v1647_v16 = vld [vmem:[#allocation2] ss:$4 sm:$0x3] }
 0x42c   : > { %v1685_v55 = vmul.f32 %v1680_v40, %v1667_v52  ;;  %v1651_v35 = vperm.slane %v1647_v16, 1  ;;  %v1650_v40 = vperm.slane %v1647_v16, 0  ;;  %v2073_v16 = vld [vmem:[%s4062_s9 + $0x60] sm:$0xff] }
 0x42e   : > { %v1661_v48 = vmul.f32 %v3493_v32, %v1651_v35  ;;  %v2074_v35 = vld [vmem:[%s4062_s9 + $0x68] sm:$0xff] }
 0x432   : > { %v1702_v18 = vpop.permute.xlu0 %1701 }
 0x433   : > { %v1705_v59 = vsel %vm525_vm6, %v1702_v18, %v3532_v47  ;;  %v1709_v11 = vmul.f32 %v1702_v18, %v1691_v9  ;;  %v1735_v47 = vmul.f32 %v3542_v45, %v1717_v15  ;;  %vm2406_vm6 = vcmask 73728  }
 0x434   : > { %v1710_v57 = vmul.f32 %v1705_v59, %v1692_v25 }
 0x468   : > { %v1850_v50 = vpop.permute.xlu2 %1849 }
 0x46f   : > { %v1810_v24 = vpop.permute.xlu0 %1809 }
 0x470   : > { %v1818_v46 = vadd.f32 %v1810_v24, %v1686_v41  ;;  %v1808_v62 = vpop.permute.xlu1 %1807  ;;  %v1892_v6 = vpop.permute.xlu2 %1891 }
 0x471   : > { %v1812_v17 = vsel %vm594_vm7, %v1808_v62, %v1810_v24 }
 0x472   : > { %1957 = vrot.lane.b32.xlu1 %v1818_v46, %s4130_s23  ;;  %v1817_v37 = vadd.f32 %v1812_v17, %v1685_v55  ;;  %v1660_v17 = vmul.f32 %v3491_v39, %v1650_v40 }
 0x474   : > { %v1953_v42 = vrot.slane %v1817_v37, 4 }
 0x477   : > { %v1806_v43 = vpop.permute.xlu0 %1805 }
 0x478   : > { %v1811_v53 = vsel %vm594_vm7, %v1806_v43, %v1808_v62  ;;  %v1768_v45 = vpop.permute.xlu2 %1767 }
 0x479   : > { %v1816_v34 = vadd.f32 %v1811_v53, %v1684_v8 }
 0x47b   : > { %v1954_v28 = vsel %vm1508_vm10, %v1816_v34, %v1953_v42 }
 0x47c   : > { %1955 = vrot.lane.b32.xlu2 %v1954_v28, %s4130_s23  ;;  %s4136_s23 = sld [smem:[#allocation15_spill]] }
 0x47f   : > { %v1852_v60 = vpop.permute.xlu1 %1851  ;;  %v1848_v27 = vpop.permute.xlu0 %1847 }
 0x480   : > { %v1854_v19 = vsel %vm679_vm8, %v1850_v50, %v1852_v60  ;;  %v1853_v58 = vsel %vm679_vm8, %v1848_v27, %v1850_v50  ;;  %v1860_v5 = vadd.f32 %v1852_v60, %v1711_v1  ;;  %v1934_v54 = vpop.permute.xlu2 %1933  ;;  %v1943_v50 = vld [vmem:[%s4059_s6] sm:$0xff] }
 0x481   : > { %v1859_v63 = vadd.f32 %v1854_v19, %v1710_v57  ;;  %v1858_v31 = vadd.f32 %v1853_v58, %v1709_v11 }
 0x483   : > { %v1968_v51 = vrot.slane %v1859_v63, 4 }
 0x484   : > { %1972 = vrot.lane.b32.xlu2 %v1860_v5, %s4131_s15 }
 0x485   : > { %v1969_v61 = vsel %vm1508_vm10, %v1858_v31, %v1968_v51 }
 0x486   : > { %1970 = vrot.lane.b32.xlu0 %v1969_v61, %s4131_s15  ;;  %s2438_s15 = scalar_lea.hbm %s4136_s23, %s2940_s29  ;;  %s2785_s29 = scalar_lea.hbm %s4136_s23, 2 }
 0x487   : > { %v1894_v4 = vpop.permute.xlu1 %1893  ;;  %v1890_v29 = vpop.permute.xlu0 %1889  ;;  %s2442_s21 = sshll.u32 %s2438_s15, 4  ;;  %s2443_s21 = int_to_ptr.hbm [resolvable:$true] %s2442_s21 }
 0x488   : > { %v1896_v26 = vsel %vm594_vm7, %v1892_v6, %v1894_v4  ;;  %v1895_v0 = vsel %vm594_vm7, %v1890_v29, %v1892_v6  ;;  %v1902_v20 = vadd.f32 %v1894_v4, %v1736_v14  ;;  %s2779_s30 = sshra.s32 %s2443_s21, 4  ;;  %s2780_s30 = int_to_ptr.hbm [resolvable:$true] %s2779_s30 }
 0x489   : > { %v1901_v38 = vadd.f32 %v1896_v26, %v1735_v47  ;;  %v1900_v33 = vadd.f32 %v1895_v0, %v1734_v23  ;;  %v2075_v0 = vld [vmem:[%s4062_s9 + $0x70] sm:$0xff]  ;;  %v2076_v23 = vld [vmem:[%s4062_s9 + $0x78] sm:$0xff]  ;;  %s2781_s1 = scalar_lea.hbm %s2780_s30, 1  ;;  %p2786_p0 = scmp.lt.s32.totalorder %s2780_s30, %s4136_s23 }
 0x48a   : > { %v2100_v14 = vpack.c.bf16 %v2076_v23, %v2075_v0  ;;  %p2782_p11 = scmp.ne.s32.totalorder %s2780_s30, %s2781_s1  ;;  %p2787_p1 = scmp.lt.s32.totalorder %s2785_s29, %s2781_s1 }
 0x48b   : > { %v1983_v30 = vrot.slane %v1901_v38, 4  ;;  %v2091_v38 = vld [vmem:[%s4062_s9 + $0xf0] sm:$0xff] }
 0x48c   : > { %2109 = vmatpush.bf16.msra.mxu0 %v2100_v14  ;;  %v2066_v14 = vld [vmem:[%s4062_s9 + $0x28] sm:$0xff]  ;;  %p2783_p12 = pnand %p2782_p11, %p2957_p5  ;;  %p2788_p2 = por %p2787_p1, %p2786_p0 }
 0x48d   : > { %v1984_v10 = vsel %vm1508_vm10, %v1900_v33, %v1983_v30  ;;  %v2092_v30 = vld [vmem:[%s4062_s9 + $0xf8] sm:$0xff] }
 0x48e   : > { %1987 = vrot.lane.b32.xlu0 %v1902_v20, %s4132_s20  ;;  %1985 = vrot.lane.b32.xlu1 %v1984_v10, %s4132_s20  ;;  %v2108_v33 = vpack.c.bf16 %v2092_v30, %v2091_v38  ;;  %v2611_v20 = vld [vmem:[%s4062_s9 + $0x170] sm:$0xff]  ;;  %v2612_v10 = vld [vmem:[%s4062_s9 + $0x178] sm:$0xff]  ;;  %s433_s20 = scalar_lea.vmem [#allocation3], %s432_s0  ;;  %p2784_p13 = pneg %p2783_p12 }
 0x48f   : > { %v1770_v3 = vpop.permute.xlu1 %1769  ;;  %v1766_v7 = vpop.permute.xlu0 %1765  ;;  %v2065_v38 = vld [vmem:[%s4062_s9 + $0x20] sm:$0xff]  ;;  %s2440_s17 = sshll.u32 %s433_s20, 4  ;;  %s2441_s17 = int_to_ptr.vmem [resolvable:$true] %s2440_s17 }
 0x490   : > { %v1772_v13 = vsel %vm594_vm7, %v1768_v45, %v1770_v3  ;;  %v1771_v52 = vsel %vm594_vm7, %v1766_v7, %v1768_v45  ;;  %v2627_v45 = vld [vmem:[%s4062_s9 + $0x1f0] sm:$0xff]  ;;  %v2182_v3 = vpack.c.bf16 %v2612_v10, %v2611_v20  ;;  %2122 = vmatpush.bf16.msra.mxu1 %v2108_v33  ;;  %v2081_v30 = vld [vmem:[%s4062_s9 + $0xa0] sm:$0xff]  ;;  %v2095_v20 = vpack.c.bf16 %v2066_v14, %v2065_v38  ;;  %v2082_v10 = vld [vmem:[%s4062_s9 + $0xa8] sm:$0xff]  ;;  %p2789_p3 = pnand %p2788_p2, %p2784_p13 }
 0x491   : > { %v1776_v24 = vadd.f32 %v1772_v13, %v1661_v48  ;;  %v1775_v37 = vadd.f32 %v1771_v52, %v1660_v17  ;;  %v2090_v13 = vld [vmem:[%s4062_s9 + $0xe8] sm:$0xff]  ;;  %v2071_v52 = vld [vmem:[%s4062_s9 + $0x50] sm:$0xff]  ;;  %v2072_v17 = vld [vmem:[%s4062_s9 + $0x58] sm:$0xff] }
 0x492   : > { %2199 = vmatpush.bf16.msra.mxu2 %v2182_v3  ;;  %v2657_v38 = vld [vmem:[%s4062_s9 + $0x2e0] sm:$0xff]  ;;  %v2658_v14 = vld [vmem:[%s4062_s9 + $0x2e8] sm:$0xff] }
 0x497   : > { %v1936_v18 = vpop.permute.xlu1 %1935  ;;  %v1932_v44 = vpop.permute.xlu0 %1931 }
 0x498   : > { %v1938_v41 = vsel %vm4133_vm0, %v1934_v54, %v1936_v18  ;;  %v1937_v55 = vsel %vm4134_vm1, %v1932_v44, %v1934_v54  ;;  %v2628_v54 = vld [vmem:[%s4062_s9 + $0x1f8] sm:$0xff]  ;;  %v2089_v18 = vld [vmem:[%s4062_s9 + $0xe0] sm:$0xff] }
 0x499   : > { %v1942_v46 = vadd.f32 %v1938_v41, %v1776_v24  ;;  %v1941_v34 = vadd.f32 %v1937_v55, %v1775_v37  ;;  %v2190_v7 = vpack.c.bf16 %v2628_v54, %v2627_v45  ;;  %v2107_v48 = vpack.c.bf16 %v2090_v13, %v2089_v18  ;;  %v2609_v44 = vld [vmem:[%s4062_s9 + $0x160] sm:$0xff]  ;;  %v2610_v41 = vld [vmem:[%s4062_s9 + $0x168] sm:$0xff]  ;;  %v2087_v55 = vld [vmem:[%s4062_s9 + $0xd0] sm:$0xff] }
 0x49a   : > { %v2625_v24 = vld [vmem:[%s4062_s9 + $0x1e0] sm:$0xff]  ;;  %v2181_v40 = vpack.c.bf16 %v2610_v41, %v2609_v44  ;;  %v2088_v37 = vld [vmem:[%s4062_s9 + $0xd8] sm:$0xff]  ;;  %v2103_v54 = vpack.c.bf16 %v2082_v10, %v2081_v30  ;;  %v2063_v44 = vld [vmem:[%s4062_s9 + $0x10] sm:$0xff] }
 0x49b   : > { %v1946_v8 = vrot.slane %v1942_v46, 4  ;;  %2212 = vmatpush.bf16.msra.mxu3 %v2190_v7  ;;  %v2626_v46 = vld [vmem:[%s4062_s9 + $0x1e8] sm:$0xff]  ;;  %2123 = vmatpush.bf16.msra.mxu1 %v2107_v48  ;;  %v2601_v7 = vld [vmem:[%s4062_s9 + $0x120] sm:$0xff]  ;;  %v2064_v41 = vld [vmem:[%s4062_s9 + $0x18] sm:$0xff] }
 0x49c   : > { %2200 = vmatpush.bf16.msra.mxu2 %v2181_v40  ;;  %v2094_v40 = vpack.c.bf16 %v2064_v41, %v2063_v44  ;;  %v2673_v30 = vld [vmem:[%s4062_s9 + $0x360] sm:$0xff]  ;;  %v2672_v44 = vld [vmem:[%s4062_s9 + $0x358] sm:$0xff] }
 0x49d   : > { %v1947_v59 = vsel %vm1508_vm10, %v1941_v34, %v1946_v8  ;;  %v2106_v8 = vpack.c.bf16 %v2088_v37, %v2087_v55  ;;  %v2624_v34 = vld [vmem:[%s4062_s9 + $0x1d8] sm:$0xff]  ;;  %v2599_v55 = vld [vmem:[%s4062_s9 + $0x110] sm:$0xff]  ;;  %v2689_v10 = vld [vmem:[%s4062_s9 + $0x3e0] sm:$0xff] }
 0x49e   : > { %v1949_v49 = vadd.f32 %v1947_v59, %v1943_v50  ;;  %v2070_v59 = vld [vmem:[%s4062_s9 + $0x48] sm:$0xff]  ;;  %v2085_v50 = vld [vmem:[%s4062_s9 + $0xc0] sm:$0xff]  ;;  %v2615_v37 = vld [vmem:[%s4062_s9 + $0x190] sm:$0xff] }
 0x49f   : > { %2124 = vmatpush.bf16.msra.mxu1 %v2106_v8 }
 0x4d6   : > { %v1956_v2 = vpop.permute.xlu2 %1955 }
 0x4d7   : > { %v1959_v42 = vrot.slane %v1956_v2, 4 }
 0x4de   : > { %v1973_v43 = vpop.permute.xlu2 %1972 }
 0x4df   : > { %v1975_v36 = vrot.slane %v1973_v43, 4  ;;  %v2607_v43 = vld [vmem:[%s4062_s9 + $0x150] sm:$0xff] }
 0x4e4   : > { %v1958_v62 = vpop.permute.xlu1 %1957 }
 0x4e5   : > { %v1960_v12 = vrot.slane %v1958_v62, 4  ;;  %v2189_v62 = vpack.c.bf16 %v2626_v46, %v2625_v24  ;;  %v2079_v24 = vld [vmem:[%s4062_s9 + $0x90] sm:$0xff]  ;;  %v2080_v46 = vld [vmem:[%s4062_s9 + $0x98] sm:$0xff] }
 0x4e7   : > { %v1961_v28 = vsel %vm1508_vm10, %v1959_v42, %v1960_v12  ;;  %v2098_v12 = vpack.c.bf16 %v2072_v17, %v2071_v52  ;;  %2213 = vmatpush.bf16.msra.mxu3 %v2189_v62  ;;  %v2623_v42 = vld [vmem:[%s4062_s9 + $0x1d0] sm:$0xff]  ;;  %v2102_v17 = vpack.c.bf16 %v2080_v46, %v2079_v24  ;;  %v2688_v46 = vld [vmem:[%s4062_s9 + $0x3d8] sm:$0xff] }
 0x4e8   : > { %v1962_v25 = vsel %vm1524_vm13, %v1956_v2, %v1961_v28  ;;  %v2099_v2 = vpack.c.bf16 %v2074_v35, %v2073_v16  ;;  %v2069_v28 = vld [vmem:[%s4062_s9 + $0x40] sm:$0xff]  ;;  %v2602_v16 = vld [vmem:[%s4062_s9 + $0x128] sm:$0xff] }
 0x4e9   : > { %v1964_v27 = vadd.f32 %v1962_v25, %v1949_v49  ;;  %v2097_v25 = vpack.c.bf16 %v2070_v59, %v2069_v28  ;;  %v2086_v49 = vld [vmem:[%s4062_s9 + $0xc8] sm:$0xff]  ;;  %v2617_v35 = vld [vmem:[%s4062_s9 + $0x1a0] sm:$0xff]  ;;  %v2177_v18 = vpack.c.bf16 %v2602_v16, %v2601_v7  ;;  %v2639_v16 = vld [vmem:[%s4062_s9 + $0x250] sm:$0xff] }
 0x4ea   : > { %2110 = vmatpush.bf16.msra.mxu0 %v2099_v2  ;;  %v2618_v2 = vld [vmem:[%s4062_s9 + $0x1a8] sm:$0xff] }
 0x4eb   : > { %v2185_v48 = vpack.c.bf16 %v2618_v2, %v2617_v35  ;;  %v2078_v59 = vld [vmem:[%s4062_s9 + $0x88] sm:$0xff]  ;;  %v2640_v35 = vld [vmem:[%s4062_s9 + $0x258] sm:$0xff] }
 0x4ec   : > { %v2270_v2 = vpack.c.bf16 %v2640_v35, %v2639_v16  ;;  %v2680_v35 = vld [vmem:[%s4062_s9 + $0x398] sm:$0xff] }
 0x4ee   : > { %2111 = vmatpush.bf16.msra.mxu0 %v2098_v12  ;;  %v2600_v12 = vld [vmem:[%s4062_s9 + $0x118] sm:$0xff] }
 0x4ef   : > { %v2176_v8 = vpack.c.bf16 %v2600_v12, %v2599_v55  ;;  %v2653_v55 = vld [vmem:[%s4062_s9 + $0x2c0] sm:$0xff]  ;;  %v2654_v12 = vld [vmem:[%s4062_s9 + $0x2c8] sm:$0xff] }
 0x4f2   : > { %2112 = vmatpush.bf16.msra.mxu0 %v2097_v25 }
 0x4f8   : > { %v1971_v53 = vpop.permute.xlu0 %1970 }
 0x4f9   : > { %v1974_v32 = vrot.slane %v1971_v53, 4 }
 0x4fb   : > { %v1976_v39 = vsel %vm1508_vm10, %v1974_v32, %v1975_v36  ;;  %v2188_v36 = vpack.c.bf16 %v2624_v34, %v2623_v42  ;;  %v2062_v34 = vld [vmem:[%s4062_s9 + $0x8] sm:$0xff] }
 0x4fc   : > { %v1977_v9 = vsel %vm1245_vm11, %v1971_v53, %v1976_v39  ;;  %v2608_v53 = vld [vmem:[%s4062_s9 + $0x158] sm:$0xff] }
 0x4fd   : > { %v1979_v58 = vadd.f32 %v1977_v9, %v1964_v27  ;;  %v2180_v32 = vpack.c.bf16 %v2608_v53, %v2607_v43  ;;  %2214 = vmatpush.bf16.msra.mxu3 %v2188_v36  ;;  %v2606_v27 = vld [vmem:[%s4062_s9 + $0x148] sm:$0xff]  ;;  %v2616_v43 = vld [vmem:[%s4062_s9 + $0x198] sm:$0xff]  ;;  %v2077_v36 = vld [vmem:[%s4062_s9 + $0x80] sm:$0xff] }
 0x4fe   : > { %v2184_v42 = vpack.c.bf16 %v2616_v43, %v2615_v37  ;;  %v2669_v43 = vld [vmem:[%s4062_s9 + $0x340] sm:$0xff] }
 0x4ff   : > { %2201 = vmatpush.bf16.msra.mxu2 %v2180_v32  ;;  %v2061_v32 = vld [vmem:[%s4062_s9] sm:$0xff] }
 0x500   : > { %v1988_v57 = vpop.permute.xlu0 %1987  ;;  %v1986_v60 = vpop.permute.xlu1 %1985  ;;  %v2093_v28 = vpack.c.bf16 %v2062_v34, %v2061_v32  ;;  %v2277_v32 = vpack.c.bf16 %v2654_v12, %v2653_v55  ;;  %v2686_v34 = vld [vmem:[%s4062_s9 + $0x3c8] sm:$0xff] }
 0x501   : > { %v1990_v1 = vrot.slane %v1988_v57, 4  ;;  %v1989_v19 = vrot.slane %v1986_v60, 4  ;;  %v2105_v57 = vpack.c.bf16 %v2086_v49, %v2085_v50  ;;  %v2643_v50 = vld [vmem:[%s4062_s9 + $0x270] sm:$0xff]  ;;  %v2678_v12 = vld [vmem:[%s4062_s9 + $0x388] sm:$0xff] }
 0x503   : > { %v1991_v11 = vsel %vm1508_vm10, %v1989_v19, %v1990_v1  ;;  %v2621_v1 = vld [vmem:[%s4062_s9 + $0x1c0] sm:$0xff]  ;;  %2125 = vmatpush.bf16.msra.mxu1 %v2105_v57 }
 0x504   : > { %v1992_v63 = vsel %vm4135_vm2, %v1986_v60, %v1991_v11  ;;  %v2605_v60 = vld [vmem:[%s4062_s9 + $0x140] sm:$0xff] }
 0x505   : > { %v1994_v21 = vadd.f32 %v1992_v63, %v1979_v58  ;;  %v2179_v19 = vpack.c.bf16 %v2606_v27, %v2605_v60  ;;  %v2622_v58 = vld [vmem:[%s4062_s9 + $0x1c8] sm:$0xff]  ;;  %v2659_v60 = vld [vmem:[%s4062_s9 + $0x2f0] sm:$0xff]  ;;  %v2660_v27 = vld [vmem:[%s4062_s9 + $0x2f8] sm:$0xff] }
 0x506   : > { %v2187_v63 = vpack.c.bf16 %v2622_v58, %v2621_v1  ;;  %v2597_v1 = vld [vmem:[%s4062_s9 + $0x100] sm:$0xff]  ;;  %v2598_v58 = vld [vmem:[%s4062_s9 + $0x108] sm:$0xff] }
 0x507   : > { %v3601_v5 = vmax.f32 %v1994_v21, 0.0  ;;  %v2067_v21 = vld [vmem:[%s4062_s9 + $0x30] sm:$0xff]  ;;  %2202 = vmatpush.bf16.msra.mxu2 %v2179_v19  ;;  %v2280_v19 = vpack.c.bf16 %v2660_v27, %v2659_v60  ;;  %v2668_v60 = vld [vmem:[%s4062_s9 + $0x338] sm:$0xff] }
 0x508   : > { %2215 = vmatpush.bf16.msra.mxu3 %v2187_v63  ;;  %v2614_v63 = vld [vmem:[%s4062_s9 + $0x188] sm:$0xff]  ;;  %v2683_v27 = vld [vmem:[%s4062_s9 + $0x3b0] sm:$0xff] }
 0x509   : > { %1997 = vst [vmem:[#allocation1] ss:$2 sm:$0xff] %v3601_v5  ;;  %v2013_v51 = vmul.f32 %v3601_v5, %v3601_v5 }
 0x510   : > { %v1998_v31 = vld.sshfl [vmem:[#allocation1] sm:$0xff pattern:$0x75316420]  ;;  %v1999_v15 = vld.sshfl [vmem:[#allocation1 + $0x8] sm:$0xff pattern:$0x75316420] }
 0x511   : > { %v2002_v61 = vsel %vm1508_vm10, %v1998_v31, 0.0  ;;  %v2003_v6 = vsel %vm1508_vm10, %v1999_v15, 0.0  ;;  %2015 = vst [vmem:[#allocation1] ss:$2 sm:$0xff] %v2013_v51  ;;  %v2068_v51 = vld [vmem:[%s4062_s9 + $0x38] sm:$0xff]  ;;  %v2083_v31 = vld [vmem:[%s4062_s9 + $0xb0] sm:$0xff] }
 0x512   : > { %v2004_v56 = vadd.f32 %v2003_v6, %v2002_v61  ;;  %v2096_v15 = vpack.c.bf16 %v2068_v51, %v2067_v21  ;;  %v2084_v61 = vld [vmem:[%s4062_s9 + $0xb8] sm:$0xff]  ;;  %v2175_v51 = vpack.c.bf16 %v2598_v58, %v2597_v1  ;;  %v2633_v58 = vld [vmem:[%s4062_s9 + $0x220] sm:$0xff] }
 0x514   : > { %2005 = vadd.xlane.f32.xlu2 %v2004_v56  ;;  %v2104_v56 = vpack.c.bf16 %v2084_v61, %v2083_v31  ;;  %2113 = vmatpush.bf16.msra.mxu0 %v2096_v15  ;;  %v2675_v15 = vld [vmem:[%s4062_s9 + $0x370] sm:$0xff]  ;;  %v2676_v61 = vld [vmem:[%s4062_s9 + $0x378] sm:$0xff] }
 0x516   : > { %2126 = vmatpush.bf16.msra.mxu1 %v2104_v56  ;;  %v2360_v56 = vpack.c.bf16 %v2676_v61, %v2675_v15 }
 0x518   : > { %v2016_v47 = vld.sshfl [vmem:[#allocation1] sm:$0xff pattern:$0x75316420]  ;;  %v2017_v4 = vld.sshfl [vmem:[#allocation1 + $0x8] sm:$0xff pattern:$0x75316420]  ;;  %2114 = vmatpush.bf16.msra.mxu0 %v2095_v20 }
 0x519   : > { %v2020_v29 = vsel %vm1508_vm10, %v2016_v47, 0.0  ;;  %v2021_v22 = vsel %vm1508_vm10, %v2017_v4, 0.0  ;;  %v2603_v47 = vld [vmem:[%s4062_s9 + $0x130] sm:$0xff]  ;;  %v2604_v4 = vld [vmem:[%s4062_s9 + $0x138] sm:$0xff]  ;;  %v2674_v20 = vld [vmem:[%s4062_s9 + $0x368] sm:$0xff] }
 0x51a   : > { %v2022_v26 = vadd.f32 %v2021_v22, %v2020_v29  ;;  %v2619_v29 = vld [vmem:[%s4062_s9 + $0x1b0] sm:$0xff]  ;;  %v2178_v22 = vpack.c.bf16 %v2604_v4, %v2603_v47  ;;  %2127 = vmatpush.bf16.msra.mxu1 %v2103_v54  ;;  %v2692_v47 = vld [vmem:[%s4062_s9 + $0x3f8] sm:$0xff]  ;;  %v2641_v4 = vld [vmem:[%s4062_s9 + $0x260] sm:$0xff]  ;;  %v2359_v54 = vpack.c.bf16 %v2674_v20, %v2673_v30 }
 0x51c   : > { %2023 = vadd.xlane.f32.xlu1 %v2022_v26  ;;  %v2620_v26 = vld [vmem:[%s4062_s9 + $0x1b8] sm:$0xff]  ;;  %2203 = vmatpush.bf16.msra.mxu2 %v2178_v22 }
 0x51d   : > { %v2186_v23 = vpack.c.bf16 %v2620_v26, %v2619_v29  ;;  %2115 = vmatpush.bf16.msra.mxu0 %v2094_v40  ;;  %v2642_v29 = vld [vmem:[%s4062_s9 + $0x268] sm:$0xff]  ;;  %v2687_v40 = vld [vmem:[%s4062_s9 + $0x3d0] sm:$0xff] }
 0x51e   : > { %2128 = vmatpush.bf16.msra.mxu1 %v2102_v17  ;;  %v2638_v17 = vld [vmem:[%s4062_s9 + $0x248] sm:$0xff]  ;;  %v2366_v37 = vpack.c.bf16 %v2688_v46, %v2687_v40 }
 0x51f   : > { %2216 = vmatpush.bf16.msra.mxu3 %v2186_v23  ;;  %v2271_v23 = vpack.c.bf16 %v2642_v29, %v2641_v4  ;;  %v2681_v4 = vld [vmem:[%s4062_s9 + $0x3a0] sm:$0xff] }
 0x520   : > { %2204 = vmatpush.bf16.msra.mxu2 %v2177_v18  ;;  %v2655_v18 = vld [vmem:[%s4062_s9 + $0x2d0] sm:$0xff] }
 0x521   : > { %2116 = vmatpush.bf16.msra.mxu0 %v2093_v28  ;;  %v2636_v28 = vld [vmem:[%s4062_s9 + $0x238] sm:$0xff] }
 0x523   : > { %2217 = vmatpush.bf16.msra.mxu3 %v2185_v48  ;;  %v2671_v48 = vld [vmem:[%s4062_s9 + $0x350] sm:$0xff] }
 0x524   : > { %2205 = vmatpush.bf16.msra.mxu2 %v2176_v8 }
 0x527   : > { %2218 = vmatpush.bf16.msra.mxu3 %v2184_v42  ;;  %v2685_v42 = vld [vmem:[%s4062_s9 + $0x3c0] sm:$0xff] }
 0x528   : > { %2206 = vmatpush.bf16.msra.mxu2 %v2175_v51  ;;  %v2650_v51 = vld [vmem:[%s4062_s9 + $0x2a8] sm:$0xff] }
 0x52c   : > { %2379 = vmatpush.bf16.msrb.mxu2 %v2360_v56  ;;  %v2665_v56 = vld [vmem:[%s4062_s9 + $0x320] sm:$0xff] }
 0x530   : > { %2380 = vmatpush.bf16.msrb.mxu2 %v2359_v54  ;;  %v2679_v54 = vld [vmem:[%s4062_s9 + $0x390] sm:$0xff] }
 0x531   : > { %v2362_v46 = vpack.c.bf16 %v2680_v35, %v2679_v54 }
 0x587   : > { %v2006_v39 = vpop.xlane.xlu2 %2005 }
 0x588   : > { %v2007_v9 = vrot.slane %v2006_v39, 4 }
 0x58a   : > { %v2008_v11 = vadd.f32 %v2007_v9, %v2006_v39  ;;  %v2644_v39 = vld [vmem:[%s4062_s9 + $0x278] sm:$0xff]  ;;  %v2101_v9 = vpack.c.bf16 %v2078_v59, %v2077_v36  ;;  %v2635_v36 = vld [vmem:[%s4062_s9 + $0x230] sm:$0xff] }
 0x58b   : > { %v2272_v57 = vpack.c.bf16 %v2644_v39, %v2643_v50  ;;  %v2651_v59 = vld [vmem:[%s4062_s9 + $0x2b0] sm:$0xff]  ;;  %v2652_v50 = vld [vmem:[%s4062_s9 + $0x2b8] sm:$0xff] }
 0x58c   : > { %v2009_v6 = vrot.slane %v2008_v11, 2  ;;  %2129 = vmatpush.bf16.msra.mxu1 %v2101_v9  ;;  %v2268_v9 = vpack.c.bf16 %v2636_v28, %v2635_v36  ;;  %v2276_v1 = vpack.c.bf16 %v2652_v50, %v2651_v59 }
 0x58d   : > { %2287 = vmatpush.bf16.msrb.mxu0 %v2272_v57  ;;  %v2667_v57 = vld [vmem:[%s4062_s9 + $0x330] sm:$0xff] }
 0x58e   : > { %v2010_v0 = vadd.f32 %v2009_v6, %v2008_v11  ;;  %v2613_v11 = vld [vmem:[%s4062_s9 + $0x180] sm:$0xff]  ;;  %v2691_v6 = vld [vmem:[%s4062_s9 + $0x3f0] sm:$0xff]  ;;  %v2356_v15 = vpack.c.bf16 %v2668_v60, %v2667_v57 }
 0x58f   : > { %v2024_v33 = vpop.xlane.xlu1 %2023  ;;  %v2183_v31 = vpack.c.bf16 %v2614_v63, %v2613_v11  ;;  %v2634_v11 = vld [vmem:[%s4062_s9 + $0x228] sm:$0xff] }
 0x590   : > { %v2011_v45 = vrot.slane %v2010_v0, 1  ;;  %v2025_v3 = vrot.slane %v2024_v33, 4  ;;  %2300 = vmatpush.bf16.msrb.mxu1 %v2280_v19  ;;  %v2684_v19 = vld [vmem:[%s4062_s9 + $0x3b8] sm:$0xff] }
 0x591   : > { %2219 = vmatpush.bf16.msra.mxu3 %v2183_v31  ;;  %2288 = vmatpush.bf16.msrb.mxu0 %v2271_v23  ;;  %v2364_v61 = vpack.c.bf16 %v2684_v19, %v2683_v27  ;;  %v2632_v23 = vld [vmem:[%s4062_s9 + $0x218] sm:$0xff] }
 0x592   : > { %v2026_v13 = vadd.f32 %v2025_v3, %v2024_v33  ;;  %v2012_v62 = vadd.f32 %v2011_v45, %v2010_v0  ;;  %v2368_v0 = vpack.c.bf16 %v2692_v47, %v2691_v6  ;;  %v2279_v33 = vpack.c.bf16 %v2658_v14, %v2657_v38  ;;  %v2690_v45 = vld [vmem:[%s4062_s9 + $0x3e8] sm:$0xff]  ;;  %v2647_v38 = vld [vmem:[%s4062_s9 + $0x290] sm:$0xff]  ;;  %v2648_v14 = vld [vmem:[%s4062_s9 + $0x298] sm:$0xff] }
 0x593   : > { %v2367_v7 = vpack.c.bf16 %v2690_v45, %v2689_v10  ;;  %v2267_v6 = vpack.c.bf16 %v2634_v11, %v2633_v58  ;;  %v2666_v47 = vld [vmem:[%s4062_s9 + $0x328] sm:$0xff]  ;;  %v2663_v45 = vld [vmem:[%s4062_s9 + $0x310] sm:$0xff]  ;;  %v2274_v16 = vpack.c.bf16 %v2648_v14, %v2647_v38 }
 0x594   : > { %v2027_v52 = vrot.slane %v2026_v13, 2  ;;  %v3796_v25 = vmul.f32 0.0017361111, %v2012_v62  ;;  %2301 = vmatpush.bf16.msrb.mxu1 %v2279_v33  ;;  %v2637_v62 = vld [vmem:[%s4062_s9 + $0x240] sm:$0xff]  ;;  %v2355_v33 = vpack.c.bf16 %v2666_v47, %v2665_v56 }
 0x595   : > { %2392 = vmatpush.bf16.msrb.mxu3 %v2368_v0  ;;  %2289 = vmatpush.bf16.msrb.mxu0 %v2270_v2  ;;  %v2269_v8 = vpack.c.bf16 %v2638_v17, %v2637_v62  ;;  %v2631_v0 = vld [vmem:[%s4062_s9 + $0x210] sm:$0xff]  ;;  %v2630_v2 = vld [vmem:[%s4062_s9 + $0x208] sm:$0xff] }
 0x596   : > { %v2028_v53 = vadd.f32 %v2027_v52, %v2026_v13  ;;  %v2033_v22 = vmul.f32 %v3796_v25, %v3796_v25  ;;  %v2656_v13 = vld [vmem:[%s4062_s9 + $0x2d8] sm:$0xff]  ;;  %v2358_v52 = vpack.c.bf16 %v2672_v44, %v2671_v48  ;;  %v2266_v10 = vpack.c.bf16 %v2632_v23, %v2631_v0  ;;  %v2646_v48 = vld [vmem:[%s4062_s9 + $0x288] sm:$0xff] }
 0x597   : > { %v2278_v24 = vpack.c.bf16 %v2656_v13, %v2655_v18  ;;  %v2629_v18 = vld [vmem:[%s4062_s9 + $0x200] sm:$0xff]  ;;  %v2046_v40 = vsub.f32 %v3601_v5, %v3796_v25  ;;  %v2662_v17 = vld [vmem:[%s4062_s9 + $0x308] sm:$0xff] }
 0x598   : > { %v2029_v49 = vrot.slane %v2028_v53, 1  ;;  %2381 = vmatpush.bf16.msrb.mxu2 %v2358_v52  ;;  %v2645_v13 = vld [vmem:[%s4062_s9 + $0x280] sm:$0xff]  ;;  %v2265_v62 = vpack.c.bf16 %v2630_v2, %v2629_v18 }
 0x599   : > { %2393 = vmatpush.bf16.msrb.mxu3 %v2367_v7  ;;  %2302 = vmatpush.bf16.msrb.mxu1 %v2278_v24  ;;  %v2661_v52 = vld [vmem:[%s4062_s9 + $0x300] sm:$0xff]  ;;  %v2273_v5 = vpack.c.bf16 %v2646_v48, %v2645_v13 }
 0x59a   : > { %v2030_v21 = vadd.f32 %v2029_v49, %v2028_v53  ;;  %v2670_v53 = vld [vmem:[%s4062_s9 + $0x348] sm:$0xff]  ;;  %2290 = vmatpush.bf16.msrb.mxu0 %v2269_v8  ;;  %v2365_v49 = vpack.c.bf16 %v2686_v34, %v2685_v42  ;;  %v2677_v25 = vld [vmem:[%s4062_s9 + $0x380] sm:$0xff] }
 0x59b   : > { %v2357_v39 = vpack.c.bf16 %v2670_v53, %v2669_v43  ;;  %v2050_v8 = vld [vmem:[%s4061_s8] sm:$0xff]  ;;  %v2353_v43 = vpack.c.bf16 %v2662_v17, %v2661_v52  ;;  %v2361_v42 = vpack.c.bf16 %v2678_v12, %v2677_v25 }
 0x59c   : > { %v2032_v26 = vmul.f32 0.0017361111, %v2030_v21  ;;  %v2649_v21 = vld [vmem:[%s4062_s9 + $0x2a0] sm:$0xff] }
 0x59d   : > { %2394 = vmatpush.bf16.msrb.mxu3 %v2366_v37  ;;  %2303 = vmatpush.bf16.msrb.mxu1 %v2277_v32 }
 0x59e   : > { %v2034_v3 = vsub.f32 %v2032_v26, %v2033_v22  ;;  %2382 = vmatpush.bf16.msrb.mxu2 %v2357_v39  ;;  %2291 = vmatpush.bf16.msrb.mxu0 %v2268_v9  ;;  %v2275_v22 = vpack.c.bf16 %v2650_v51, %v2649_v21  ;;  %v2682_v26 = vld [vmem:[%s4062_s9 + $0x3a8] sm:$0xff] }
 0x59f   : > { %v2363_v20 = vpack.c.bf16 %v2682_v26, %v2681_v4 }
 0x5a0   : > { %v3872_v41 = vadd.f32 1e-05, %v2034_v3  ;;  %v2664_v3 = vld [vmem:[%s4062_s9 + $0x318] sm:$0xff] }
 0x5a1   : > { %2395 = vmatpush.bf16.msrb.mxu3 %v2365_v49  ;;  %2304 = vmatpush.bf16.msrb.mxu1 %v2276_v1  ;;  %v2354_v24 = vpack.c.bf16 %v2664_v3, %v2663_v45 }
 0x5a2   : > { %2759 = vrsqrt.f32 %v3872_v41  ;;  %2383 = vmatpush.bf16.msrb.mxu2 %v2356_v15  ;;  %2292 = vmatpush.bf16.msrb.mxu0 %v2267_v6  ;;  %vm2042_vm4 = vweird.f32 %v3872_v41 }
 0x5a5   : > { %2396 = vmatpush.bf16.msrb.mxu3 %v2364_v61  ;;  %2305 = vmatpush.bf16.msrb.mxu1 %v2275_v22 }
 0x5a6   : > { %2384 = vmatpush.bf16.msrb.mxu2 %v2355_v33  ;;  %2293 = vmatpush.bf16.msrb.mxu0 %v2266_v10  ;;  %v2053_v10 = vld [vmem:[%s4063_s10] sm:$0x1] }
 0x5a8   : > { %v2760_v63 = vpop.eup %2759 }
 0x5a9   : > { %v2037_v31 = vmul.f32 %v2760_v63, %v3872_v41  ;;  %vm2043_vm3 = vweird.f32 %v2760_v63  ;;  %2397 = vmatpush.bf16.msrb.mxu3 %v2363_v20  ;;  %v2048_v41 = vld [vmem:[%s4060_s7] sm:$0xff]  ;;  %2306 = vmatpush.bf16.msrb.mxu1 %v2274_v16 }
 0x5aa   : > { %vm2044_vm5 = vmor %vm2042_vm4, %vm2043_vm3  ;;  %2385 = vmatpush.bf16.msrb.mxu2 %v2354_v24  ;;  %2294 = vmatpush.bf16.msrb.mxu0 %v2265_v62 }
 0x5ab   : > { %v2038_v29 = vmul.f32 %v2760_v63, %v2037_v31 }
 0x5ad   : > { %v2039_v30 = vmul.f32 0.5, %v2038_v29  ;;  %2398 = vmatpush.bf16.msrb.mxu3 %v2362_v46  ;;  %2307 = vmatpush.bf16.msrb.mxu1 %v2273_v5 }
 0x5ae   : > { %2386 = vmatpush.bf16.msrb.mxu2 %v2353_v43 }
 0x5af   : > { %v2040_v7 = vsub.f32 1.5, %v2039_v30 }
 0x5b1   : > { %v2041_v44 = vmul.f32 %v2760_v63, %v2040_v7  ;;  %2399 = vmatpush.bf16.msrb.mxu3 %v2361_v42 }
 0x5b3   : > { %v2045_v55 = vsel %vm2044_vm5, %v2760_v63, %v2041_v44 }
 0x5b4   : > { %v2047_v37 = vmul.f32 %v2046_v40, %v2045_v55 }
 0x5b6   : > { %v2049_v53 = vmul.f32 %v2048_v41, %v2047_v37 }
 0x5b8   : > { %v2051_v32 = vadd.f32 %v2050_v8, %v2049_v53 }
 0x5ba   : > { %2052 = vst [vmem:[%s462_s22] sm:$0xff] %v2051_v32  ;;  %v2055_v34 = vperm.slane %v2051_v32, 0  ;;  %v2056_v36 = vperm.slane %v2051_v32, 4  ;;  %v2136_v28 = vperm.slane %v2051_v32, 1  ;;  %v2137_v59 = vperm.slane %v2051_v32, 5 }
 0x5bb   : > { %v2314_v27 = vperm.slane %v2051_v32, 3  ;;  %v2315_v1 = vperm.slane %v2051_v32, 7  ;;  %v2226_v19 = vperm.slane %v2051_v32, 2  ;;  %v2227_v58 = vperm.slane %v2051_v32, 6 }
 0x5bc   : > { %v2059_v50 = vpack.c.bf16 %v2055_v34, %v2055_v34  ;;  %v2060_v39 = vpack.c.bf16 %v2056_v36, %v2056_v36  ;;  %v2140_v49 = vpack.c.bf16 %v2136_v28, %v2136_v28  ;;  %v2141_v9 = vpack.c.bf16 %v2137_v59, %v2137_v59 }
 0x5bd   : > { %v2318_v11 = vpack.c.bf16 %v2314_v27, %v2314_v27  ;;  %v2319_v63 = vpack.c.bf16 %v2315_v1, %v2315_v1  ;;  %v2230_v21 = vpack.c.bf16 %v2226_v19, %v2226_v19  ;;  %v2231_v51 = vpack.c.bf16 %v2227_v58, %v2227_v58 }
 0x5be   : > { %2117 = vmatmul.bf16.vlgmr.msra.gmra.mxu0 %v2059_v50  ;;  %2130 = vmatmul.bf16.vlgmr.msra.gmra.mxu1 %v2060_v39  ;;  %v2192_v57 = vshrl.u32 %v2140_v49, 16  ;;  %v2195_v60 = vshrl.u32 %v2141_v9, 16 }
 0x5bf   : > { %v2370_v31 = vshrl.u32 %v2318_v11, 16  ;;  %v2374_v15 = vshrl.u32 %v2319_v63, 16  ;;  %v2283_v61 = vrot.slane %v2230_v21, 1  ;;  %v2284_v6 = vrot.slane %v2231_v51, 1 }
 0x5c0   : > { %2207 = vmatmul.bf16.vlgmr.msra.gmra.mxu2 %v2192_v57  ;;  %2220 = vmatmul.bf16.vlgmr.msra.gmra.mxu3 %v2195_v60 }
 0x5c1   : > { %v2372_v56 = vrot.slane %v2370_v31, 1  ;;  %v2376_v47 = vrot.slane %v2374_v15, 1 }
 0x5ce   : > { %2295 = vmatmul.bf16.vlgmr.msrb.gmra.mxu0 %v2283_v61  ;;  %2308 = vmatmul.bf16.vlgmr.msrb.gmra.mxu1 %v2284_v6 }
 0x5d0   : > { %2387 = vmatmul.bf16.vlgmr.msrb.gmra.mxu2 %v2372_v56  ;;  %2400 = vmatmul.bf16.vlgmr.msrb.gmra.mxu3 %v2376_v47 }
 0x63b   : > { %v2118_v4 = vpop.f32.mrf.mxu0  ;;  %v2131_v29 = vpop.f32.mrf.mxu1 }
 0x63c   : > { %v2132_v20 = vadd.f32 %v2131_v29, %v2118_v4 }
 0x63e   : > { %v2135_v3 = vadd.f32 %v2132_v20, %v2053_v10 }
 0x643   : > { %v2120_v22 = vpop.f32.mrf.mxu0  ;;  %v2133_v26 = vpop.f32.mrf.mxu1 }
 0x644   : > { %v2208_v0 = vpop.f32.mrf.mxu2  ;;  %v2221_v23 = vpop.f32.mrf.mxu3 }
 0x645   : > { %v2222_v45 = vadd.f32 %v2221_v23, %v2208_v0 }
 0x647   : > { %v2225_v7 = vadd.f32 %v2222_v45, %v2135_v3 }
 0x64b   : > { %v2296_v38 = vpop.f32.mrf.mxu0  ;;  %v2309_v14 = vpop.f32.mrf.mxu1 }
 0x64c   : > { %v2210_v30 = vpop.f32.mrf.mxu2  ;;  %v2223_v33 = vpop.f32.mrf.mxu3  ;;  %v2310_v54 = vadd.f32 %v2309_v14, %v2296_v38 }
 0x64e   : > { %v2313_v13 = vadd.f32 %v2310_v54, %v2225_v7 }
 0x653   : > { %v2298_v16 = vpop.f32.mrf.mxu0  ;;  %v2311_v35 = vpop.f32.mrf.mxu1 }
 0x654   : > { %v2388_v18 = vpop.f32.mrf.mxu2  ;;  %v2401_v2 = vpop.f32.mrf.mxu3 }
 0x655   : > { %v2402_v48 = vadd.f32 %v2401_v2, %v2388_v18 }
 0x657   : > { %v2405_v44 = vadd.f32 %v2402_v48, %v2313_v13 }
 0x659   : > { %v2407_v24 = vsel %vm2406_vm6, %v2405_v44, -inf }
 0x65a   : > { %2408 = vmax.xlane.f32.xlu0 %v2407_v24 }
 0x65c   : > { %v2390_v40 = vpop.f32.mrf.mxu2  ;;  %v2403_v46 = vpop.f32.mrf.mxu3 }
 0x6cd   : > { %v2409_v62 = vpop.xlane.xlu0 %2408 }
 0x6ce   : > { %v2410_v52 = vsub.f32 %v2405_v44, %v2409_v62 }
 0x6d0   : > { %v2411_v17 = vmul.f32 1.442695, %v2410_v52 }
 0x6d2   : > { %2761 = vpow2.f32 %v2411_v17 }
 0x6d8   : > { %v2762_v41 = vpop.eup %2761 }
 0x6d9   : > { %v2413_v55 = vsel %vm2406_vm6, %v2762_v41, 0.0 }
 0x6da   : > { %2414 = vadd.xlane.f32.xlu2 %v2413_v55 }
 0x74d   : > { %v2415_v5 = vpop.xlane.xlu2 %2414 }
 0x74e   : > { %2763 = vrcp.f32 %v2415_v5 }
 0x754   : > { %v2764_v25 = vpop.eup %2763 }
 0x755   : > { %v2417_v12 = vmul.f32 %v2764_v25, %v2762_v41 }
 0x757   : > { %2418 = vst.msk [vmem:[%s433_s20] sm:$0x1] %vm2406_vm6, %v2417_v12 }
 0x758   : > { %2792 = shalt.err (!%p2789_p3)
}
 0x759   : > { %2698 = dma.vmem_to_hbm [thread:$0]  (%p2957_p5), %s2441_s17, 16, %s2443_s21, %s2420_s25  }
 0x75a PF: > { %s4137_s22 = sld [smem:[#allocation8_spill]] }
 0x75b   : > { %s4138_s16 = sld [smem:[#allocation6_spill]] }
 0x760   : > { %p2704_p4 = scmp.ge.s32.totalorder %s4137_s22, 2 }
 0x761   : > { %s2460_s0 = sand.u32 1, %s4138_s16  }
 0x762   : > { %p2701_p7 = pnand %p2704_p4, %p2961_p6  ;;  %s2461_s27 = scalar_lea.sflag [#allocation4], %s2460_s0 }
 0x764   : > { %p2702_p8 = pneg %p2701_p7 }
 0x766   : > { %2810 = dma.done.wait (%p2702_p8), %s2461_s27, 16  }
 0x767   : > { %2812 = vsyncadd (%p2702_p8), %s2461_s27, 4294967280  ;;  %s4140_s28 = sld [smem:[#allocation9_spill]]  ;;  %s4143_s25 = smov %s2819_s26 }
 0x768   : > { %s4141_s14 = sld [smem:[#allocation7_spill]] }
 0x769   : > { %s4142_s27 = sld [smem:[#allocation10_spill]] }
 0x76d   : > { %p24_p9 = scmp.ge.s32.totalorder %s4140_s28, 4  }
 0x76e   : > { %s4144_s26 = smov %s4141_s14 }
 0x76f   :  { %26 = sbr.rel (!%p24_p9) target bundleno = 8 (0x8), region = 162 }
 0x774   :  { %2482 = vsyncpa [#allocation4], 1 }
 0x775   :  { %2484 = vsyncpa [#allocation4 + $0x1], 1 }

</bundles_post_ra>
